<compile_context>
chip_gen: v7x
topology: tpu7x:2x2x1
jax: 0.10.0
libtpu: 0.0.40
codegen_flags: <defaults>
</compile_context>

<pallas_src>
import math
import jax
import jax.numpy as jnp
from jax.experimental import pallas as pl
from jax.experimental.pallas import tpu as pltpu

D_MODEL = 32
N_HEADS = 4
D_FF = 64
HEAD_DIM = D_MODEL // N_HEADS
LN_EPS = 1e-5
NEG_INF = -1e30
OUT_W = 128                      # lane-dense packed output width

# ----- packed weight slab layout: ONE (272, 96) f32 array ------------------
W_COLS = 3 * D_MODEL             # 96
_R_QKV1 = 0                      # (D, 3D)  rows   0:32
_R_KV2 = 32                      # (D, 2D)  rows  32:64   cols 0:64
_R_FF1 = 64                      # (D, F)   rows  64:96   cols 0:64
_R_FF2 = 96                      # (F, D)   rows  96:160  cols 0:32
_R_O1 = 160                      # (D, D)   rows 160:192  cols 0:32
_R_Q2 = 192                      # (D, D)   rows 192:224  cols 0:32
_R_O2 = 224                      # (D, D)   rows 224:256  cols 0:32
_R_VEC = 256                     # 16 rows of packed (1, *) vectors
W_ROWS = 272                     # multiple of 8 sublanes

# rows of the vector block (relative to _R_VEC)
_ROW_LN_PRE_G, _ROW_LN_PRE_B = 0, 1
_ROW_B_QKV1 = 2
_ROW_B_O1 = 3
_ROW_LN1_G, _ROW_LN1_B = 4, 5
_ROW_B_Q2 = 6
_ROW_B_KV2 = 7
_ROW_B_O2 = 8
_ROW_LN2_G, _ROW_LN2_B = 9, 10
_ROW_B_FF1 = 11
_ROW_B_FF2 = 12
_ROW_LN3_G, _ROW_LN3_B = 13, 14


# ---------------------------------------------------------------------------
# in-kernel math helpers
# ---------------------------------------------------------------------------
def _erf(x):
    # Abramowitz & Stegun 7.1.26 polynomial (max abs err ~1.5e-7).
    # torch.nn.GELU() defaults to the exact (erf) formulation.
    a1, a2, a3, a4, a5 = (0.254829592, -0.284496736, 1.421413741,
                          -1.453152027, 1.061405429)
    p = 0.3275911
    s = jnp.where(x >= 0.0, 1.0, -1.0)
    ax = jnp.abs(x)
    t = pl.reciprocal(1.0 + p * ax, approx=True)          # EUP, off the VALU path
    poly = ((((a5 * t + a4) * t + a3) * t + a2) * t + a1) * t
    return s * (1.0 - poly * jnp.exp(-ax * ax))


def _gelu(x):
    return 0.5 * x * (1.0 + _erf(x * (1.0 / math.sqrt(2.0))))


def _layer_norm(x, g, b):
    mu = jnp.mean(x, axis=-1, keepdims=True)
    var = jnp.mean((x - mu) ** 2, axis=-1, keepdims=True)
    return (x - mu) * jax.lax.rsqrt(var + LN_EPS) * g + b


def _attend(q, k, v, w_o, bias):
    """Multi-head attention core for one batch element.

    q: (T, D) with 1/sqrt(head_dim) already folded into the Q projection;
    k, v: (S, D); w_o: (D, D); bias: (T, S) additive mask bias.
    Output projection is folded into the static head loop (no lane concat).
    Returns (attn output WITHOUT out-bias (T, D), head-averaged weights (T, S)).
    """
    T = q.shape[0]
    S = k.shape[0]
    kT = k.T                                       # one hoisted transpose per attention
    acc = jnp.zeros((T, D_MODEL), jnp.float32)
    attn_sum = jnp.zeros((T, S), jnp.float32)
    for h in range(N_HEADS):                       # static unrolled loop
        sl = slice(h * HEAD_DIM, (h + 1) * HEAD_DIM)
        s = jnp.dot(q[:, sl], kT[sl, :], preferred_element_type=jnp.float32) + bias
        s = s - jnp.max(s, axis=-1, keepdims=True)
        e = jnp.exp(s)
        p = e * pl.reciprocal(jnp.sum(e, axis=-1, keepdims=True), approx=True)
        attn_sum = attn_sum + p
        oh = jnp.dot(p, v[:, sl], preferred_element_type=jnp.float32)       # (T, HD)
        acc = acc + jnp.dot(oh, w_o[sl, :], preferred_element_type=jnp.float32)
    return acc, attn_sum * (1.0 / N_HEADS)


# ---------------------------------------------------------------------------
# the Pallas kernel: one full decoder layer for `nb` batch elements per step
# ---------------------------------------------------------------------------
def make_kernel(nb, T, S):
    pad_w = OUT_W - (D_MODEL + T + S)

    def kernel(x_ref, enc_ref, bias_ref, w_ref, out_ref):
        D, F = D_MODEL, D_FF

        # static sublane slices of the single weight slab (row offsets % 8 == 0,
        # column start always 0 -> no lane rotation)
        w_qkv1 = w_ref[_R_QKV1:_R_QKV1 + D, :]            # (D, 3D)
        w_kv2 = w_ref[_R_KV2:_R_KV2 + D, 0:2 * D]         # (D, 2D)
        w_ff1 = w_ref[_R_FF1:_R_FF1 + D, 0:F]             # (D, F)
        w_ff2 = w_ref[_R_FF2:_R_FF2 + F, 0:D]             # (F, D)
        w_o1 = w_ref[_R_O1:_R_O1 + D, 0:D]                # (D, D)
        w_q2 = w_ref[_R_Q2:_R_Q2 + D, 0:D]                # (D, D)
        w_o2 = w_ref[_R_O2:_R_O2 + D, 0:D]                # (D, D)

        def vec(row, width):                              # (1, width) bias / LN row
            r = _R_VEC + row
            return w_ref[r:r + 1, 0:width]

        for b in range(nb):                               # static unroll over batch
            x = x_ref[b]                                  # (T, D)
            enc = enc_ref[b]                              # (S, D)
            bias = bias_ref[b]                            # (2T, max(T,S))
            bias_self = bias[0:T, 0:T]                    # (T, T)
            bias_cross = bias[T:2 * T, 0:S]               # (T, S), already broadcast

            # pre-norm
            x = _layer_norm(x, vec(_ROW_LN_PRE_G, D), vec(_ROW_LN_PRE_B, D))

            # masked self-attention (fused QKV projection) + residual + LN
            qkv = jnp.dot(x, w_qkv1, preferred_element_type=jnp.float32) \
                + vec(_ROW_B_QKV1, 3 * D)                 # (T, 3D)
            o1, attn1 = _attend(qkv[:, 0:D], qkv[:, D:2 * D], qkv[:, 2 * D:3 * D],
                                w_o1, bias_self)
            o1 = o1 + vec(_ROW_B_O1, D)
            x = _layer_norm(x + o1, vec(_ROW_LN1_G, D), vec(_ROW_LN1_B, D))

            # cross-attention over encoder output (fused KV projection) + residual + LN
            q2 = jnp.dot(x, w_q2, preferred_element_type=jnp.float32) \
                + vec(_ROW_B_Q2, D)                       # (T, D)
            kv2 = jnp.dot(enc, w_kv2, preferred_element_type=jnp.float32) \
                + vec(_ROW_B_KV2, 2 * D)                  # (S, 2D)
            o2, attn2 = _attend(q2, kv2[:, 0:D], kv2[:, D:2 * D], w_o2, bias_cross)
            o2 = o2 + vec(_ROW_B_O2, D)
            x = _layer_norm(x + o2, vec(_ROW_LN2_G, D), vec(_ROW_LN2_B, D))

            # FFN: Linear -> GELU -> (Dropout=id) -> Linear, residual, LN
            h = _gelu(jnp.dot(x, w_ff1, preferred_element_type=jnp.float32)
                      + vec(_ROW_B_FF1, F))
            ffn = jnp.dot(h, w_ff2, preferred_element_type=jnp.float32) \
                + vec(_ROW_B_FF2, D)
            x = _layer_norm(x + ffn, vec(_ROW_LN3_G, D), vec(_ROW_LN3_B, D))

            # lane-dense packed output: one full (T, 128) unmasked store + 1 DMA
            out_ref[b] = jnp.concatenate(
                [x, attn1, attn2, jnp.zeros((T, pad_w), jnp.float32)], axis=-1)

    return kernel


# ---------------------------------------------------------------------------
# wrapper
# ---------------------------------------------------------------------------
def _default_batch_per_step(B):
    # v7x has 2 TensorCores/chip: keep one batch element per grid step so the
    # "parallel" batch axis is sharded across cores.  Single-TC chips
    # (v5e/v6e): fuse the whole batch into one grid step (no per-step cost).
    try:
        kind = jax.devices()[0].device_kind.lower()
    except Exception:
        kind = ""
    if "v7" in kind or "7x" in kind:
        return 1
    return B


def decoder_layer(x, enc, pad_mask_enc, pad_mask_dec, slf_attn_mask, w_slab,
                  batch_per_step=None):
    B, T, D = x.shape
    S = enc.shape[1]
    nb = _default_batch_per_step(B) if batch_per_step is None else batch_per_step
    assert B % nb == 0
    smax = max(T, S)

    # Combined additive-bias slab, built once in the wrapper:
    #   rows [0:T)  : self-attn bias  (causal OR decoder key-padding)  (T, T)
    #   rows [T:2T) : cross-attn bias (encoder key-padding, broadcast) (T, S)
    bias_self = jnp.where(slf_attn_mask[None, :, :] | pad_mask_dec[:, None, :],
                          NEG_INF, 0.0).astype(jnp.float32)               # (B,T,T)
    bias_cross = jnp.broadcast_to(
        jnp.where(pad_mask_enc, NEG_INF, 0.0).astype(jnp.float32)[:, None, :],
        (B, T, S))                                                         # (B,T,S)
    bias_slab = jnp.zeros((B, 2 * T, smax), jnp.float32)
    bias_slab = bias_slab.at[:, 0:T, 0:T].set(bias_self)
    bias_slab = bias_slab.at[:, T:2 * T, 0:S].set(bias_cross)

    out_slab = pl.pallas_call(
        make_kernel(nb, T, S),
        grid=(B // nb,),
        in_specs=[
            pl.BlockSpec((nb, T, D), lambda i: (i, 0, 0)),
            pl.BlockSpec((nb, S, D), lambda i: (i, 0, 0)),
            pl.BlockSpec((nb, 2 * T, smax), lambda i: (i, 0, 0)),
            pl.BlockSpec((W_ROWS, W_COLS), lambda i: (0, 0)),
        ],
        out_specs=pl.BlockSpec((nb, T, OUT_W), lambda i: (i, 0, 0)),
        out_shape=jax.ShapeDtypeStruct((B, T, OUT_W), jnp.float32),
        compiler_params=pltpu.CompilerParams(
            dimension_semantics=("parallel",)),    # v7x: batch elems on both TCs
    )(x, enc, bias_slab, w_slab)

    y = out_slab[:, :, 0:D]
    attn1 = out_slab[:, :, D:D + T]
    attn2 = out_slab[:, :, D + T:D + T + S]
    return y, attn1, attn2


# ---------------------------------------------------------------------------
# parameter init (logical, PyTorch-layout) + packing into the kernel slab
# ---------------------------------------------------------------------------
def init_params(key):
    D, F = D_MODEL, D_FF
    shapes = [
        (1, D), (1, D),                                                   # pre_norm g,b
        (D, D), (D, D), (D, D), (1, D), (1, D), (1, D), (D, D), (1, D),   # mha1 q/k/v/out
        (1, D), (1, D),                                                   # layernorm1
        (D, D), (D, D), (D, D), (1, D), (1, D), (1, D), (D, D), (1, D),   # mha2 q/k/v/out
        (1, D), (1, D),                                                   # layernorm2
        (D, F), (1, F), (F, D), (1, D),                                   # ffn lin1, lin2
        (1, D), (1, D),                                                   # layernorm3
    ]
    params = []
    for shp in shapes:
        key, sub = jax.random.split(key)
        params.append(jax.random.normal(sub, shp, jnp.float32) * 0.05)
    # LayerNorm affine params: gamma = 1, beta = 0 (PyTorch default init)
    for g_idx, b_idx in ((0, 1), (10, 11), (20, 21), (26, 27)):
        params[g_idx] = jnp.ones(params[g_idx].shape, jnp.float32)
        params[b_idx] = jnp.zeros(params[b_idx].shape, jnp.float32)
    return params


def pack_params(params):
    """Pack the 28 logical params into ONE (272, 96) f32 weight/bias slab.

    The 1/sqrt(head_dim) attention scale is folded into the Q weight/bias
    columns here, so the kernel never multiplies scores by the scale.
    """
    (ln_pre_g, ln_pre_b, wq1, wk1, wv1, bq1, bk1, bv1, wo1, bo1, ln1_g, ln1_b,
     wq2, wk2, wv2, bq2, bk2, bv2, wo2, bo2, ln2_g, ln2_b,
     wff1, bff1, wff2, bff2, ln3_g, ln3_b) = params
    scale = 1.0 / math.sqrt(HEAD_DIM)

    slab = jnp.zeros((W_ROWS, W_COLS), jnp.float32)

    def put(s, r, c, a):
        a = jnp.asarray(a, jnp.float32)
        return s.at[r:r + a.shape[0], c:c + a.shape[1]].set(a)

    slab = put(slab, _R_QKV1, 0, jnp.concatenate([wq1 * scale, wk1, wv1], axis=1))
    slab = put(slab, _R_KV2, 0, jnp.concatenate([wk2, wv2], axis=1))
    slab = put(slab, _R_FF1, 0, wff1)
    slab = put(slab, _R_FF2, 0, wff2)
    slab = put(slab, _R_O1, 0, wo1)
    slab = put(slab, _R_Q2, 0, wq2 * scale)
    slab = put(slab, _R_O2, 0, wo2)

    vec_rows = [
        (_ROW_LN_PRE_G, ln_pre_g), (_ROW_LN_PRE_B, ln_pre_b),
        (_ROW_B_QKV1, jnp.concatenate([bq1 * scale, bk1, bv1], axis=1)),
        (_ROW_B_O1, bo1), (_ROW_LN1_G, ln1_g), (_ROW_LN1_B, ln1_b),
        (_ROW_B_Q2, bq2 * scale),
        (_ROW_B_KV2, jnp.concatenate([bk2, bv2], axis=1)),
        (_ROW_B_O2, bo2), (_ROW_LN2_G, ln2_g), (_ROW_LN2_B, ln2_b),
        (_ROW_B_FF1, bff1), (_ROW_B_FF2, bff2),
        (_ROW_LN3_G, ln3_g), (_ROW_LN3_B, ln3_b),
    ]
    for row, v in vec_rows:
        slab = put(slab, _R_VEC + row, 0, v.reshape(1, -1))
    return slab


# ---------------------------------------------------------------------------
# pure-JAX reference (for a sanity cross-check)
# ---------------------------------------------------------------------------
def _build_biases(pad_mask_enc, pad_mask_dec, slf_attn_mask, B, T, S):
    bias_self = jnp.where(slf_attn_mask[None, :, :] | pad_mask_dec[:, None, :],
                          NEG_INF, 0.0).astype(jnp.float32)                 # (B,T,T)
    bias_cross = jnp.broadcast_to(
        jnp.where(pad_mask_enc[:, None, :], NEG_INF, 0.0), (B, T, S)
    ).astype(jnp.float32)                                                    # (B,T,S)
    return bias_self, bias_cross


def reference(x, enc, bias_self, bias_cross, params):
    (ln_pre_g, ln_pre_b, wq1, wk1, wv1, bq1, bk1, bv1, wo1, bo1, ln1_g, ln1_b,
     wq2, wk2, wv2, bq2, bk2, bv2, wo2, bo2, ln2_g, ln2_b,
     wff1, bff1, wff2, bff2, ln3_g, ln3_b) = params

    def ln(v, g, b):
        mu = v.mean(-1, keepdims=True)
        var = ((v - mu) ** 2).mean(-1, keepdims=True)
        return (v - mu) / jnp.sqrt(var + LN_EPS) * g + b

    def mha(qi, kvi, wq, wk, wv, bq, bk, bv, wo, bo, bias):
        B, T, D = qi.shape
        S = kvi.shape[1]
        q = (qi @ wq + bq).reshape(B, T, N_HEADS, HEAD_DIM).transpose(0, 2, 1, 3)
        k = (kvi @ wk + bk).reshape(B, S, N_HEADS, HEAD_DIM).transpose(0, 2, 1, 3)
        v = (kvi @ wv + bv).reshape(B, S, N_HEADS, HEAD_DIM).transpose(0, 2, 1, 3)
        s = jnp.einsum('bhtd,bhsd->bhts', q, k) / math.sqrt(HEAD_DIM) + bias[:, None]
        p = jax.nn.softmax(s, axis=-1)
        o = jnp.einsum('bhts,bhsd->bhtd', p, v).transpose(0, 2, 1, 3).reshape(B, T, D)
        return o @ wo + bo, p.mean(1)

    x = ln(x, ln_pre_g, ln_pre_b)
    o1, a1 = mha(x, x, wq1, wk1, wv1, bq1, bk1, bv1, wo1, bo1, bias_self)
    x = ln(x + o1, ln1_g, ln1_b)
    o2, a2 = mha(x, enc, wq2, wk2, wv2, bq2, bk2, bv2, wo2, bo2, bias_cross)
    x = ln(x + o2, ln2_g, ln2_b)
    h = jax.nn.gelu(x @ wff1 + bff1, approximate=False)
    x = ln(x + (h @ wff2 + bff2), ln3_g, ln3_b)
    return x, a1, a2


if __name__ == "__main__":
    B, T, S = 2, 8, 12
    key = jax.random.PRNGKey(0)
    kx, ke, kp = jax.random.split(key, 3)
    x = jax.random.normal(kx, (B, T, D_MODEL), jnp.float32)
    enc = jax.random.normal(ke, (B, S, D_MODEL), jnp.float32)
    params = init_params(kp)
    w_slab = pack_params(params)

    # masks: True == position is masked out (PyTorch bool-mask convention)
    slf_attn_mask = jnp.triu(jnp.ones((T, T), bool), k=1)                 # causal
    dec_lens = jnp.array([[T], [T - 2]])
    enc_lens = jnp.array([[S], [S - 3]])
    pad_mask_dec = jnp.arange(T)[None, :] >= dec_lens                     # (B, T)
    pad_mask_enc = jnp.arange(S)[None, :] >= enc_lens                     # (B, S)

    y, a1, a2 = decoder_layer(x, enc, pad_mask_enc, pad_mask_dec,
                              slf_attn_mask, w_slab)
    jax.block_until_ready((y, a1, a2))

    # sanity cross-check against pure-JAX reference
    bias_self, bias_cross = _build_biases(pad_mask_enc, pad_mask_dec,
                                          slf_attn_mask, B, T, S)
    y_ref, a1_ref, a2_ref = reference(x, enc, bias_self, bias_cross, params)
    assert jnp.allclose(y, y_ref, atol=2e-3, rtol=2e-3)
    assert jnp.allclose(a1, a1_ref, atol=2e-3, rtol=2e-3)
    assert jnp.allclose(a2, a2_ref, atol=2e-3, rtol=2e-3)

    print("KERNEL_OK")
</pallas_src>

<mosaic_0001>
module attributes {stable_mosaic.version = 11 : i64} {
  func.func @kernel(%arg0: i32, %arg1: memref<2x8x32xf32, #tpu.memory_space<vmem>>, %arg2: memref<2x12x32xf32, #tpu.memory_space<vmem>>, %arg3: memref<2x16x12xf32, #tpu.memory_space<vmem>>, %arg4: memref<272x96xf32, #tpu.memory_space<vmem>>, %arg5: memref<2x8x128xf32, #tpu.memory_space<vmem>>) attributes {dimension_semantics = [#tpu.dimension_semantics<parallel>], iteration_bounds = array<i64: 1>, scalar_prefetch = 0 : i64, scratch_operands = 0 : i64, tpu.core_type = #tpu.core_type<tc>, window_params = [{transform_indices = @transform_0, window_bounds = array<i64: 2, 8, 32>}, {transform_indices = @transform_1, window_bounds = array<i64: 2, 12, 32>}, {transform_indices = @transform_2, window_bounds = array<i64: 2, 16, 12>}, {pipeline_mode = #tpu.pipeline_mode<synchronous>, transform_indices = @transform_3, window_bounds = array<i64: 272, 96>}, {transform_indices = @transform_4, window_bounds = array<i64: 2, 8, 128>}]} {
    %c0 = arith.constant 0 : index
    %c0_0 = arith.constant 0 : index
    %0 = vector.load %arg4[%c0, %c0_0] : memref<272x96xf32, #tpu.memory_space<vmem>>, vector<32x96xf32>
    %c32 = arith.constant 32 : index
    %c0_1 = arith.constant 0 : index
    %1 = vector.load %arg4[%c32, %c0_1] : memref<272x96xf32, #tpu.memory_space<vmem>>, vector<32x64xf32>
    %c64 = arith.constant 64 : index
    %c0_2 = arith.constant 0 : index
    %2 = vector.load %arg4[%c64, %c0_2] : memref<272x96xf32, #tpu.memory_space<vmem>>, vector<32x64xf32>
    %c96 = arith.constant 96 : index
    %c0_3 = arith.constant 0 : index
    %3 = vector.load %arg4[%c96, %c0_3] : memref<272x96xf32, #tpu.memory_space<vmem>>, vector<64x32xf32>
    %c160 = arith.constant 160 : index
    %c0_4 = arith.constant 0 : index
    %4 = vector.load %arg4[%c160, %c0_4] : memref<272x96xf32, #tpu.memory_space<vmem>>, vector<32x32xf32>
    %c192 = arith.constant 192 : index
    %c0_5 = arith.constant 0 : index
    %5 = vector.load %arg4[%c192, %c0_5] : memref<272x96xf32, #tpu.memory_space<vmem>>, vector<32x32xf32>
    %c224 = arith.constant 224 : index
    %c0_6 = arith.constant 0 : index
    %6 = vector.load %arg4[%c224, %c0_6] : memref<272x96xf32, #tpu.memory_space<vmem>>, vector<32x32xf32>
    %c0_7 = arith.constant 0 : index
    %c0_8 = arith.constant 0 : index
    %c0_9 = arith.constant 0 : index
    %7 = vector.load %arg1[%c0_7, %c0_8, %c0_9] : memref<2x8x32xf32, #tpu.memory_space<vmem>>, vector<1x8x32xf32>
    %8 = vector.shape_cast %7 : vector<1x8x32xf32> to vector<8x32xf32>
    %c0_10 = arith.constant 0 : index
    %c0_11 = arith.constant 0 : index
    %c0_12 = arith.constant 0 : index
    %9 = vector.load %arg2[%c0_10, %c0_11, %c0_12] : memref<2x12x32xf32, #tpu.memory_space<vmem>>, vector<1x12x32xf32>
    %10 = vector.shape_cast %9 : vector<1x12x32xf32> to vector<12x32xf32>
    %c0_13 = arith.constant 0 : index
    %c0_14 = arith.constant 0 : index
    %c0_15 = arith.constant 0 : index
    %11 = vector.load %arg3[%c0_13, %c0_14, %c0_15] : memref<2x16x12xf32, #tpu.memory_space<vmem>>, vector<1x16x12xf32>
    %12 = vector.shape_cast %11 : vector<1x16x12xf32> to vector<16x12xf32>
    %13 = vector.extract_strided_slice %12 {offsets = [0, 0], sizes = [8, 8], strides = [1, 1]} : vector<16x12xf32> to vector<8x8xf32>
    %14 = vector.extract_strided_slice %12 {offsets = [8, 0], sizes = [8, 12], strides = [1, 1]} : vector<16x12xf32> to vector<8x12xf32>
    %c256 = arith.constant 256 : index
    %c0_16 = arith.constant 0 : index
    %15 = vector.load %arg4[%c256, %c0_16] : memref<272x96xf32, #tpu.memory_space<vmem>>, vector<1x32xf32>
    %c257 = arith.constant 257 : index
    %c0_17 = arith.constant 0 : index
    %16 = vector.load %arg4[%c257, %c0_17] : memref<272x96xf32, #tpu.memory_space<vmem>>, vector<1x32xf32>
    %cst = arith.constant dense<0.000000e+00> : vector<8xf32>
    %17 = vector.multi_reduction <add>, %8, %cst [1] : vector<8x32xf32> to vector<8xf32>
    %18 = vector.shape_cast %17 : vector<8xf32> to vector<8x1xf32>
    %cst_18 = arith.constant 3.200000e+01 : f32
    %19 = vector.broadcast %cst_18 : f32 to vector<8x1xf32>
    %20 = arith.divf %18, %19 : vector<8x1xf32>
    %21 = vector.broadcast %20 : vector<8x1xf32> to vector<8x32xf32>
    %22 = arith.subf %8, %21 : vector<8x32xf32>
    %23 = arith.mulf %22, %22 : vector<8x32xf32>
    %cst_19 = arith.constant dense<0.000000e+00> : vector<8xf32>
    %24 = vector.multi_reduction <add>, %23, %cst_19 [1] : vector<8x32xf32> to vector<8xf32>
    %25 = vector.shape_cast %24 : vector<8xf32> to vector<8x1xf32>
    %cst_20 = arith.constant 3.200000e+01 : f32
    %26 = vector.broadcast %cst_20 : f32 to vector<8x1xf32>
    %27 = arith.divf %25, %26 : vector<8x1xf32>
    %28 = vector.broadcast %20 : vector<8x1xf32> to vector<8x32xf32>
    %29 = arith.subf %8, %28 : vector<8x32xf32>
    %cst_21 = arith.constant 9.99999974E-6 : f32
    %30 = vector.broadcast %cst_21 : f32 to vector<8x1xf32>
    %31 = arith.addf %27, %30 : vector<8x1xf32>
    %32 = math.rsqrt %31 : vector<8x1xf32>
    %33 = vector.broadcast %32 : vector<8x1xf32> to vector<8x32xf32>
    %34 = arith.mulf %29, %33 : vector<8x32xf32>
    %35 = vector.broadcast %15 : vector<1x32xf32> to vector<8x32xf32>
    %36 = arith.mulf %34, %35 : vector<8x32xf32>
    %37 = vector.broadcast %16 : vector<1x32xf32> to vector<8x32xf32>
    %38 = arith.addf %36, %37 : vector<8x32xf32>
    %cst_22 = arith.constant dense<0.000000e+00> : vector<8x96xf32>
    %39 = tpu.matmul %38, %0, %cst_22 {dimension_numbers = #tpu.dot_dimension_numbers<[1], [0], [0], [1], [0, 0, 1, 1], [], []>} : vector<8x32xf32>, vector<32x96xf32>, vector<8x96xf32> -> vector<8x96xf32>
    %c258 = arith.constant 258 : index
    %c0_23 = arith.constant 0 : index
    %40 = vector.load %arg4[%c258, %c0_23] : memref<272x96xf32, #tpu.memory_space<vmem>>, vector<1x96xf32>
    %41 = vector.broadcast %40 : vector<1x96xf32> to vector<8x96xf32>
    %42 = arith.addf %39, %41 : vector<8x96xf32>
    %43 = vector.extract_strided_slice %42 {offsets = [0, 0], sizes = [8, 32], strides = [1, 1]} : vector<8x96xf32> to vector<8x32xf32>
    %44 = vector.extract_strided_slice %42 {offsets = [0, 32], sizes = [8, 32], strides = [1, 1]} : vector<8x96xf32> to vector<8x32xf32>
    %45 = vector.extract_strided_slice %42 {offsets = [0, 64], sizes = [8, 32], strides = [1, 1]} : vector<8x96xf32> to vector<8x32xf32>
    %46 = tpu.transpose %44, [1, 0] : vector<8x32xf32> -> vector<32x8xf32>
    %cst_24 = arith.constant 0.000000e+00 : f32
    %47 = vector.broadcast %cst_24 : f32 to vector<8x32xf32>
    %cst_25 = arith.constant 0.000000e+00 : f32
    %48 = vector.broadcast %cst_25 : f32 to vector<8x8xf32>
    %49 = vector.extract_strided_slice %43 {offsets = [0, 0], sizes = [8, 8], strides = [1, 1]} : vector<8x32xf32> to vector<8x8xf32>
    %50 = vector.extract_strided_slice %46 {offsets = [0, 0], sizes = [8, 8], strides = [1, 1]} : vector<32x8xf32> to vector<8x8xf32>
    %cst_26 = arith.constant dense<0.000000e+00> : vector<8x8xf32>
    %51 = tpu.matmul %49, %50, %cst_26 {dimension_numbers = #tpu.dot_dimension_numbers<[1], [0], [0], [1], [0, 0, 1, 1], [], []>} : vector<8x8xf32>, vector<8x8xf32>, vector<8x8xf32> -> vector<8x8xf32>
    %52 = arith.addf %51, %13 : vector<8x8xf32>
    %cst_27 = arith.constant dense<0xFF800000> : vector<8xf32>
    %53 = vector.multi_reduction <maximumf>, %52, %cst_27 [1] : vector<8x8xf32> to vector<8xf32>
    %54 = vector.shape_cast %53 : vector<8xf32> to vector<8x1xf32>
    %55 = vector.broadcast %54 : vector<8x1xf32> to vector<8x8xf32>
    %56 = arith.subf %52, %55 : vector<8x8xf32>
    %57 = math.exp %56 : vector<8x8xf32>
    %cst_28 = arith.constant dense<0.000000e+00> : vector<8xf32>
    %58 = vector.multi_reduction <add>, %57, %cst_28 [1] : vector<8x8xf32> to vector<8xf32>
    %59 = vector.shape_cast %58 : vector<8xf32> to vector<8x1xf32>
    %60 = tpu.reciprocal %59 {approx = true} : vector<8x1xf32> -> vector<8x1xf32>
    %61 = vector.broadcast %60 : vector<8x1xf32> to vector<8x8xf32>
    %62 = arith.mulf %57, %61 : vector<8x8xf32>
    %63 = arith.addf %48, %62 : vector<8x8xf32>
    %64 = vector.extract_strided_slice %45 {offsets = [0, 0], sizes = [8, 8], strides = [1, 1]} : vector<8x32xf32> to vector<8x8xf32>
    %cst_29 = arith.constant dense<0.000000e+00> : vector<8x8xf32>
    %65 = tpu.matmul %62, %64, %cst_29 {dimension_numbers = #tpu.dot_dimension_numbers<[1], [0], [0], [1], [0, 0, 1, 1], [], []>} : vector<8x8xf32>, vector<8x8xf32>, vector<8x8xf32> -> vector<8x8xf32>
    %66 = vector.extract_strided_slice %4 {offsets = [0, 0], sizes = [8, 32], strides = [1, 1]} : vector<32x32xf32> to vector<8x32xf32>
    %cst_30 = arith.constant dense<0.000000e+00> : vector<8x32xf32>
    %67 = tpu.matmul %65, %66, %cst_30 {dimension_numbers = #tpu.dot_dimension_numbers<[1], [0], [0], [1], [0, 0, 1, 1], [], []>} : vector<8x8xf32>, vector<8x32xf32>, vector<8x32xf32> -> vector<8x32xf32>
    %68 = arith.addf %47, %67 : vector<8x32xf32>
    %69 = vector.extract_strided_slice %43 {offsets = [0, 8], sizes = [8, 8], strides = [1, 1]} : vector<8x32xf32> to vector<8x8xf32>
    %70 = vector.extract_strided_slice %46 {offsets = [8, 0], sizes = [8, 8], strides = [1, 1]} : vector<32x8xf32> to vector<8x8xf32>
    %cst_31 = arith.constant dense<0.000000e+00> : vector<8x8xf32>
    %71 = tpu.matmul %69, %70, %cst_31 {dimension_numbers = #tpu.dot_dimension_numbers<[1], [0], [0], [1], [0, 0, 1, 1], [], []>} : vector<8x8xf32>, vector<8x8xf32>, vector<8x8xf32> -> vector<8x8xf32>
    %72 = arith.addf %71, %13 : vector<8x8xf32>
    %cst_32 = arith.constant dense<0xFF800000> : vector<8xf32>
    %73 = vector.multi_reduction <maximumf>, %72, %cst_32 [1] : vector<8x8xf32> to vector<8xf32>
    %74 = vector.shape_cast %73 : vector<8xf32> to vector<8x1xf32>
    %75 = vector.broadcast %74 : vector<8x1xf32> to vector<8x8xf32>
    %76 = arith.subf %72, %75 : vector<8x8xf32>
    %77 = math.exp %76 : vector<8x8xf32>
    %cst_33 = arith.constant dense<0.000000e+00> : vector<8xf32>
    %78 = vector.multi_reduction <add>, %77, %cst_33 [1] : vector<8x8xf32> to vector<8xf32>
    %79 = vector.shape_cast %78 : vector<8xf32> to vector<8x1xf32>
    %80 = tpu.reciprocal %79 {approx = true} : vector<8x1xf32> -> vector<8x1xf32>
    %81 = vector.broadcast %80 : vector<8x1xf32> to vector<8x8xf32>
    %82 = arith.mulf %77, %81 : vector<8x8xf32>
    %83 = arith.addf %63, %82 : vector<8x8xf32>
    %84 = vector.extract_strided_slice %45 {offsets = [0, 8], sizes = [8, 8], strides = [1, 1]} : vector<8x32xf32> to vector<8x8xf32>
    %cst_34 = arith.constant dense<0.000000e+00> : vector<8x8xf32>
    %85 = tpu.matmul %82, %84, %cst_34 {dimension_numbers = #tpu.dot_dimension_numbers<[1], [0], [0], [1], [0, 0, 1, 1], [], []>} : vector<8x8xf32>, vector<8x8xf32>, vector<8x8xf32> -> vector<8x8xf32>
    %86 = vector.extract_strided_slice %4 {offsets = [8, 0], sizes = [8, 32], strides = [1, 1]} : vector<32x32xf32> to vector<8x32xf32>
    %cst_35 = arith.constant dense<0.000000e+00> : vector<8x32xf32>
    %87 = tpu.matmul %85, %86, %cst_35 {dimension_numbers = #tpu.dot_dimension_numbers<[1], [0], [0], [1], [0, 0, 1, 1], [], []>} : vector<8x8xf32>, vector<8x32xf32>, vector<8x32xf32> -> vector<8x32xf32>
    %88 = arith.addf %68, %87 : vector<8x32xf32>
    %89 = vector.extract_strided_slice %43 {offsets = [0, 16], sizes = [8, 8], strides = [1, 1]} : vector<8x32xf32> to vector<8x8xf32>
    %90 = vector.extract_strided_slice %46 {offsets = [16, 0], sizes = [8, 8], strides = [1, 1]} : vector<32x8xf32> to vector<8x8xf32>
    %cst_36 = arith.constant dense<0.000000e+00> : vector<8x8xf32>
    %91 = tpu.matmul %89, %90, %cst_36 {dimension_numbers = #tpu.dot_dimension_numbers<[1], [0], [0], [1], [0, 0, 1, 1], [], []>} : vector<8x8xf32>, vector<8x8xf32>, vector<8x8xf32> -> vector<8x8xf32>
    %92 = arith.addf %91, %13 : vector<8x8xf32>
    %cst_37 = arith.constant dense<0xFF800000> : vector<8xf32>
    %93 = vector.multi_reduction <maximumf>, %92, %cst_37 [1] : vector<8x8xf32> to vector<8xf32>
    %94 = vector.shape_cast %93 : vector<8xf32> to vector<8x1xf32>
    %95 = vector.broadcast %94 : vector<8x1xf32> to vector<8x8xf32>
    %96 = arith.subf %92, %95 : vector<8x8xf32>
    %97 = math.exp %96 : vector<8x8xf32>
    %cst_38 = arith.constant dense<0.000000e+00> : vector<8xf32>
    %98 = vector.multi_reduction <add>, %97, %cst_38 [1] : vector<8x8xf32> to vector<8xf32>
    %99 = vector.shape_cast %98 : vector<8xf32> to vector<8x1xf32>
    %100 = tpu.reciprocal %99 {approx = true} : vector<8x1xf32> -> vector<8x1xf32>
    %101 = vector.broadcast %100 : vector<8x1xf32> to vector<8x8xf32>
    %102 = arith.mulf %97, %101 : vector<8x8xf32>
    %103 = arith.addf %83, %102 : vector<8x8xf32>
    %104 = vector.extract_strided_slice %45 {offsets = [0, 16], sizes = [8, 8], strides = [1, 1]} : vector<8x32xf32> to vector<8x8xf32>
    %cst_39 = arith.constant dense<0.000000e+00> : vector<8x8xf32>
    %105 = tpu.matmul %102, %104, %cst_39 {dimension_numbers = #tpu.dot_dimension_numbers<[1], [0], [0], [1], [0, 0, 1, 1], [], []>} : vector<8x8xf32>, vector<8x8xf32>, vector<8x8xf32> -> vector<8x8xf32>
    %106 = vector.extract_strided_slice %4 {offsets = [16, 0], sizes = [8, 32], strides = [1, 1]} : vector<32x32xf32> to vector<8x32xf32>
    %cst_40 = arith.constant dense<0.000000e+00> : vector<8x32xf32>
    %107 = tpu.matmul %105, %106, %cst_40 {dimension_numbers = #tpu.dot_dimension_numbers<[1], [0], [0], [1], [0, 0, 1, 1], [], []>} : vector<8x8xf32>, vector<8x32xf32>, vector<8x32xf32> -> vector<8x32xf32>
    %108 = arith.addf %88, %107 : vector<8x32xf32>
    %109 = vector.extract_strided_slice %43 {offsets = [0, 24], sizes = [8, 8], strides = [1, 1]} : vector<8x32xf32> to vector<8x8xf32>
    %110 = vector.extract_strided_slice %46 {offsets = [24, 0], sizes = [8, 8], strides = [1, 1]} : vector<32x8xf32> to vector<8x8xf32>
    %cst_41 = arith.constant dense<0.000000e+00> : vector<8x8xf32>
    %111 = tpu.matmul %109, %110, %cst_41 {dimension_numbers = #tpu.dot_dimension_numbers<[1], [0], [0], [1], [0, 0, 1, 1], [], []>} : vector<8x8xf32>, vector<8x8xf32>, vector<8x8xf32> -> vector<8x8xf32>
    %112 = arith.addf %111, %13 : vector<8x8xf32>
    %cst_42 = arith.constant dense<0xFF800000> : vector<8xf32>
    %113 = vector.multi_reduction <maximumf>, %112, %cst_42 [1] : vector<8x8xf32> to vector<8xf32>
    %114 = vector.shape_cast %113 : vector<8xf32> to vector<8x1xf32>
    %115 = vector.broadcast %114 : vector<8x1xf32> to vector<8x8xf32>
    %116 = arith.subf %112, %115 : vector<8x8xf32>
    %117 = math.exp %116 : vector<8x8xf32>
    %cst_43 = arith.constant dense<0.000000e+00> : vector<8xf32>
    %118 = vector.multi_reduction <add>, %117, %cst_43 [1] : vector<8x8xf32> to vector<8xf32>
    %119 = vector.shape_cast %118 : vector<8xf32> to vector<8x1xf32>
    %120 = tpu.reciprocal %119 {approx = true} : vector<8x1xf32> -> vector<8x1xf32>
    %121 = vector.broadcast %120 : vector<8x1xf32> to vector<8x8xf32>
    %122 = arith.mulf %117, %121 : vector<8x8xf32>
    %123 = arith.addf %103, %122 : vector<8x8xf32>
    %124 = vector.extract_strided_slice %45 {offsets = [0, 24], sizes = [8, 8], strides = [1, 1]} : vector<8x32xf32> to vector<8x8xf32>
    %cst_44 = arith.constant dense<0.000000e+00> : vector<8x8xf32>
    %125 = tpu.matmul %122, %124, %cst_44 {dimension_numbers = #tpu.dot_dimension_numbers<[1], [0], [0], [1], [0, 0, 1, 1], [], []>} : vector<8x8xf32>, vector<8x8xf32>, vector<8x8xf32> -> vector<8x8xf32>
    %126 = vector.extract_strided_slice %4 {offsets = [24, 0], sizes = [8, 32], strides = [1, 1]} : vector<32x32xf32> to vector<8x32xf32>
    %cst_45 = arith.constant dense<0.000000e+00> : vector<8x32xf32>
    %127 = tpu.matmul %125, %126, %cst_45 {dimension_numbers = #tpu.dot_dimension_numbers<[1], [0], [0], [1], [0, 0, 1, 1], [], []>} : vector<8x8xf32>, vector<8x32xf32>, vector<8x32xf32> -> vector<8x32xf32>
    %128 = arith.addf %108, %127 : vector<8x32xf32>
    %cst_46 = arith.constant 2.500000e-01 : f32
    %129 = vector.broadcast %cst_46 : f32 to vector<8x8xf32>
    %130 = arith.mulf %123, %129 : vector<8x8xf32>
    %c259 = arith.constant 259 : index
    %c0_47 = arith.constant 0 : index
    %131 = vector.load %arg4[%c259, %c0_47] : memref<272x96xf32, #tpu.memory_space<vmem>>, vector<1x32xf32>
    %132 = vector.broadcast %131 : vector<1x32xf32> to vector<8x32xf32>
    %133 = arith.addf %128, %132 : vector<8x32xf32>
    %134 = arith.addf %38, %133 : vector<8x32xf32>
    %c260 = arith.constant 260 : index
    %c0_48 = arith.constant 0 : index
    %135 = vector.load %arg4[%c260, %c0_48] : memref<272x96xf32, #tpu.memory_space<vmem>>, vector<1x32xf32>
    %c261 = arith.constant 261 : index
    %c0_49 = arith.constant 0 : index
    %136 = vector.load %arg4[%c261, %c0_49] : memref<272x96xf32, #tpu.memory_space<vmem>>, vector<1x32xf32>
    %cst_50 = arith.constant dense<0.000000e+00> : vector<8xf32>
    %137 = vector.multi_reduction <add>, %134, %cst_50 [1] : vector<8x32xf32> to vector<8xf32>
    %138 = vector.shape_cast %137 : vector<8xf32> to vector<8x1xf32>
    %cst_51 = arith.constant 3.200000e+01 : f32
    %139 = vector.broadcast %cst_51 : f32 to vector<8x1xf32>
    %140 = arith.divf %138, %139 : vector<8x1xf32>
    %141 = vector.broadcast %140 : vector<8x1xf32> to vector<8x32xf32>
    %142 = arith.subf %134, %141 : vector<8x32xf32>
    %143 = arith.mulf %142, %142 : vector<8x32xf32>
    %cst_52 = arith.constant dense<0.000000e+00> : vector<8xf32>
    %144 = vector.multi_reduction <add>, %143, %cst_52 [1] : vector<8x32xf32> to vector<8xf32>
    %145 = vector.shape_cast %144 : vector<8xf32> to vector<8x1xf32>
    %cst_53 = arith.constant 3.200000e+01 : f32
    %146 = vector.broadcast %cst_53 : f32 to vector<8x1xf32>
    %147 = arith.divf %145, %146 : vector<8x1xf32>
    %148 = vector.broadcast %140 : vector<8x1xf32> to vector<8x32xf32>
    %149 = arith.subf %134, %148 : vector<8x32xf32>
    %cst_54 = arith.constant 9.99999974E-6 : f32
    %150 = vector.broadcast %cst_54 : f32 to vector<8x1xf32>
    %151 = arith.addf %147, %150 : vector<8x1xf32>
    %152 = math.rsqrt %151 : vector<8x1xf32>
    %153 = vector.broadcast %152 : vector<8x1xf32> to vector<8x32xf32>
    %154 = arith.mulf %149, %153 : vector<8x32xf32>
    %155 = vector.broadcast %135 : vector<1x32xf32> to vector<8x32xf32>
    %156 = arith.mulf %154, %155 : vector<8x32xf32>
    %157 = vector.broadcast %136 : vector<1x32xf32> to vector<8x32xf32>
    %158 = arith.addf %156, %157 : vector<8x32xf32>
    %cst_55 = arith.constant dense<0.000000e+00> : vector<8x32xf32>
    %159 = tpu.matmul %158, %5, %cst_55 {dimension_numbers = #tpu.dot_dimension_numbers<[1], [0], [0], [1], [0, 0, 1, 1], [], []>} : vector<8x32xf32>, vector<32x32xf32>, vector<8x32xf32> -> vector<8x32xf32>
    %c262 = arith.constant 262 : index
    %c0_56 = arith.constant 0 : index
    %160 = vector.load %arg4[%c262, %c0_56] : memref<272x96xf32, #tpu.memory_space<vmem>>, vector<1x32xf32>
    %161 = vector.broadcast %160 : vector<1x32xf32> to vector<8x32xf32>
    %162 = arith.addf %159, %161 : vector<8x32xf32>
    %cst_57 = arith.constant dense<0.000000e+00> : vector<12x64xf32>
    %163 = tpu.matmul %10, %1, %cst_57 {dimension_numbers = #tpu.dot_dimension_numbers<[1], [0], [0], [1], [0, 0, 1, 1], [], []>} : vector<12x32xf32>, vector<32x64xf32>, vector<12x64xf32> -> vector<12x64xf32>
    %c263 = arith.constant 263 : index
    %c0_58 = arith.constant 0 : index
    %164 = vector.load %arg4[%c263, %c0_58] : memref<272x96xf32, #tpu.memory_space<vmem>>, vector<1x64xf32>
    %165 = vector.broadcast %164 : vector<1x64xf32> to vector<12x64xf32>
    %166 = arith.addf %163, %165 : vector<12x64xf32>
    %167 = vector.extract_strided_slice %166 {offsets = [0, 0], sizes = [12, 32], strides = [1, 1]} : vector<12x64xf32> to vector<12x32xf32>
    %168 = vector.extract_strided_slice %166 {offsets = [0, 32], sizes = [12, 32], strides = [1, 1]} : vector<12x64xf32> to vector<12x32xf32>
    %169 = tpu.transpose %167, [1, 0] : vector<12x32xf32> -> vector<32x12xf32>
    %cst_59 = arith.constant 0.000000e+00 : f32
    %170 = vector.broadcast %cst_59 : f32 to vector<8x32xf32>
    %cst_60 = arith.constant 0.000000e+00 : f32
    %171 = vector.broadcast %cst_60 : f32 to vector<8x12xf32>
    %172 = vector.extract_strided_slice %162 {offsets = [0, 0], sizes = [8, 8], strides = [1, 1]} : vector<8x32xf32> to vector<8x8xf32>
    %173 = vector.extract_strided_slice %169 {offsets = [0, 0], sizes = [8, 12], strides = [1, 1]} : vector<32x12xf32> to vector<8x12xf32>
    %cst_61 = arith.constant dense<0.000000e+00> : vector<8x12xf32>
    %174 = tpu.matmul %172, %173, %cst_61 {dimension_numbers = #tpu.dot_dimension_numbers<[1], [0], [0], [1], [0, 0, 1, 1], [], []>} : vector<8x8xf32>, vector<8x12xf32>, vector<8x12xf32> -> vector<8x12xf32>
    %175 = arith.addf %174, %14 : vector<8x12xf32>
    %cst_62 = arith.constant dense<0xFF800000> : vector<8xf32>
    %176 = vector.multi_reduction <maximumf>, %175, %cst_62 [1] : vector<8x12xf32> to vector<8xf32>
    %177 = vector.shape_cast %176 : vector<8xf32> to vector<8x1xf32>
    %178 = vector.broadcast %177 : vector<8x1xf32> to vector<8x12xf32>
    %179 = arith.subf %175, %178 : vector<8x12xf32>
    %180 = math.exp %179 : vector<8x12xf32>
    %cst_63 = arith.constant dense<0.000000e+00> : vector<8xf32>
    %181 = vector.multi_reduction <add>, %180, %cst_63 [1] : vector<8x12xf32> to vector<8xf32>
    %182 = vector.shape_cast %181 : vector<8xf32> to vector<8x1xf32>
    %183 = tpu.reciprocal %182 {approx = true} : vector<8x1xf32> -> vector<8x1xf32>
    %184 = vector.broadcast %183 : vector<8x1xf32> to vector<8x12xf32>
    %185 = arith.mulf %180, %184 : vector<8x12xf32>
    %186 = arith.addf %171, %185 : vector<8x12xf32>
    %187 = vector.extract_strided_slice %168 {offsets = [0, 0], sizes = [12, 8], strides = [1, 1]} : vector<12x32xf32> to vector<12x8xf32>
    %cst_64 = arith.constant dense<0.000000e+00> : vector<8x8xf32>
    %188 = tpu.matmul %185, %187, %cst_64 {dimension_numbers = #tpu.dot_dimension_numbers<[1], [0], [0], [1], [0, 0, 1, 1], [], []>} : vector<8x12xf32>, vector<12x8xf32>, vector<8x8xf32> -> vector<8x8xf32>
    %189 = vector.extract_strided_slice %6 {offsets = [0, 0], sizes = [8, 32], strides = [1, 1]} : vector<32x32xf32> to vector<8x32xf32>
    %cst_65 = arith.constant dense<0.000000e+00> : vector<8x32xf32>
    %190 = tpu.matmul %188, %189, %cst_65 {dimension_numbers = #tpu.dot_dimension_numbers<[1], [0], [0], [1], [0, 0, 1, 1], [], []>} : vector<8x8xf32>, vector<8x32xf32>, vector<8x32xf32> -> vector<8x32xf32>
    %191 = arith.addf %170, %190 : vector<8x32xf32>
    %192 = vector.extract_strided_slice %162 {offsets = [0, 8], sizes = [8, 8], strides = [1, 1]} : vector<8x32xf32> to vector<8x8xf32>
    %193 = vector.extract_strided_slice %169 {offsets = [8, 0], sizes = [8, 12], strides = [1, 1]} : vector<32x12xf32> to vector<8x12xf32>
    %cst_66 = arith.constant dense<0.000000e+00> : vector<8x12xf32>
    %194 = tpu.matmul %192, %193, %cst_66 {dimension_numbers = #tpu.dot_dimension_numbers<[1], [0], [0], [1], [0, 0, 1, 1], [], []>} : vector<8x8xf32>, vector<8x12xf32>, vector<8x12xf32> -> vector<8x12xf32>
    %195 = arith.addf %194, %14 : vector<8x12xf32>
    %cst_67 = arith.constant dense<0xFF800000> : vector<8xf32>
    %196 = vector.multi_reduction <maximumf>, %195, %cst_67 [1] : vector<8x12xf32> to vector<8xf32>
    %197 = vector.shape_cast %196 : vector<8xf32> to vector<8x1xf32>
    %198 = vector.broadcast %197 : vector<8x1xf32> to vector<8x12xf32>
    %199 = arith.subf %195, %198 : vector<8x12xf32>
    %200 = math.exp %199 : vector<8x12xf32>
    %cst_68 = arith.constant dense<0.000000e+00> : vector<8xf32>
    %201 = vector.multi_reduction <add>, %200, %cst_68 [1] : vector<8x12xf32> to vector<8xf32>
    %202 = vector.shape_cast %201 : vector<8xf32> to vector<8x1xf32>
    %203 = tpu.reciprocal %202 {approx = true} : vector<8x1xf32> -> vector<8x1xf32>
    %204 = vector.broadcast %203 : vector<8x1xf32> to vector<8x12xf32>
    %205 = arith.mulf %200, %204 : vector<8x12xf32>
    %206 = arith.addf %186, %205 : vector<8x12xf32>
    %207 = vector.extract_strided_slice %168 {offsets = [0, 8], sizes = [12, 8], strides = [1, 1]} : vector<12x32xf32> to vector<12x8xf32>
    %cst_69 = arith.constant dense<0.000000e+00> : vector<8x8xf32>
    %208 = tpu.matmul %205, %207, %cst_69 {dimension_numbers = #tpu.dot_dimension_numbers<[1], [0], [0], [1], [0, 0, 1, 1], [], []>} : vector<8x12xf32>, vector<12x8xf32>, vector<8x8xf32> -> vector<8x8xf32>
    %209 = vector.extract_strided_slice %6 {offsets = [8, 0], sizes = [8, 32], strides = [1, 1]} : vector<32x32xf32> to vector<8x32xf32>
    %cst_70 = arith.constant dense<0.000000e+00> : vector<8x32xf32>
    %210 = tpu.matmul %208, %209, %cst_70 {dimension_numbers = #tpu.dot_dimension_numbers<[1], [0], [0], [1], [0, 0, 1, 1], [], []>} : vector<8x8xf32>, vector<8x32xf32>, vector<8x32xf32> -> vector<8x32xf32>
    %211 = arith.addf %191, %210 : vector<8x32xf32>
    %212 = vector.extract_strided_slice %162 {offsets = [0, 16], sizes = [8, 8], strides = [1, 1]} : vector<8x32xf32> to vector<8x8xf32>
    %213 = vector.extract_strided_slice %169 {offsets = [16, 0], sizes = [8, 12], strides = [1, 1]} : vector<32x12xf32> to vector<8x12xf32>
    %cst_71 = arith.constant dense<0.000000e+00> : vector<8x12xf32>
    %214 = tpu.matmul %212, %213, %cst_71 {dimension_numbers = #tpu.dot_dimension_numbers<[1], [0], [0], [1], [0, 0, 1, 1], [], []>} : vector<8x8xf32>, vector<8x12xf32>, vector<8x12xf32> -> vector<8x12xf32>
    %215 = arith.addf %214, %14 : vector<8x12xf32>
    %cst_72 = arith.constant dense<0xFF800000> : vector<8xf32>
    %216 = vector.multi_reduction <maximumf>, %215, %cst_72 [1] : vector<8x12xf32> to vector<8xf32>
    %217 = vector.shape_cast %216 : vector<8xf32> to vector<8x1xf32>
    %218 = vector.broadcast %217 : vector<8x1xf32> to vector<8x12xf32>
    %219 = arith.subf %215, %218 : vector<8x12xf32>
    %220 = math.exp %219 : vector<8x12xf32>
    %cst_73 = arith.constant dense<0.000000e+00> : vector<8xf32>
    %221 = vector.multi_reduction <add>, %220, %cst_73 [1] : vector<8x12xf32> to vector<8xf32>
    %222 = vector.shape_cast %221 : vector<8xf32> to vector<8x1xf32>
    %223 = tpu.reciprocal %222 {approx = true} : vector<8x1xf32> -> vector<8x1xf32>
    %224 = vector.broadcast %223 : vector<8x1xf32> to vector<8x12xf32>
    %225 = arith.mulf %220, %224 : vector<8x12xf32>
    %226 = arith.addf %206, %225 : vector<8x12xf32>
    %227 = vector.extract_strided_slice %168 {offsets = [0, 16], sizes = [12, 8], strides = [1, 1]} : vector<12x32xf32> to vector<12x8xf32>
    %cst_74 = arith.constant dense<0.000000e+00> : vector<8x8xf32>
    %228 = tpu.matmul %225, %227, %cst_74 {dimension_numbers = #tpu.dot_dimension_numbers<[1], [0], [0], [1], [0, 0, 1, 1], [], []>} : vector<8x12xf32>, vector<12x8xf32>, vector<8x8xf32> -> vector<8x8xf32>
    %229 = vector.extract_strided_slice %6 {offsets = [16, 0], sizes = [8, 32], strides = [1, 1]} : vector<32x32xf32> to vector<8x32xf32>
    %cst_75 = arith.constant dense<0.000000e+00> : vector<8x32xf32>
    %230 = tpu.matmul %228, %229, %cst_75 {dimension_numbers = #tpu.dot_dimension_numbers<[1], [0], [0], [1], [0, 0, 1, 1], [], []>} : vector<8x8xf32>, vector<8x32xf32>, vector<8x32xf32> -> vector<8x32xf32>
    %231 = arith.addf %211, %230 : vector<8x32xf32>
    %232 = vector.extract_strided_slice %162 {offsets = [0, 24], sizes = [8, 8], strides = [1, 1]} : vector<8x32xf32> to vector<8x8xf32>
    %233 = vector.extract_strided_slice %169 {offsets = [24, 0], sizes = [8, 12], strides = [1, 1]} : vector<32x12xf32> to vector<8x12xf32>
    %cst_76 = arith.constant dense<0.000000e+00> : vector<8x12xf32>
    %234 = tpu.matmul %232, %233, %cst_76 {dimension_numbers = #tpu.dot_dimension_numbers<[1], [0], [0], [1], [0, 0, 1, 1], [], []>} : vector<8x8xf32>, vector<8x12xf32>, vector<8x12xf32> -> vector<8x12xf32>
    %235 = arith.addf %234, %14 : vector<8x12xf32>
    %cst_77 = arith.constant dense<0xFF800000> : vector<8xf32>
    %236 = vector.multi_reduction <maximumf>, %235, %cst_77 [1] : vector<8x12xf32> to vector<8xf32>
    %237 = vector.shape_cast %236 : vector<8xf32> to vector<8x1xf32>
    %238 = vector.broadcast %237 : vector<8x1xf32> to vector<8x12xf32>
    %239 = arith.subf %235, %238 : vector<8x12xf32>
    %240 = math.exp %239 : vector<8x12xf32>
    %cst_78 = arith.constant dense<0.000000e+00> : vector<8xf32>
    %241 = vector.multi_reduction <add>, %240, %cst_78 [1] : vector<8x12xf32> to vector<8xf32>
    %242 = vector.shape_cast %241 : vector<8xf32> to vector<8x1xf32>
    %243 = tpu.reciprocal %242 {approx = true} : vector<8x1xf32> -> vector<8x1xf32>
    %244 = vector.broadcast %243 : vector<8x1xf32> to vector<8x12xf32>
    %245 = arith.mulf %240, %244 : vector<8x12xf32>
    %246 = arith.addf %226, %245 : vector<8x12xf32>
    %247 = vector.extract_strided_slice %168 {offsets = [0, 24], sizes = [12, 8], strides = [1, 1]} : vector<12x32xf32> to vector<12x8xf32>
    %cst_79 = arith.constant dense<0.000000e+00> : vector<8x8xf32>
    %248 = tpu.matmul %245, %247, %cst_79 {dimension_numbers = #tpu.dot_dimension_numbers<[1], [0], [0], [1], [0, 0, 1, 1], [], []>} : vector<8x12xf32>, vector<12x8xf32>, vector<8x8xf32> -> vector<8x8xf32>
    %249 = vector.extract_strided_slice %6 {offsets = [24, 0], sizes = [8, 32], strides = [1, 1]} : vector<32x32xf32> to vector<8x32xf32>
    %cst_80 = arith.constant dense<0.000000e+00> : vector<8x32xf32>
    %250 = tpu.matmul %248, %249, %cst_80 {dimension_numbers = #tpu.dot_dimension_numbers<[1], [0], [0], [1], [0, 0, 1, 1], [], []>} : vector<8x8xf32>, vector<8x32xf32>, vector<8x32xf32> -> vector<8x32xf32>
    %251 = arith.addf %231, %250 : vector<8x32xf32>
    %cst_81 = arith.constant 2.500000e-01 : f32
    %252 = vector.broadcast %cst_81 : f32 to vector<8x12xf32>
    %253 = arith.mulf %246, %252 : vector<8x12xf32>
    %c264 = arith.constant 264 : index
    %c0_82 = arith.constant 0 : index
    %254 = vector.load %arg4[%c264, %c0_82] : memref<272x96xf32, #tpu.memory_space<vmem>>, vector<1x32xf32>
    %255 = vector.broadcast %254 : vector<1x32xf32> to vector<8x32xf32>
    %256 = arith.addf %251, %255 : vector<8x32xf32>
    %257 = arith.addf %158, %256 : vector<8x32xf32>
    %c265 = arith.constant 265 : index
    %c0_83 = arith.constant 0 : index
    %258 = vector.load %arg4[%c265, %c0_83] : memref<272x96xf32, #tpu.memory_space<vmem>>, vector<1x32xf32>
    %c266 = arith.constant 266 : index
    %c0_84 = arith.constant 0 : index
    %259 = vector.load %arg4[%c266, %c0_84] : memref<272x96xf32, #tpu.memory_space<vmem>>, vector<1x32xf32>
    %cst_85 = arith.constant dense<0.000000e+00> : vector<8xf32>
    %260 = vector.multi_reduction <add>, %257, %cst_85 [1] : vector<8x32xf32> to vector<8xf32>
    %261 = vector.shape_cast %260 : vector<8xf32> to vector<8x1xf32>
    %cst_86 = arith.constant 3.200000e+01 : f32
    %262 = vector.broadcast %cst_86 : f32 to vector<8x1xf32>
    %263 = arith.divf %261, %262 : vector<8x1xf32>
    %264 = vector.broadcast %263 : vector<8x1xf32> to vector<8x32xf32>
    %265 = arith.subf %257, %264 : vector<8x32xf32>
    %266 = arith.mulf %265, %265 : vector<8x32xf32>
    %cst_87 = arith.constant dense<0.000000e+00> : vector<8xf32>
    %267 = vector.multi_reduction <add>, %266, %cst_87 [1] : vector<8x32xf32> to vector<8xf32>
    %268 = vector.shape_cast %267 : vector<8xf32> to vector<8x1xf32>
    %cst_88 = arith.constant 3.200000e+01 : f32
    %269 = vector.broadcast %cst_88 : f32 to vector<8x1xf32>
    %270 = arith.divf %268, %269 : vector<8x1xf32>
    %271 = vector.broadcast %263 : vector<8x1xf32> to vector<8x32xf32>
    %272 = arith.subf %257, %271 : vector<8x32xf32>
    %cst_89 = arith.constant 9.99999974E-6 : f32
    %273 = vector.broadcast %cst_89 : f32 to vector<8x1xf32>
    %274 = arith.addf %270, %273 : vector<8x1xf32>
    %275 = math.rsqrt %274 : vector<8x1xf32>
    %276 = vector.broadcast %275 : vector<8x1xf32> to vector<8x32xf32>
    %277 = arith.mulf %272, %276 : vector<8x32xf32>
    %278 = vector.broadcast %258 : vector<1x32xf32> to vector<8x32xf32>
    %279 = arith.mulf %277, %278 : vector<8x32xf32>
    %280 = vector.broadcast %259 : vector<1x32xf32> to vector<8x32xf32>
    %281 = arith.addf %279, %280 : vector<8x32xf32>
    %cst_90 = arith.constant dense<0.000000e+00> : vector<8x64xf32>
    %282 = tpu.matmul %281, %2, %cst_90 {dimension_numbers = #tpu.dot_dimension_numbers<[1], [0], [0], [1], [0, 0, 1, 1], [], []>} : vector<8x32xf32>, vector<32x64xf32>, vector<8x64xf32> -> vector<8x64xf32>
    %c267 = arith.constant 267 : index
    %c0_91 = arith.constant 0 : index
    %283 = vector.load %arg4[%c267, %c0_91] : memref<272x96xf32, #tpu.memory_space<vmem>>, vector<1x64xf32>
    %284 = vector.broadcast %283 : vector<1x64xf32> to vector<8x64xf32>
    %285 = arith.addf %282, %284 : vector<8x64xf32>
    %cst_92 = arith.constant 5.000000e-01 : f32
    %286 = vector.broadcast %cst_92 : f32 to vector<8x64xf32>
    %287 = arith.mulf %286, %285 : vector<8x64xf32>
    %cst_93 = arith.constant 0.707106769 : f32
    %288 = vector.broadcast %cst_93 : f32 to vector<8x64xf32>
    %289 = arith.mulf %285, %288 : vector<8x64xf32>
    %cst_94 = arith.constant 0.000000e+00 : f32
    %290 = vector.broadcast %cst_94 : f32 to vector<8x64xf32>
    %291 = arith.cmpf oge, %289, %290 : vector<8x64xf32>
    %cst_95 = arith.constant 1.000000e+00 : f32
    %cst_96 = arith.constant -1.000000e+00 : f32
    %292 = vector.broadcast %cst_95 : f32 to vector<8x64xf32>
    %293 = vector.broadcast %cst_96 : f32 to vector<8x64xf32>
    %294 = arith.select %291, %292, %293 : vector<8x64xi1>, vector<8x64xf32>
    %295 = math.absf %289 : vector<8x64xf32>
    %cst_97 = arith.constant 0.327591091 : f32
    %296 = vector.broadcast %cst_97 : f32 to vector<8x64xf32>
    %297 = arith.mulf %296, %295 : vector<8x64xf32>
    %cst_98 = arith.constant 1.000000e+00 : f32
    %298 = vector.broadcast %cst_98 : f32 to vector<8x64xf32>
    %299 = arith.addf %298, %297 : vector<8x64xf32>
    %300 = tpu.reciprocal %299 {approx = true} : vector<8x64xf32> -> vector<8x64xf32>
    %cst_99 = arith.constant 1.06140542 : f32
    %301 = vector.broadcast %cst_99 : f32 to vector<8x64xf32>
    %302 = arith.mulf %301, %300 : vector<8x64xf32>
    %cst_100 = arith.constant -1.45315206 : f32
    %303 = vector.broadcast %cst_100 : f32 to vector<8x64xf32>
    %304 = arith.addf %302, %303 : vector<8x64xf32>
    %305 = arith.mulf %304, %300 : vector<8x64xf32>
    %cst_101 = arith.constant 1.42141378 : f32
    %306 = vector.broadcast %cst_101 : f32 to vector<8x64xf32>
    %307 = arith.addf %305, %306 : vector<8x64xf32>
    %308 = arith.mulf %307, %300 : vector<8x64xf32>
    %cst_102 = arith.constant -0.284496725 : f32
    %309 = vector.broadcast %cst_102 : f32 to vector<8x64xf32>
    %310 = arith.addf %308, %309 : vector<8x64xf32>
    %311 = arith.mulf %310, %300 : vector<8x64xf32>
    %cst_103 = arith.constant 0.254829586 : f32
    %312 = vector.broadcast %cst_103 : f32 to vector<8x64xf32>
    %313 = arith.addf %311, %312 : vector<8x64xf32>
    %314 = arith.mulf %313, %300 : vector<8x64xf32>
    %cst_104 = arith.constant 0.000000e+00 : f32
    %315 = vector.broadcast %cst_104 : f32 to vector<8x64xf32>
    %316 = arith.subf %315, %295 : vector<8x64xf32>
    %317 = arith.mulf %316, %295 : vector<8x64xf32>
    %318 = math.exp %317 : vector<8x64xf32>
    %319 = arith.mulf %314, %318 : vector<8x64xf32>
    %cst_105 = arith.constant 1.000000e+00 : f32
    %320 = vector.broadcast %cst_105 : f32 to vector<8x64xf32>
    %321 = arith.subf %320, %319 : vector<8x64xf32>
    %322 = arith.mulf %294, %321 : vector<8x64xf32>
    %cst_106 = arith.constant 1.000000e+00 : f32
    %323 = vector.broadcast %cst_106 : f32 to vector<8x64xf32>
    %324 = arith.addf %323, %322 : vector<8x64xf32>
    %325 = arith.mulf %287, %324 : vector<8x64xf32>
    %cst_107 = arith.constant dense<0.000000e+00> : vector<8x32xf32>
    %326 = tpu.matmul %325, %3, %cst_107 {dimension_numbers = #tpu.dot_dimension_numbers<[1], [0], [0], [1], [0, 0, 1, 1], [], []>} : vector<8x64xf32>, vector<64x32xf32>, vector<8x32xf32> -> vector<8x32xf32>
    %c268 = arith.constant 268 : index
    %c0_108 = arith.constant 0 : index
    %327 = vector.load %arg4[%c268, %c0_108] : memref<272x96xf32, #tpu.memory_space<vmem>>, vector<1x32xf32>
    %328 = vector.broadcast %327 : vector<1x32xf32> to vector<8x32xf32>
    %329 = arith.addf %326, %328 : vector<8x32xf32>
    %330 = arith.addf %281, %329 : vector<8x32xf32>
    %c269 = arith.constant 269 : index
    %c0_109 = arith.constant 0 : index
    %331 = vector.load %arg4[%c269, %c0_109] : memref<272x96xf32, #tpu.memory_space<vmem>>, vector<1x32xf32>
    %c270 = arith.constant 270 : index
    %c0_110 = arith.constant 0 : index
    %332 = vector.load %arg4[%c270, %c0_110] : memref<272x96xf32, #tpu.memory_space<vmem>>, vector<1x32xf32>
    %cst_111 = arith.constant dense<0.000000e+00> : vector<8xf32>
    %333 = vector.multi_reduction <add>, %330, %cst_111 [1] : vector<8x32xf32> to vector<8xf32>
    %334 = vector.shape_cast %333 : vector<8xf32> to vector<8x1xf32>
    %cst_112 = arith.constant 3.200000e+01 : f32
    %335 = vector.broadcast %cst_112 : f32 to vector<8x1xf32>
    %336 = arith.divf %334, %335 : vector<8x1xf32>
    %337 = vector.broadcast %336 : vector<8x1xf32> to vector<8x32xf32>
    %338 = arith.subf %330, %337 : vector<8x32xf32>
    %339 = arith.mulf %338, %338 : vector<8x32xf32>
    %cst_113 = arith.constant dense<0.000000e+00> : vector<8xf32>
    %340 = vector.multi_reduction <add>, %339, %cst_113 [1] : vector<8x32xf32> to vector<8xf32>
    %341 = vector.shape_cast %340 : vector<8xf32> to vector<8x1xf32>
    %cst_114 = arith.constant 3.200000e+01 : f32
    %342 = vector.broadcast %cst_114 : f32 to vector<8x1xf32>
    %343 = arith.divf %341, %342 : vector<8x1xf32>
    %344 = vector.broadcast %336 : vector<8x1xf32> to vector<8x32xf32>
    %345 = arith.subf %330, %344 : vector<8x32xf32>
    %cst_115 = arith.constant 9.99999974E-6 : f32
    %346 = vector.broadcast %cst_115 : f32 to vector<8x1xf32>
    %347 = arith.addf %343, %346 : vector<8x1xf32>
    %348 = math.rsqrt %347 : vector<8x1xf32>
    %349 = vector.broadcast %348 : vector<8x1xf32> to vector<8x32xf32>
    %350 = arith.mulf %345, %349 : vector<8x32xf32>
    %351 = vector.broadcast %331 : vector<1x32xf32> to vector<8x32xf32>
    %352 = arith.mulf %350, %351 : vector<8x32xf32>
    %353 = vector.broadcast %332 : vector<1x32xf32> to vector<8x32xf32>
    %354 = arith.addf %352, %353 : vector<8x32xf32>
    %cst_116 = arith.constant 0.000000e+00 : f32
    %355 = vector.broadcast %cst_116 : f32 to vector<8x76xf32>
    %356 = tpu.concatenate %354, %130, %253, %355 in 1 : vector<8x32xf32>, vector<8x8xf32>, vector<8x12xf32>, vector<8x76xf32> -> vector<8x128xf32>
    %c0_117 = arith.constant 0 : index
    %c0_118 = arith.constant 0 : index
    %c0_119 = arith.constant 0 : index
    %357 = vector.load %arg5[%c0_117, %c0_118, %c0_119] : memref<2x8x128xf32, #tpu.memory_space<vmem>>, vector<1x8x128xf32>
    %358 = vector.shape_cast %357 : vector<1x8x128xf32> to vector<8x128xf32>
    %359 = vector.shape_cast %356 : vector<8x128xf32> to vector<1x8x128xf32>
    tpu.vector_store %arg5[%c0_117, %c0_118, %c0_119], %359 {strides = array<i32>} : memref<2x8x128xf32, #tpu.memory_space<vmem>>, vector<1x8x128xf32>,
    %c1 = arith.constant 1 : index
    %c0_120 = arith.constant 0 : index
    %c0_121 = arith.constant 0 : index
    %360 = vector.load %arg1[%c1, %c0_120, %c0_121] : memref<2x8x32xf32, #tpu.memory_space<vmem>>, vector<1x8x32xf32>
    %361 = vector.shape_cast %360 : vector<1x8x32xf32> to vector<8x32xf32>
    %c1_122 = arith.constant 1 : index
    %c0_123 = arith.constant 0 : index
    %c0_124 = arith.constant 0 : index
    %362 = vector.load %arg2[%c1_122, %c0_123, %c0_124] : memref<2x12x32xf32, #tpu.memory_space<vmem>>, vector<1x12x32xf32>
    %363 = vector.shape_cast %362 : vector<1x12x32xf32> to vector<12x32xf32>
    %c1_125 = arith.constant 1 : index
    %c0_126 = arith.constant 0 : index
    %c0_127 = arith.constant 0 : index
    %364 = vector.load %arg3[%c1_125, %c0_126, %c0_127] : memref<2x16x12xf32, #tpu.memory_space<vmem>>, vector<1x16x12xf32>
    %365 = vector.shape_cast %364 : vector<1x16x12xf32> to vector<16x12xf32>
    %366 = vector.extract_strided_slice %365 {offsets = [0, 0], sizes = [8, 8], strides = [1, 1]} : vector<16x12xf32> to vector<8x8xf32>
    %367 = vector.extract_strided_slice %365 {offsets = [8, 0], sizes = [8, 12], strides = [1, 1]} : vector<16x12xf32> to vector<8x12xf32>
    %c256_128 = arith.constant 256 : index
    %c0_129 = arith.constant 0 : index
    %368 = vector.load %arg4[%c256_128, %c0_129] : memref<272x96xf32, #tpu.memory_space<vmem>>, vector<1x32xf32>
    %c257_130 = arith.constant 257 : index
    %c0_131 = arith.constant 0 : index
    %369 = vector.load %arg4[%c257_130, %c0_131] : memref<272x96xf32, #tpu.memory_space<vmem>>, vector<1x32xf32>
    %cst_132 = arith.constant dense<0.000000e+00> : vector<8xf32>
    %370 = vector.multi_reduction <add>, %361, %cst_132 [1] : vector<8x32xf32> to vector<8xf32>
    %371 = vector.shape_cast %370 : vector<8xf32> to vector<8x1xf32>
    %cst_133 = arith.constant 3.200000e+01 : f32
    %372 = vector.broadcast %cst_133 : f32 to vector<8x1xf32>
    %373 = arith.divf %371, %372 : vector<8x1xf32>
    %374 = vector.broadcast %373 : vector<8x1xf32> to vector<8x32xf32>
    %375 = arith.subf %361, %374 : vector<8x32xf32>
    %376 = arith.mulf %375, %375 : vector<8x32xf32>
    %cst_134 = arith.constant dense<0.000000e+00> : vector<8xf32>
    %377 = vector.multi_reduction <add>, %376, %cst_134 [1] : vector<8x32xf32> to vector<8xf32>
    %378 = vector.shape_cast %377 : vector<8xf32> to vector<8x1xf32>
    %cst_135 = arith.constant 3.200000e+01 : f32
    %379 = vector.broadcast %cst_135 : f32 to vector<8x1xf32>
    %380 = arith.divf %378, %379 : vector<8x1xf32>
    %381 = vector.broadcast %373 : vector<8x1xf32> to vector<8x32xf32>
    %382 = arith.subf %361, %381 : vector<8x32xf32>
    %cst_136 = arith.constant 9.99999974E-6 : f32
    %383 = vector.broadcast %cst_136 : f32 to vector<8x1xf32>
    %384 = arith.addf %380, %383 : vector<8x1xf32>
    %385 = math.rsqrt %384 : vector<8x1xf32>
    %386 = vector.broadcast %385 : vector<8x1xf32> to vector<8x32xf32>
    %387 = arith.mulf %382, %386 : vector<8x32xf32>
    %388 = vector.broadcast %368 : vector<1x32xf32> to vector<8x32xf32>
    %389 = arith.mulf %387, %388 : vector<8x32xf32>
    %390 = vector.broadcast %369 : vector<1x32xf32> to vector<8x32xf32>
    %391 = arith.addf %389, %390 : vector<8x32xf32>
    %cst_137 = arith.constant dense<0.000000e+00> : vector<8x96xf32>
    %392 = tpu.matmul %391, %0, %cst_137 {dimension_numbers = #tpu.dot_dimension_numbers<[1], [0], [0], [1], [0, 0, 1, 1], [], []>} : vector<8x32xf32>, vector<32x96xf32>, vector<8x96xf32> -> vector<8x96xf32>
    %c258_138 = arith.constant 258 : index
    %c0_139 = arith.constant 0 : index
    %393 = vector.load %arg4[%c258_138, %c0_139] : memref<272x96xf32, #tpu.memory_space<vmem>>, vector<1x96xf32>
    %394 = vector.broadcast %393 : vector<1x96xf32> to vector<8x96xf32>
    %395 = arith.addf %392, %394 : vector<8x96xf32>
    %396 = vector.extract_strided_slice %395 {offsets = [0, 0], sizes = [8, 32], strides = [1, 1]} : vector<8x96xf32> to vector<8x32xf32>
    %397 = vector.extract_strided_slice %395 {offsets = [0, 32], sizes = [8, 32], strides = [1, 1]} : vector<8x96xf32> to vector<8x32xf32>
    %398 = vector.extract_strided_slice %395 {offsets = [0, 64], sizes = [8, 32], strides = [1, 1]} : vector<8x96xf32> to vector<8x32xf32>
    %399 = tpu.transpose %397, [1, 0] : vector<8x32xf32> -> vector<32x8xf32>
    %cst_140 = arith.constant 0.000000e+00 : f32
    %400 = vector.broadcast %cst_140 : f32 to vector<8x32xf32>
    %cst_141 = arith.constant 0.000000e+00 : f32
    %401 = vector.broadcast %cst_141 : f32 to vector<8x8xf32>
    %402 = vector.extract_strided_slice %396 {offsets = [0, 0], sizes = [8, 8], strides = [1, 1]} : vector<8x32xf32> to vector<8x8xf32>
    %403 = vector.extract_strided_slice %399 {offsets = [0, 0], sizes = [8, 8], strides = [1, 1]} : vector<32x8xf32> to vector<8x8xf32>
    %cst_142 = arith.constant dense<0.000000e+00> : vector<8x8xf32>
    %404 = tpu.matmul %402, %403, %cst_142 {dimension_numbers = #tpu.dot_dimension_numbers<[1], [0], [0], [1], [0, 0, 1, 1], [], []>} : vector<8x8xf32>, vector<8x8xf32>, vector<8x8xf32> -> vector<8x8xf32>
    %405 = arith.addf %404, %366 : vector<8x8xf32>
    %cst_143 = arith.constant dense<0xFF800000> : vector<8xf32>
    %406 = vector.multi_reduction <maximumf>, %405, %cst_143 [1] : vector<8x8xf32> to vector<8xf32>
    %407 = vector.shape_cast %406 : vector<8xf32> to vector<8x1xf32>
    %408 = vector.broadcast %407 : vector<8x1xf32> to vector<8x8xf32>
    %409 = arith.subf %405, %408 : vector<8x8xf32>
    %410 = math.exp %409 : vector<8x8xf32>
    %cst_144 = arith.constant dense<0.000000e+00> : vector<8xf32>
    %411 = vector.multi_reduction <add>, %410, %cst_144 [1] : vector<8x8xf32> to vector<8xf32>
    %412 = vector.shape_cast %411 : vector<8xf32> to vector<8x1xf32>
    %413 = tpu.reciprocal %412 {approx = true} : vector<8x1xf32> -> vector<8x1xf32>
    %414 = vector.broadcast %413 : vector<8x1xf32> to vector<8x8xf32>
    %415 = arith.mulf %410, %414 : vector<8x8xf32>
    %416 = arith.addf %401, %415 : vector<8x8xf32>
    %417 = vector.extract_strided_slice %398 {offsets = [0, 0], sizes = [8, 8], strides = [1, 1]} : vector<8x32xf32> to vector<8x8xf32>
    %cst_145 = arith.constant dense<0.000000e+00> : vector<8x8xf32>
    %418 = tpu.matmul %415, %417, %cst_145 {dimension_numbers = #tpu.dot_dimension_numbers<[1], [0], [0], [1], [0, 0, 1, 1], [], []>} : vector<8x8xf32>, vector<8x8xf32>, vector<8x8xf32> -> vector<8x8xf32>
    %419 = vector.extract_strided_slice %4 {offsets = [0, 0], sizes = [8, 32], strides = [1, 1]} : vector<32x32xf32> to vector<8x32xf32>
    %cst_146 = arith.constant dense<0.000000e+00> : vector<8x32xf32>
    %420 = tpu.matmul %418, %419, %cst_146 {dimension_numbers = #tpu.dot_dimension_numbers<[1], [0], [0], [1], [0, 0, 1, 1], [], []>} : vector<8x8xf32>, vector<8x32xf32>, vector<8x32xf32> -> vector<8x32xf32>
    %421 = arith.addf %400, %420 : vector<8x32xf32>
    %422 = vector.extract_strided_slice %396 {offsets = [0, 8], sizes = [8, 8], strides = [1, 1]} : vector<8x32xf32> to vector<8x8xf32>
    %423 = vector.extract_strided_slice %399 {offsets = [8, 0], sizes = [8, 8], strides = [1, 1]} : vector<32x8xf32> to vector<8x8xf32>
    %cst_147 = arith.constant dense<0.000000e+00> : vector<8x8xf32>
    %424 = tpu.matmul %422, %423, %cst_147 {dimension_numbers = #tpu.dot_dimension_numbers<[1], [0], [0], [1], [0, 0, 1, 1], [], []>} : vector<8x8xf32>, vector<8x8xf32>, vector<8x8xf32> -> vector<8x8xf32>
    %425 = arith.addf %424, %366 : vector<8x8xf32>
    %cst_148 = arith.constant dense<0xFF800000> : vector<8xf32>
    %426 = vector.multi_reduction <maximumf>, %425, %cst_148 [1] : vector<8x8xf32> to vector<8xf32>
    %427 = vector.shape_cast %426 : vector<8xf32> to vector<8x1xf32>
    %428 = vector.broadcast %427 : vector<8x1xf32> to vector<8x8xf32>
    %429 = arith.subf %425, %428 : vector<8x8xf32>
    %430 = math.exp %429 : vector<8x8xf32>
    %cst_149 = arith.constant dense<0.000000e+00> : vector<8xf32>
    %431 = vector.multi_reduction <add>, %430, %cst_149 [1] : vector<8x8xf32> to vector<8xf32>
    %432 = vector.shape_cast %431 : vector<8xf32> to vector<8x1xf32>
    %433 = tpu.reciprocal %432 {approx = true} : vector<8x1xf32> -> vector<8x1xf32>
    %434 = vector.broadcast %433 : vector<8x1xf32> to vector<8x8xf32>
    %435 = arith.mulf %430, %434 : vector<8x8xf32>
    %436 = arith.addf %416, %435 : vector<8x8xf32>
    %437 = vector.extract_strided_slice %398 {offsets = [0, 8], sizes = [8, 8], strides = [1, 1]} : vector<8x32xf32> to vector<8x8xf32>
    %cst_150 = arith.constant dense<0.000000e+00> : vector<8x8xf32>
    %438 = tpu.matmul %435, %437, %cst_150 {dimension_numbers = #tpu.dot_dimension_numbers<[1], [0], [0], [1], [0, 0, 1, 1], [], []>} : vector<8x8xf32>, vector<8x8xf32>, vector<8x8xf32> -> vector<8x8xf32>
    %439 = vector.extract_strided_slice %4 {offsets = [8, 0], sizes = [8, 32], strides = [1, 1]} : vector<32x32xf32> to vector<8x32xf32>
    %cst_151 = arith.constant dense<0.000000e+00> : vector<8x32xf32>
    %440 = tpu.matmul %438, %439, %cst_151 {dimension_numbers = #tpu.dot_dimension_numbers<[1], [0], [0], [1], [0, 0, 1, 1], [], []>} : vector<8x8xf32>, vector<8x32xf32>, vector<8x32xf32> -> vector<8x32xf32>
    %441 = arith.addf %421, %440 : vector<8x32xf32>
    %442 = vector.extract_strided_slice %396 {offsets = [0, 16], sizes = [8, 8], strides = [1, 1]} : vector<8x32xf32> to vector<8x8xf32>
    %443 = vector.extract_strided_slice %399 {offsets = [16, 0], sizes = [8, 8], strides = [1, 1]} : vector<32x8xf32> to vector<8x8xf32>
    %cst_152 = arith.constant dense<0.000000e+00> : vector<8x8xf32>
    %444 = tpu.matmul %442, %443, %cst_152 {dimension_numbers = #tpu.dot_dimension_numbers<[1], [0], [0], [1], [0, 0, 1, 1], [], []>} : vector<8x8xf32>, vector<8x8xf32>, vector<8x8xf32> -> vector<8x8xf32>
    %445 = arith.addf %444, %366 : vector<8x8xf32>
    %cst_153 = arith.constant dense<0xFF800000> : vector<8xf32>
    %446 = vector.multi_reduction <maximumf>, %445, %cst_153 [1] : vector<8x8xf32> to vector<8xf32>
    %447 = vector.shape_cast %446 : vector<8xf32> to vector<8x1xf32>
    %448 = vector.broadcast %447 : vector<8x1xf32> to vector<8x8xf32>
    %449 = arith.subf %445, %448 : vector<8x8xf32>
    %450 = math.exp %449 : vector<8x8xf32>
    %cst_154 = arith.constant dense<0.000000e+00> : vector<8xf32>
    %451 = vector.multi_reduction <add>, %450, %cst_154 [1] : vector<8x8xf32> to vector<8xf32>
    %452 = vector.shape_cast %451 : vector<8xf32> to vector<8x1xf32>
    %453 = tpu.reciprocal %452 {approx = true} : vector<8x1xf32> -> vector<8x1xf32>
    %454 = vector.broadcast %453 : vector<8x1xf32> to vector<8x8xf32>
    %455 = arith.mulf %450, %454 : vector<8x8xf32>
    %456 = arith.addf %436, %455 : vector<8x8xf32>
    %457 = vector.extract_strided_slice %398 {offsets = [0, 16], sizes = [8, 8], strides = [1, 1]} : vector<8x32xf32> to vector<8x8xf32>
    %cst_155 = arith.constant dense<0.000000e+00> : vector<8x8xf32>
    %458 = tpu.matmul %455, %457, %cst_155 {dimension_numbers = #tpu.dot_dimension_numbers<[1], [0], [0], [1], [0, 0, 1, 1], [], []>} : vector<8x8xf32>, vector<8x8xf32>, vector<8x8xf32> -> vector<8x8xf32>
    %459 = vector.extract_strided_slice %4 {offsets = [16, 0], sizes = [8, 32], strides = [1, 1]} : vector<32x32xf32> to vector<8x32xf32>
    %cst_156 = arith.constant dense<0.000000e+00> : vector<8x32xf32>
    %460 = tpu.matmul %458, %459, %cst_156 {dimension_numbers = #tpu.dot_dimension_numbers<[1], [0], [0], [1], [0, 0, 1, 1], [], []>} : vector<8x8xf32>, vector<8x32xf32>, vector<8x32xf32> -> vector<8x32xf32>
    %461 = arith.addf %441, %460 : vector<8x32xf32>
    %462 = vector.extract_strided_slice %396 {offsets = [0, 24], sizes = [8, 8], strides = [1, 1]} : vector<8x32xf32> to vector<8x8xf32>
    %463 = vector.extract_strided_slice %399 {offsets = [24, 0], sizes = [8, 8], strides = [1, 1]} : vector<32x8xf32> to vector<8x8xf32>
    %cst_157 = arith.constant dense<0.000000e+00> : vector<8x8xf32>
    %464 = tpu.matmul %462, %463, %cst_157 {dimension_numbers = #tpu.dot_dimension_numbers<[1], [0], [0], [1], [0, 0, 1, 1], [], []>} : vector<8x8xf32>, vector<8x8xf32>, vector<8x8xf32> -> vector<8x8xf32>
    %465 = arith.addf %464, %366 : vector<8x8xf32>
    %cst_158 = arith.constant dense<0xFF800000> : vector<8xf32>
    %466 = vector.multi_reduction <maximumf>, %465, %cst_158 [1] : vector<8x8xf32> to vector<8xf32>
    %467 = vector.shape_cast %466 : vector<8xf32> to vector<8x1xf32>
    %468 = vector.broadcast %467 : vector<8x1xf32> to vector<8x8xf32>
    %469 = arith.subf %465, %468 : vector<8x8xf32>
    %470 = math.exp %469 : vector<8x8xf32>
    %cst_159 = arith.constant dense<0.000000e+00> : vector<8xf32>
    %471 = vector.multi_reduction <add>, %470, %cst_159 [1] : vector<8x8xf32> to vector<8xf32>
    %472 = vector.shape_cast %471 : vector<8xf32> to vector<8x1xf32>
    %473 = tpu.reciprocal %472 {approx = true} : vector<8x1xf32> -> vector<8x1xf32>
    %474 = vector.broadcast %473 : vector<8x1xf32> to vector<8x8xf32>
    %475 = arith.mulf %470, %474 : vector<8x8xf32>
    %476 = arith.addf %456, %475 : vector<8x8xf32>
    %477 = vector.extract_strided_slice %398 {offsets = [0, 24], sizes = [8, 8], strides = [1, 1]} : vector<8x32xf32> to vector<8x8xf32>
    %cst_160 = arith.constant dense<0.000000e+00> : vector<8x8xf32>
    %478 = tpu.matmul %475, %477, %cst_160 {dimension_numbers = #tpu.dot_dimension_numbers<[1], [0], [0], [1], [0, 0, 1, 1], [], []>} : vector<8x8xf32>, vector<8x8xf32>, vector<8x8xf32> -> vector<8x8xf32>
    %479 = vector.extract_strided_slice %4 {offsets = [24, 0], sizes = [8, 32], strides = [1, 1]} : vector<32x32xf32> to vector<8x32xf32>
    %cst_161 = arith.constant dense<0.000000e+00> : vector<8x32xf32>
    %480 = tpu.matmul %478, %479, %cst_161 {dimension_numbers = #tpu.dot_dimension_numbers<[1], [0], [0], [1], [0, 0, 1, 1], [], []>} : vector<8x8xf32>, vector<8x32xf32>, vector<8x32xf32> -> vector<8x32xf32>
    %481 = arith.addf %461, %480 : vector<8x32xf32>
    %cst_162 = arith.constant 2.500000e-01 : f32
    %482 = vector.broadcast %cst_162 : f32 to vector<8x8xf32>
    %483 = arith.mulf %476, %482 : vector<8x8xf32>
    %c259_163 = arith.constant 259 : index
    %c0_164 = arith.constant 0 : index
    %484 = vector.load %arg4[%c259_163, %c0_164] : memref<272x96xf32, #tpu.memory_space<vmem>>, vector<1x32xf32>
    %485 = vector.broadcast %484 : vector<1x32xf32> to vector<8x32xf32>
    %486 = arith.addf %481, %485 : vector<8x32xf32>
    %487 = arith.addf %391, %486 : vector<8x32xf32>
    %c260_165 = arith.constant 260 : index
    %c0_166 = arith.constant 0 : index
    %488 = vector.load %arg4[%c260_165, %c0_166] : memref<272x96xf32, #tpu.memory_space<vmem>>, vector<1x32xf32>
    %c261_167 = arith.constant 261 : index
    %c0_168 = arith.constant 0 : index
    %489 = vector.load %arg4[%c261_167, %c0_168] : memref<272x96xf32, #tpu.memory_space<vmem>>, vector<1x32xf32>
    %cst_169 = arith.constant dense<0.000000e+00> : vector<8xf32>
    %490 = vector.multi_reduction <add>, %487, %cst_169 [1] : vector<8x32xf32> to vector<8xf32>
    %491 = vector.shape_cast %490 : vector<8xf32> to vector<8x1xf32>
    %cst_170 = arith.constant 3.200000e+01 : f32
    %492 = vector.broadcast %cst_170 : f32 to vector<8x1xf32>
    %493 = arith.divf %491, %492 : vector<8x1xf32>
    %494 = vector.broadcast %493 : vector<8x1xf32> to vector<8x32xf32>
    %495 = arith.subf %487, %494 : vector<8x32xf32>
    %496 = arith.mulf %495, %495 : vector<8x32xf32>
    %cst_171 = arith.constant dense<0.000000e+00> : vector<8xf32>
    %497 = vector.multi_reduction <add>, %496, %cst_171 [1] : vector<8x32xf32> to vector<8xf32>
    %498 = vector.shape_cast %497 : vector<8xf32> to vector<8x1xf32>
    %cst_172 = arith.constant 3.200000e+01 : f32
    %499 = vector.broadcast %cst_172 : f32 to vector<8x1xf32>
    %500 = arith.divf %498, %499 : vector<8x1xf32>
    %501 = vector.broadcast %493 : vector<8x1xf32> to vector<8x32xf32>
    %502 = arith.subf %487, %501 : vector<8x32xf32>
    %cst_173 = arith.constant 9.99999974E-6 : f32
    %503 = vector.broadcast %cst_173 : f32 to vector<8x1xf32>
    %504 = arith.addf %500, %503 : vector<8x1xf32>
    %505 = math.rsqrt %504 : vector<8x1xf32>
    %506 = vector.broadcast %505 : vector<8x1xf32> to vector<8x32xf32>
    %507 = arith.mulf %502, %506 : vector<8x32xf32>
    %508 = vector.broadcast %488 : vector<1x32xf32> to vector<8x32xf32>
    %509 = arith.mulf %507, %508 : vector<8x32xf32>
    %510 = vector.broadcast %489 : vector<1x32xf32> to vector<8x32xf32>
    %511 = arith.addf %509, %510 : vector<8x32xf32>
    %cst_174 = arith.constant dense<0.000000e+00> : vector<8x32xf32>
    %512 = tpu.matmul %511, %5, %cst_174 {dimension_numbers = #tpu.dot_dimension_numbers<[1], [0], [0], [1], [0, 0, 1, 1], [], []>} : vector<8x32xf32>, vector<32x32xf32>, vector<8x32xf32> -> vector<8x32xf32>
    %c262_175 = arith.constant 262 : index
    %c0_176 = arith.constant 0 : index
    %513 = vector.load %arg4[%c262_175, %c0_176] : memref<272x96xf32, #tpu.memory_space<vmem>>, vector<1x32xf32>
    %514 = vector.broadcast %513 : vector<1x32xf32> to vector<8x32xf32>
    %515 = arith.addf %512, %514 : vector<8x32xf32>
    %cst_177 = arith.constant dense<0.000000e+00> : vector<12x64xf32>
    %516 = tpu.matmul %363, %1, %cst_177 {dimension_numbers = #tpu.dot_dimension_numbers<[1], [0], [0], [1], [0, 0, 1, 1], [], []>} : vector<12x32xf32>, vector<32x64xf32>, vector<12x64xf32> -> vector<12x64xf32>
    %c263_178 = arith.constant 263 : index
    %c0_179 = arith.constant 0 : index
    %517 = vector.load %arg4[%c263_178, %c0_179] : memref<272x96xf32, #tpu.memory_space<vmem>>, vector<1x64xf32>
    %518 = vector.broadcast %517 : vector<1x64xf32> to vector<12x64xf32>
    %519 = arith.addf %516, %518 : vector<12x64xf32>
    %520 = vector.extract_strided_slice %519 {offsets = [0, 0], sizes = [12, 32], strides = [1, 1]} : vector<12x64xf32> to vector<12x32xf32>
    %521 = vector.extract_strided_slice %519 {offsets = [0, 32], sizes = [12, 32], strides = [1, 1]} : vector<12x64xf32> to vector<12x32xf32>
    %522 = tpu.transpose %520, [1, 0] : vector<12x32xf32> -> vector<32x12xf32>
    %cst_180 = arith.constant 0.000000e+00 : f32
    %523 = vector.broadcast %cst_180 : f32 to vector<8x32xf32>
    %cst_181 = arith.constant 0.000000e+00 : f32
    %524 = vector.broadcast %cst_181 : f32 to vector<8x12xf32>
    %525 = vector.extract_strided_slice %515 {offsets = [0, 0], sizes = [8, 8], strides = [1, 1]} : vector<8x32xf32> to vector<8x8xf32>
    %526 = vector.extract_strided_slice %522 {offsets = [0, 0], sizes = [8, 12], strides = [1, 1]} : vector<32x12xf32> to vector<8x12xf32>
    %cst_182 = arith.constant dense<0.000000e+00> : vector<8x12xf32>
    %527 = tpu.matmul %525, %526, %cst_182 {dimension_numbers = #tpu.dot_dimension_numbers<[1], [0], [0], [1], [0, 0, 1, 1], [], []>} : vector<8x8xf32>, vector<8x12xf32>, vector<8x12xf32> -> vector<8x12xf32>
    %528 = arith.addf %527, %367 : vector<8x12xf32>
    %cst_183 = arith.constant dense<0xFF800000> : vector<8xf32>
    %529 = vector.multi_reduction <maximumf>, %528, %cst_183 [1] : vector<8x12xf32> to vector<8xf32>
    %530 = vector.shape_cast %529 : vector<8xf32> to vector<8x1xf32>
    %531 = vector.broadcast %530 : vector<8x1xf32> to vector<8x12xf32>
    %532 = arith.subf %528, %531 : vector<8x12xf32>
    %533 = math.exp %532 : vector<8x12xf32>
    %cst_184 = arith.constant dense<0.000000e+00> : vector<8xf32>
    %534 = vector.multi_reduction <add>, %533, %cst_184 [1] : vector<8x12xf32> to vector<8xf32>
    %535 = vector.shape_cast %534 : vector<8xf32> to vector<8x1xf32>
    %536 = tpu.reciprocal %535 {approx = true} : vector<8x1xf32> -> vector<8x1xf32>
    %537 = vector.broadcast %536 : vector<8x1xf32> to vector<8x12xf32>
    %538 = arith.mulf %533, %537 : vector<8x12xf32>
    %539 = arith.addf %524, %538 : vector<8x12xf32>
    %540 = vector.extract_strided_slice %521 {offsets = [0, 0], sizes = [12, 8], strides = [1, 1]} : vector<12x32xf32> to vector<12x8xf32>
    %cst_185 = arith.constant dense<0.000000e+00> : vector<8x8xf32>
    %541 = tpu.matmul %538, %540, %cst_185 {dimension_numbers = #tpu.dot_dimension_numbers<[1], [0], [0], [1], [0, 0, 1, 1], [], []>} : vector<8x12xf32>, vector<12x8xf32>, vector<8x8xf32> -> vector<8x8xf32>
    %542 = vector.extract_strided_slice %6 {offsets = [0, 0], sizes = [8, 32], strides = [1, 1]} : vector<32x32xf32> to vector<8x32xf32>
    %cst_186 = arith.constant dense<0.000000e+00> : vector<8x32xf32>
    %543 = tpu.matmul %541, %542, %cst_186 {dimension_numbers = #tpu.dot_dimension_numbers<[1], [0], [0], [1], [0, 0, 1, 1], [], []>} : vector<8x8xf32>, vector<8x32xf32>, vector<8x32xf32> -> vector<8x32xf32>
    %544 = arith.addf %523, %543 : vector<8x32xf32>
    %545 = vector.extract_strided_slice %515 {offsets = [0, 8], sizes = [8, 8], strides = [1, 1]} : vector<8x32xf32> to vector<8x8xf32>
    %546 = vector.extract_strided_slice %522 {offsets = [8, 0], sizes = [8, 12], strides = [1, 1]} : vector<32x12xf32> to vector<8x12xf32>
    %cst_187 = arith.constant dense<0.000000e+00> : vector<8x12xf32>
    %547 = tpu.matmul %545, %546, %cst_187 {dimension_numbers = #tpu.dot_dimension_numbers<[1], [0], [0], [1], [0, 0, 1, 1], [], []>} : vector<8x8xf32>, vector<8x12xf32>, vector<8x12xf32> -> vector<8x12xf32>
    %548 = arith.addf %547, %367 : vector<8x12xf32>
    %cst_188 = arith.constant dense<0xFF800000> : vector<8xf32>
    %549 = vector.multi_reduction <maximumf>, %548, %cst_188 [1] : vector<8x12xf32> to vector<8xf32>
    %550 = vector.shape_cast %549 : vector<8xf32> to vector<8x1xf32>
    %551 = vector.broadcast %550 : vector<8x1xf32> to vector<8x12xf32>
    %552 = arith.subf %548, %551 : vector<8x12xf32>
    %553 = math.exp %552 : vector<8x12xf32>
    %cst_189 = arith.constant dense<0.000000e+00> : vector<8xf32>
    %554 = vector.multi_reduction <add>, %553, %cst_189 [1] : vector<8x12xf32> to vector<8xf32>
    %555 = vector.shape_cast %554 : vector<8xf32> to vector<8x1xf32>
    %556 = tpu.reciprocal %555 {approx = true} : vector<8x1xf32> -> vector<8x1xf32>
    %557 = vector.broadcast %556 : vector<8x1xf32> to vector<8x12xf32>
    %558 = arith.mulf %553, %557 : vector<8x12xf32>
    %559 = arith.addf %539, %558 : vector<8x12xf32>
    %560 = vector.extract_strided_slice %521 {offsets = [0, 8], sizes = [12, 8], strides = [1, 1]} : vector<12x32xf32> to vector<12x8xf32>
    %cst_190 = arith.constant dense<0.000000e+00> : vector<8x8xf32>
    %561 = tpu.matmul %558, %560, %cst_190 {dimension_numbers = #tpu.dot_dimension_numbers<[1], [0], [0], [1], [0, 0, 1, 1], [], []>} : vector<8x12xf32>, vector<12x8xf32>, vector<8x8xf32> -> vector<8x8xf32>
    %562 = vector.extract_strided_slice %6 {offsets = [8, 0], sizes = [8, 32], strides = [1, 1]} : vector<32x32xf32> to vector<8x32xf32>
    %cst_191 = arith.constant dense<0.000000e+00> : vector<8x32xf32>
    %563 = tpu.matmul %561, %562, %cst_191 {dimension_numbers = #tpu.dot_dimension_numbers<[1], [0], [0], [1], [0, 0, 1, 1], [], []>} : vector<8x8xf32>, vector<8x32xf32>, vector<8x32xf32> -> vector<8x32xf32>
    %564 = arith.addf %544, %563 : vector<8x32xf32>
    %565 = vector.extract_strided_slice %515 {offsets = [0, 16], sizes = [8, 8], strides = [1, 1]} : vector<8x32xf32> to vector<8x8xf32>
    %566 = vector.extract_strided_slice %522 {offsets = [16, 0], sizes = [8, 12], strides = [1, 1]} : vector<32x12xf32> to vector<8x12xf32>
    %cst_192 = arith.constant dense<0.000000e+00> : vector<8x12xf32>
    %567 = tpu.matmul %565, %566, %cst_192 {dimension_numbers = #tpu.dot_dimension_numbers<[1], [0], [0], [1], [0, 0, 1, 1], [], []>} : vector<8x8xf32>, vector<8x12xf32>, vector<8x12xf32> -> vector<8x12xf32>
    %568 = arith.addf %567, %367 : vector<8x12xf32>
    %cst_193 = arith.constant dense<0xFF800000> : vector<8xf32>
    %569 = vector.multi_reduction <maximumf>, %568, %cst_193 [1] : vector<8x12xf32> to vector<8xf32>
    %570 = vector.shape_cast %569 : vector<8xf32> to vector<8x1xf32>
    %571 = vector.broadcast %570 : vector<8x1xf32> to vector<8x12xf32>
    %572 = arith.subf %568, %571 : vector<8x12xf32>
    %573 = math.exp %572 : vector<8x12xf32>
    %cst_194 = arith.constant dense<0.000000e+00> : vector<8xf32>
    %574 = vector.multi_reduction <add>, %573, %cst_194 [1] : vector<8x12xf32> to vector<8xf32>
    %575 = vector.shape_cast %574 : vector<8xf32> to vector<8x1xf32>
    %576 = tpu.reciprocal %575 {approx = true} : vector<8x1xf32> -> vector<8x1xf32>
    %577 = vector.broadcast %576 : vector<8x1xf32> to vector<8x12xf32>
    %578 = arith.mulf %573, %577 : vector<8x12xf32>
    %579 = arith.addf %559, %578 : vector<8x12xf32>
    %580 = vector.extract_strided_slice %521 {offsets = [0, 16], sizes = [12, 8], strides = [1, 1]} : vector<12x32xf32> to vector<12x8xf32>
    %cst_195 = arith.constant dense<0.000000e+00> : vector<8x8xf32>
    %581 = tpu.matmul %578, %580, %cst_195 {dimension_numbers = #tpu.dot_dimension_numbers<[1], [0], [0], [1], [0, 0, 1, 1], [], []>} : vector<8x12xf32>, vector<12x8xf32>, vector<8x8xf32> -> vector<8x8xf32>
    %582 = vector.extract_strided_slice %6 {offsets = [16, 0], sizes = [8, 32], strides = [1, 1]} : vector<32x32xf32> to vector<8x32xf32>
    %cst_196 = arith.constant dense<0.000000e+00> : vector<8x32xf32>
    %583 = tpu.matmul %581, %582, %cst_196 {dimension_numbers = #tpu.dot_dimension_numbers<[1], [0], [0], [1], [0, 0, 1, 1], [], []>} : vector<8x8xf32>, vector<8x32xf32>, vector<8x32xf32> -> vector<8x32xf32>
    %584 = arith.addf %564, %583 : vector<8x32xf32>
    %585 = vector.extract_strided_slice %515 {offsets = [0, 24], sizes = [8, 8], strides = [1, 1]} : vector<8x32xf32> to vector<8x8xf32>
    %586 = vector.extract_strided_slice %522 {offsets = [24, 0], sizes = [8, 12], strides = [1, 1]} : vector<32x12xf32> to vector<8x12xf32>
    %cst_197 = arith.constant dense<0.000000e+00> : vector<8x12xf32>
    %587 = tpu.matmul %585, %586, %cst_197 {dimension_numbers = #tpu.dot_dimension_numbers<[1], [0], [0], [1], [0, 0, 1, 1], [], []>} : vector<8x8xf32>, vector<8x12xf32>, vector<8x12xf32> -> vector<8x12xf32>
    %588 = arith.addf %587, %367 : vector<8x12xf32>
    %cst_198 = arith.constant dense<0xFF800000> : vector<8xf32>
    %589 = vector.multi_reduction <maximumf>, %588, %cst_198 [1] : vector<8x12xf32> to vector<8xf32>
    %590 = vector.shape_cast %589 : vector<8xf32> to vector<8x1xf32>
    %591 = vector.broadcast %590 : vector<8x1xf32> to vector<8x12xf32>
    %592 = arith.subf %588, %591 : vector<8x12xf32>
    %593 = math.exp %592 : vector<8x12xf32>
    %cst_199 = arith.constant dense<0.000000e+00> : vector<8xf32>
    %594 = vector.multi_reduction <add>, %593, %cst_199 [1] : vector<8x12xf32> to vector<8xf32>
    %595 = vector.shape_cast %594 : vector<8xf32> to vector<8x1xf32>
    %596 = tpu.reciprocal %595 {approx = true} : vector<8x1xf32> -> vector<8x1xf32>
    %597 = vector.broadcast %596 : vector<8x1xf32> to vector<8x12xf32>
    %598 = arith.mulf %593, %597 : vector<8x12xf32>
    %599 = arith.addf %579, %598 : vector<8x12xf32>
    %600 = vector.extract_strided_slice %521 {offsets = [0, 24], sizes = [12, 8], strides = [1, 1]} : vector<12x32xf32> to vector<12x8xf32>
    %cst_200 = arith.constant dense<0.000000e+00> : vector<8x8xf32>
    %601 = tpu.matmul %598, %600, %cst_200 {dimension_numbers = #tpu.dot_dimension_numbers<[1], [0], [0], [1], [0, 0, 1, 1], [], []>} : vector<8x12xf32>, vector<12x8xf32>, vector<8x8xf32> -> vector<8x8xf32>
    %602 = vector.extract_strided_slice %6 {offsets = [24, 0], sizes = [8, 32], strides = [1, 1]} : vector<32x32xf32> to vector<8x32xf32>
    %cst_201 = arith.constant dense<0.000000e+00> : vector<8x32xf32>
    %603 = tpu.matmul %601, %602, %cst_201 {dimension_numbers = #tpu.dot_dimension_numbers<[1], [0], [0], [1], [0, 0, 1, 1], [], []>} : vector<8x8xf32>, vector<8x32xf32>, vector<8x32xf32> -> vector<8x32xf32>
    %604 = arith.addf %584, %603 : vector<8x32xf32>
    %cst_202 = arith.constant 2.500000e-01 : f32
    %605 = vector.broadcast %cst_202 : f32 to vector<8x12xf32>
    %606 = arith.mulf %599, %605 : vector<8x12xf32>
    %c264_203 = arith.constant 264 : index
    %c0_204 = arith.constant 0 : index
    %607 = vector.load %arg4[%c264_203, %c0_204] : memref<272x96xf32, #tpu.memory_space<vmem>>, vector<1x32xf32>
    %608 = vector.broadcast %607 : vector<1x32xf32> to vector<8x32xf32>
    %609 = arith.addf %604, %608 : vector<8x32xf32>
    %610 = arith.addf %511, %609 : vector<8x32xf32>
    %c265_205 = arith.constant 265 : index
    %c0_206 = arith.constant 0 : index
    %611 = vector.load %arg4[%c265_205, %c0_206] : memref<272x96xf32, #tpu.memory_space<vmem>>, vector<1x32xf32>
    %c266_207 = arith.constant 266 : index
    %c0_208 = arith.constant 0 : index
    %612 = vector.load %arg4[%c266_207, %c0_208] : memref<272x96xf32, #tpu.memory_space<vmem>>, vector<1x32xf32>
    %cst_209 = arith.constant dense<0.000000e+00> : vector<8xf32>
    %613 = vector.multi_reduction <add>, %610, %cst_209 [1] : vector<8x32xf32> to vector<8xf32>
    %614 = vector.shape_cast %613 : vector<8xf32> to vector<8x1xf32>
    %cst_210 = arith.constant 3.200000e+01 : f32
    %615 = vector.broadcast %cst_210 : f32 to vector<8x1xf32>
    %616 = arith.divf %614, %615 : vector<8x1xf32>
    %617 = vector.broadcast %616 : vector<8x1xf32> to vector<8x32xf32>
    %618 = arith.subf %610, %617 : vector<8x32xf32>
    %619 = arith.mulf %618, %618 : vector<8x32xf32>
    %cst_211 = arith.constant dense<0.000000e+00> : vector<8xf32>
    %620 = vector.multi_reduction <add>, %619, %cst_211 [1] : vector<8x32xf32> to vector<8xf32>
    %621 = vector.shape_cast %620 : vector<8xf32> to vector<8x1xf32>
    %cst_212 = arith.constant 3.200000e+01 : f32
    %622 = vector.broadcast %cst_212 : f32 to vector<8x1xf32>
    %623 = arith.divf %621, %622 : vector<8x1xf32>
    %624 = vector.broadcast %616 : vector<8x1xf32> to vector<8x32xf32>
    %625 = arith.subf %610, %624 : vector<8x32xf32>
    %cst_213 = arith.constant 9.99999974E-6 : f32
    %626 = vector.broadcast %cst_213 : f32 to vector<8x1xf32>
    %627 = arith.addf %623, %626 : vector<8x1xf32>
    %628 = math.rsqrt %627 : vector<8x1xf32>
    %629 = vector.broadcast %628 : vector<8x1xf32> to vector<8x32xf32>
    %630 = arith.mulf %625, %629 : vector<8x32xf32>
    %631 = vector.broadcast %611 : vector<1x32xf32> to vector<8x32xf32>
    %632 = arith.mulf %630, %631 : vector<8x32xf32>
    %633 = vector.broadcast %612 : vector<1x32xf32> to vector<8x32xf32>
    %634 = arith.addf %632, %633 : vector<8x32xf32>
    %cst_214 = arith.constant dense<0.000000e+00> : vector<8x64xf32>
    %635 = tpu.matmul %634, %2, %cst_214 {dimension_numbers = #tpu.dot_dimension_numbers<[1], [0], [0], [1], [0, 0, 1, 1], [], []>} : vector<8x32xf32>, vector<32x64xf32>, vector<8x64xf32> -> vector<8x64xf32>
    %c267_215 = arith.constant 267 : index
    %c0_216 = arith.constant 0 : index
    %636 = vector.load %arg4[%c267_215, %c0_216] : memref<272x96xf32, #tpu.memory_space<vmem>>, vector<1x64xf32>
    %637 = vector.broadcast %636 : vector<1x64xf32> to vector<8x64xf32>
    %638 = arith.addf %635, %637 : vector<8x64xf32>
    %cst_217 = arith.constant 5.000000e-01 : f32
    %639 = vector.broadcast %cst_217 : f32 to vector<8x64xf32>
    %640 = arith.mulf %639, %638 : vector<8x64xf32>
    %cst_218 = arith.constant 0.707106769 : f32
    %641 = vector.broadcast %cst_218 : f32 to vector<8x64xf32>
    %642 = arith.mulf %638, %641 : vector<8x64xf32>
    %cst_219 = arith.constant 0.000000e+00 : f32
    %643 = vector.broadcast %cst_219 : f32 to vector<8x64xf32>
    %644 = arith.cmpf oge, %642, %643 : vector<8x64xf32>
    %cst_220 = arith.constant 1.000000e+00 : f32
    %cst_221 = arith.constant -1.000000e+00 : f32
    %645 = vector.broadcast %cst_220 : f32 to vector<8x64xf32>
    %646 = vector.broadcast %cst_221 : f32 to vector<8x64xf32>
    %647 = arith.select %644, %645, %646 : vector<8x64xi1>, vector<8x64xf32>
    %648 = math.absf %642 : vector<8x64xf32>
    %cst_222 = arith.constant 0.327591091 : f32
    %649 = vector.broadcast %cst_222 : f32 to vector<8x64xf32>
    %650 = arith.mulf %649, %648 : vector<8x64xf32>
    %cst_223 = arith.constant 1.000000e+00 : f32
    %651 = vector.broadcast %cst_223 : f32 to vector<8x64xf32>
    %652 = arith.addf %651, %650 : vector<8x64xf32>
    %653 = tpu.reciprocal %652 {approx = true} : vector<8x64xf32> -> vector<8x64xf32>
    %cst_224 = arith.constant 1.06140542 : f32
    %654 = vector.broadcast %cst_224 : f32 to vector<8x64xf32>
    %655 = arith.mulf %654, %653 : vector<8x64xf32>
    %cst_225 = arith.constant -1.45315206 : f32
    %656 = vector.broadcast %cst_225 : f32 to vector<8x64xf32>
    %657 = arith.addf %655, %656 : vector<8x64xf32>
    %658 = arith.mulf %657, %653 : vector<8x64xf32>
    %cst_226 = arith.constant 1.42141378 : f32
    %659 = vector.broadcast %cst_226 : f32 to vector<8x64xf32>
    %660 = arith.addf %658, %659 : vector<8x64xf32>
    %661 = arith.mulf %660, %653 : vector<8x64xf32>
    %cst_227 = arith.constant -0.284496725 : f32
    %662 = vector.broadcast %cst_227 : f32 to vector<8x64xf32>
    %663 = arith.addf %661, %662 : vector<8x64xf32>
    %664 = arith.mulf %663, %653 : vector<8x64xf32>
    %cst_228 = arith.constant 0.254829586 : f32
    %665 = vector.broadcast %cst_228 : f32 to vector<8x64xf32>
    %666 = arith.addf %664, %665 : vector<8x64xf32>
    %667 = arith.mulf %666, %653 : vector<8x64xf32>
    %cst_229 = arith.constant 0.000000e+00 : f32
    %668 = vector.broadcast %cst_229 : f32 to vector<8x64xf32>
    %669 = arith.subf %668, %648 : vector<8x64xf32>
    %670 = arith.mulf %669, %648 : vector<8x64xf32>
    %671 = math.exp %670 : vector<8x64xf32>
    %672 = arith.mulf %667, %671 : vector<8x64xf32>
    %cst_230 = arith.constant 1.000000e+00 : f32
    %673 = vector.broadcast %cst_230 : f32 to vector<8x64xf32>
    %674 = arith.subf %673, %672 : vector<8x64xf32>
    %675 = arith.mulf %647, %674 : vector<8x64xf32>
    %cst_231 = arith.constant 1.000000e+00 : f32
    %676 = vector.broadcast %cst_231 : f32 to vector<8x64xf32>
    %677 = arith.addf %676, %675 : vector<8x64xf32>
    %678 = arith.mulf %640, %677 : vector<8x64xf32>
    %cst_232 = arith.constant dense<0.000000e+00> : vector<8x32xf32>
    %679 = tpu.matmul %678, %3, %cst_232 {dimension_numbers = #tpu.dot_dimension_numbers<[1], [0], [0], [1], [0, 0, 1, 1], [], []>} : vector<8x64xf32>, vector<64x32xf32>, vector<8x32xf32> -> vector<8x32xf32>
    %c268_233 = arith.constant 268 : index
    %c0_234 = arith.constant 0 : index
    %680 = vector.load %arg4[%c268_233, %c0_234] : memref<272x96xf32, #tpu.memory_space<vmem>>, vector<1x32xf32>
    %681 = vector.broadcast %680 : vector<1x32xf32> to vector<8x32xf32>
    %682 = arith.addf %679, %681 : vector<8x32xf32>
    %683 = arith.addf %634, %682 : vector<8x32xf32>
    %c269_235 = arith.constant 269 : index
    %c0_236 = arith.constant 0 : index
    %684 = vector.load %arg4[%c269_235, %c0_236] : memref<272x96xf32, #tpu.memory_space<vmem>>, vector<1x32xf32>
    %c270_237 = arith.constant 270 : index
    %c0_238 = arith.constant 0 : index
    %685 = vector.load %arg4[%c270_237, %c0_238] : memref<272x96xf32, #tpu.memory_space<vmem>>, vector<1x32xf32>
    %cst_239 = arith.constant dense<0.000000e+00> : vector<8xf32>
    %686 = vector.multi_reduction <add>, %683, %cst_239 [1] : vector<8x32xf32> to vector<8xf32>
    %687 = vector.shape_cast %686 : vector<8xf32> to vector<8x1xf32>
    %cst_240 = arith.constant 3.200000e+01 : f32
    %688 = vector.broadcast %cst_240 : f32 to vector<8x1xf32>
    %689 = arith.divf %687, %688 : vector<8x1xf32>
    %690 = vector.broadcast %689 : vector<8x1xf32> to vector<8x32xf32>
    %691 = arith.subf %683, %690 : vector<8x32xf32>
    %692 = arith.mulf %691, %691 : vector<8x32xf32>
    %cst_241 = arith.constant dense<0.000000e+00> : vector<8xf32>
    %693 = vector.multi_reduction <add>, %692, %cst_241 [1] : vector<8x32xf32> to vector<8xf32>
    %694 = vector.shape_cast %693 : vector<8xf32> to vector<8x1xf32>
    %cst_242 = arith.constant 3.200000e+01 : f32
    %695 = vector.broadcast %cst_242 : f32 to vector<8x1xf32>
    %696 = arith.divf %694, %695 : vector<8x1xf32>
    %697 = vector.broadcast %689 : vector<8x1xf32> to vector<8x32xf32>
    %698 = arith.subf %683, %697 : vector<8x32xf32>
    %cst_243 = arith.constant 9.99999974E-6 : f32
    %699 = vector.broadcast %cst_243 : f32 to vector<8x1xf32>
    %700 = arith.addf %696, %699 : vector<8x1xf32>
    %701 = math.rsqrt %700 : vector<8x1xf32>
    %702 = vector.broadcast %701 : vector<8x1xf32> to vector<8x32xf32>
    %703 = arith.mulf %698, %702 : vector<8x32xf32>
    %704 = vector.broadcast %684 : vector<1x32xf32> to vector<8x32xf32>
    %705 = arith.mulf %703, %704 : vector<8x32xf32>
    %706 = vector.broadcast %685 : vector<1x32xf32> to vector<8x32xf32>
    %707 = arith.addf %705, %706 : vector<8x32xf32>
    %cst_244 = arith.constant 0.000000e+00 : f32
    %708 = vector.broadcast %cst_244 : f32 to vector<8x76xf32>
    %709 = tpu.concatenate %707, %483, %606, %708 in 1 : vector<8x32xf32>, vector<8x8xf32>, vector<8x12xf32>, vector<8x76xf32> -> vector<8x128xf32>
    %c1_245 = arith.constant 1 : index
    %c0_246 = arith.constant 0 : index
    %c0_247 = arith.constant 0 : index
    %710 = vector.load %arg5[%c1_245, %c0_246, %c0_247] : memref<2x8x128xf32, #tpu.memory_space<vmem>>, vector<1x8x128xf32>
    %711 = vector.shape_cast %710 : vector<1x8x128xf32> to vector<8x128xf32>
    %712 = vector.shape_cast %709 : vector<8x128xf32> to vector<1x8x128xf32>
    tpu.vector_store %arg5[%c1_245, %c0_246, %c0_247], %712 {strides = array<i32>} : memref<2x8x128xf32, #tpu.memory_space<vmem>>, vector<1x8x128xf32>,
    return
  }
  func.func @transform_0(%arg0: i32) -> (i32, i32, i32) {
    %c0_i32 = arith.constant 0 : i32
    %c0_i32_0 = arith.constant 0 : i32
    %c0_i32_1 = arith.constant 0 : i32
    return %arg0, %c0_i32, %c0_i32_0 : i32, i32, i32
  }
  func.func @transform_1(%arg0: i32) -> (i32, i32, i32) {
    %c0_i32 = arith.constant 0 : i32
    %c0_i32_0 = arith.constant 0 : i32
    %c0_i32_1 = arith.constant 0 : i32
    return %arg0, %c0_i32, %c0_i32_0 : i32, i32, i32
  }
  func.func @transform_2(%arg0: i32) -> (i32, i32, i32) {
    %c0_i32 = arith.constant 0 : i32
    %c0_i32_0 = arith.constant 0 : i32
    %c0_i32_1 = arith.constant 0 : i32
    return %arg0, %c0_i32, %c0_i32_0 : i32, i32, i32
  }
  func.func @transform_3(%arg0: i32) -> (i32, i32) {
    %c0_i32 = arith.constant 0 : i32
    %c0_i32_0 = arith.constant 0 : i32
    %c0_i32_1 = arith.constant 0 : i32
    return %c0_i32, %c0_i32_0 : i32, i32
  }
  func.func @transform_4(%arg0: i32) -> (i32, i32, i32) {
    %c0_i32 = arith.constant 0 : i32
    %c0_i32_0 = arith.constant 0 : i32
    %c0_i32_1 = arith.constant 0 : i32
    return %arg0, %c0_i32, %c0_i32_0 : i32, i32, i32
  }
}

</mosaic_0001>

<bundles_post_ra>
// kernel: tpu_custom_call.1
= control target key start
LH: loop header
LB: loop body
LE: loop exit
PB: predicated region body
PF: predicated region fallthrough
CT: control target
= control target key end

     0   :  { %9 = vsyncpa [#allocation3], 0  ;;  %s6926_s0 = inlined_call_operand.vmem [shape: f32[2,8,32], index: 0, kind: input, shape index: {}]   ;;  %s6927_s1 = inlined_call_operand.vmem [shape: f32[2,12,32], index: 1, kind: input, shape index: {}]   ;;  %s6928_s2 = inlined_call_operand.vmem [shape: f32[2,16,12], index: 2, kind: input, shape index: {}]   ;;  %s6929_s3 = inlined_call_operand.hbm [shape: f32[272,96], index: 3, kind: input, shape index: {}]   ;;  %s6930_s4 = inlined_call_operand.hbm [shape: f32[2,8,128], index: 4, kind: output, shape index: {}]  }
   0x1   :  { %10 = vsyncpa [#allocation4], 0  ;;  %s6163_s15 = smov [#allocation2]   ;;  %s6115_s19 = scalar_lea.hbm %s6929_s3, 4352 }
   0x2   :  { %s22_s16 = sshll.u32 %s6163_s15, 4  ;;  %p6116_p0 = scmp.ne.s32.totalorder %s6929_s3, %s6115_s19  ;;  %s23_s16 = int_to_ptr.vmem [resolvable:$true] %s22_s16 }
   0x3   :  { %p6119_p1 = scmp.lt.u32.totalorder %s6115_s19, %s6929_s3 }
   0x5   :  { %p6121_p2 = pnand %p6119_p1, %p6116_p0 }
   0x7   :  { %6124 = shalt.err (!%p6121_p2)
}
   0x8   :  { %s6125_s24 = scalar_lea.vmem %s23_s16, 4352  ;;  %p6130_p4 = scmp.lt.s32.totalorder %s23_s16, %s23_s16 }
   0x9   :  { %p6126_p3 = scmp.ne.s32.totalorder %s23_s16, %s6125_s24  ;;  %p6131_p5 = scmp.lt.s32.totalorder %s6125_s24, %s6125_s24 }
   0xb   :  { %p6132_p6 = por %p6131_p5, %p6130_p4 }
   0xd   :  { %p6133_p7 = pnand %p6132_p6, %p6126_p3 }
   0xf   :  { %6136 = shalt.err (!%p6133_p7)
}
  0x10   :  { %s6164_s25 = smov 128   ;;  %s6165_s26 = smov 8  }
  0x11   :  { %28 = dma.hbm_to_vmem [thread:$0]  %s6929_s3, 4352, %s23_s16, [#allocation3], %s6164_s25, %s6164_s25, %s6165_s26  }
  0x12   :  { %6159 = dma.done.wait [#allocation3], 4352  }
  0x13   :  { %6160 = vsyncadd [#allocation3], 4294962944  ;;  %vm71_vm0 = vcmask 261120   ;;  %v64_v0 = vld [vmem:[%s6926_s0] sm:$0xff]  ;;  %v33_v8 = vld [vmem:[#allocation2 + $0x8] sm:$0xff]  ;;  %v6166_v10 = vmov 0.0|0.0  }
  0x14   :  { %v72_v1 = vsel %vm71_vm0, %v64_v0, 0.0  ;;  %v32_v7 = vld [vmem:[#allocation2] sm:$0xff]  ;;  %v34_v9 = vld [vmem:[#allocation2 + $0x10] sm:$0xff]  ;;  %5794 = vmatprep.subr.bf16.mxu0 %v6166_v10  ;;  %v35_v12 = vld [vmem:[#allocation2 + $0x18] sm:$0xff]  ;;  %vm6167_vm1 = vmmov 0   ;;  %v6168_v13 = vmov 0.0  }
  0x15   :  { %73 = vadd.xlane.f32.xlu0 %v72_v1  ;;  %v6230_v11 = vpack.c.bf16 %v33_v8, %v32_v7  ;;  %5404 = vmatprep.mubr.msk.f32.mxu0 %vm6167_vm1, %v6168_v13  ;;  %v6238_v14 = vpack.c.bf16 %v35_v12, %v34_v9  ;;  %v6243_v19 = vld [vmem:[#allocation2 + $0x100] ss:$0 sm:$0xff]  ;;  %v6245_v21 = vld [vmem:[#allocation2 + $0x101] ss:$0 sm:$0xff]  ;;  %v6255_v24 = vld [vmem:[#allocation2 + $0x102] ss:$0 sm:$0xff] }
  0x16   :  { %5412 = vmatprep.subr.mxu1 %v6168_v13  ;;  %5414 = vmatprep.mubr.msk.f32.mxu1 %vm6167_vm1, %v6168_v13  ;;  %s6169_s3 = smov 120   ;;  %s6170_s5 = smov 96   ;;  %vm177_vm2 = vcmask 64512   ;;  %v6280_v31 = vld [vmem:[%s6928_s2] sm:$0xff]  ;;  %v6296_v50 = vld [vmem:[#allocation2 + $0xa8] sm:$0xff]  ;;  %vm1408_vm4 = vcmask 97280  }
  0x17   :  { %5796 = vmatpush3.bf16.msra.mxu0 %v6230_v11  ;;  %s6171_s6 = smov 88   ;;  %s6172_s9 = smov 56   ;;  %v52_v60 = vld [vmem:[#allocation2 + $0xa0] sm:$0xff]  ;;  %vm6408_vm3 = vmpackc.low %vm177_vm2, %vm177_vm2  ;;  %vm1429_vm5 = vcmask 1043456   ;;  %vm6180_vm6 = vmmov 1   ;;  %vm2460_vm9 = vcmask 523264  }
  0x18   :  { %5797 = vmatprep.subr.bf16.mxu0 %v6166_v10  ;;  %s6173_s10 = smov 64   ;;  %s6174_s11 = smov 80   ;;  %vm6440_vm7 = vmpackc.low %vm1429_vm5, %vm6180_vm6  ;;  %vm2569_vm11 = vcmask 326656   ;;  %vm2571_vm12 = vcmask 424960  }
  0x19   :  { %s6175_s12 = smov 112   ;;  %s6176_s13 = smov 48  }
  0x1a   :  { %s6177_s14 = smov 104   ;;  %s6178_s15 = smov 72  }
  0x1b   :  { %5799 = vmatpush3.bf16.msra.mxu0 %v6238_v14  ;;  %s6179_s16 = smov 40  }
  0x1c   :  { %5407 = vmatprep.subr.mxu0 %v6168_v13 }
  0xa2   :  { %v74_v2 = vpop.xlane.xlu0 %73 }
  0xa3   :  { %v76_v3 = vmul.f32 0.03125, %v74_v2 }
  0xa5   :  { %v77_v4 = vsub.f32 %v64_v0, %v76_v3 }
  0xa7   :  { %v78_v5 = vmul.f32 %v77_v4, %v77_v4 }
  0xa9   :  { %v79_v6 = vsel %vm71_vm0, %v78_v5, 0.0 }
  0xaa   :  { %80 = vadd.xlane.f32.xlu0 %v79_v6 }
 0x137   :  { %v81_v15 = vpop.xlane.xlu0 %80 }
 0x138   :  { %v82_v16 = vmul.f32 0.03125, %v81_v15 }
 0x13a   :  { %v83_v17 = vadd.f32 1e-05, %v82_v16 }
 0x13c   :  { %6025 = vrsqrt.f32 %v83_v17 }
 0x146   :  { %v6026_v18 = vpop.eup %6025 }
 0x147   :  { %v85_v20 = vmul.f32 %v6026_v18, %v77_v4 }
 0x149   :  { %v90_v22 = vmul.f32 %v6243_v19, %v85_v20 }
 0x14b   :  { %v6249_v23 = vadd.f32 %v6245_v21, %v90_v22 }
 0x14d   :  { %5405 = vmatmul.mubr.msk.f32.vlgmr.msra.gmra.mrb[0].mxu0 %vm71_vm0, %v6249_v23 }
 0x14e   :  { %5409 = vmatprep.mubr.msk.f32.mxu0 %vm6167_vm1, %v6168_v13 }
 0x220   :  { %v170_v25 = vpop.f32.mrb[0].mxu0 }
 0x221   :  { %v6258_v26 = vadd.f32 %v6255_v24, %v170_v25  ;;  %v5406_v27 = vpop.f32.mrb[1].mxu0 }
 0x223   :  { %340 = vrot.lane.b32.xlu0 %v6258_v26, %s6169_s3  ;;  %175 = vrot.lane.b32.xlu1 %v6258_v26, %s6170_s5 }
 0x227   :  { %342 = vrot.lane.b32.xlu1 %v6258_v26, %s6171_s6 }
 0x295   :  { %v176_v28 = vpop.permute.xlu1 %175  ;;  %v341_v30 = vpop.permute.xlu0 %340 }
 0x296   :  { %5408 = vmatpush3.xpose.msk.msra.mxu0 %vm177_vm2, %v176_v28 }
 0x297   :  { %5417 = vmatprep.subr.mxu0 %v6168_v13 }
 0x299   :  { %5410 = vmatmul.mubr.msk.f32.vlgmr.msra.gmra.mrb[2].mxu0 %vm177_vm2, %v6258_v26  ;;  %v343_v29 = vpop.permute.xlu1 %342 }
 0x29a   :  { %5418 = vmatpush3.xpose.msk.msra.mxu0 %vm177_vm2, %v343_v29  ;;  %5419 = vmatprep.mubr.msk.f32.mxu0 %vm6167_vm1, %v6168_v13 }
 0x29b   :  { %5427 = vmatprep.subr.mxu0 %v6168_v13 }
 0x29d   :  { %5420 = vmatmul.mubr.msk.f32.vlgmr.msra.gmra.mrb[4].mxu0 %vm177_vm2, %v341_v30 }
 0x29e   :  { %5429 = vmatprep.mubr.msk.f32.mxu0 %vm6167_vm1, %v6168_v13  ;;  %5428 = vmatpush3.msra.mxu0 %v6296_v50 }
 0x29f   :  { %5437 = vmatprep.subr.mxu0 %v6168_v13 }
 0x36c   :  { %v248_v32 = vpop.f32.mrb[2].mxu0 }
 0x36d   :  { %v249_v33 = vadd.f32 %v248_v32, %v6280_v31  ;;  %v5411_v34 = vpop.f32.mrb[3].mxu0 }
 0x36e   :  { %v6338_v34 = vld [vmem:[#allocation2 + $0xb0] sm:$0xff] }
 0x36f   :  { %v252_v35 = vsel %vm177_vm2, %v249_v33, -inf }
 0x370   :  { %253 = vmax.xlane.f32.xlu1 %v252_v35  ;;  %v414_v36 = vpop.f32.mrb[4].mxu0 }
 0x371   :  { %v415_v37 = vadd.f32 %v414_v36, %v6280_v31  ;;  %v5421_v38 = vpop.f32.mrb[5].mxu0 }
 0x373   :  { %v418_v39 = vsel %vm177_vm2, %v415_v37, -inf }
 0x374   :  { %419 = vmax.xlane.f32.xlu0 %v418_v39 }
 0x38a   :  { %430 = vrot.lane.b32.xlu0 %v6258_v26, %s6172_s9 }
 0x3fd   :  { %v254_v40 = vpop.xlane.xlu1 %253 }
 0x3fe   :  { %v255_v41 = vsub.f32 %v249_v33, %v254_v40 }
 0x400   :  { %v256_v42 = vmul.f32 1.442695, %v255_v41 }
 0x401   :  { %v420_v43 = vpop.xlane.xlu0 %419 }
 0x402   :  { %6027 = vpow2.f32 %v256_v42  ;;  %v421_v44 = vsub.f32 %v415_v37, %v420_v43 }
 0x404   :  { %v422_v45 = vmul.f32 1.442695, %v421_v44 }
 0x405   :  { %v431_v56 = vpop.permute.xlu0 %430 }
 0x406   :  { %6029 = vpow2.f32 %v422_v45 }
 0x40c   :  { %v6028_v46 = vpop.eup %6027 }
 0x40d   :  { %v258_v47 = vsel %vm177_vm2, %v6028_v46, 0.0 }
 0x40e   :  { %259 = vadd.xlane.f32.xlu1 %v258_v47 }
 0x410   :  { %v6030_v48 = vpop.eup %6029 }
 0x411   :  { %v424_v49 = vsel %vm177_vm2, %v6030_v48, 0.0 }
 0x412   :  { %425 = vadd.xlane.f32.xlu1 %v424_v49 }
 0x423   :  { %264 = vrot.lane.b32.xlu1 %v6258_v26, %s6173_s10 }
 0x427   :  { %654 = vrot.lane.b32.xlu1 %v6258_v26, %s6174_s11 }
 0x42b   :  { %652 = vrot.lane.b32.xlu1 %v6258_v26, %s6175_s12 }
 0x49b   :  { %v260_v51 = vpop.xlane.xlu1 %259 }
 0x49c   :  { %6031 = vrcp.f32 %v260_v51 }
 0x49f   :  { %v426_v52 = vpop.xlane.xlu1 %425 }
 0x4a0   :  { %6033 = vrcp.f32 %v426_v52 }
 0x4a3   :  { %v265_v53 = vpop.permute.xlu1 %264 }
 0x4a4   :  { %5413 = vmatpush3.msra.mxu1 %v265_v53 }
 0x4a5   :  { %5422 = vmatprep.subr.mxu1 %v6168_v13 }
 0x4a6   :  { %v6032_v54 = vpop.eup %6031 }
 0x4a7   :  { %v262_v55 = vmul.f32 %v6032_v54, %v6028_v46  ;;  %v655_v63 = vpop.permute.xlu1 %654  ;;  %v6350_v46 = vld [vmem:[#allocation2 + $0xb8] sm:$0xff] }
 0x4a9   :  { %5415 = vmatmul.mubr.msk.f32.vlgmr.msra.gmra.mrb[0].mxu1 %vm177_vm2, %v262_v55 }
 0x4aa   :  { %v6034_v57 = vpop.eup %6033  ;;  %5423 = vmatpush3.msra.mxu1 %v431_v56  ;;  %5424 = vmatprep.mubr.msk.f32.mxu1 %vm6167_vm1, %v6168_v13 }
 0x4ab   :  { %v428_v58 = vmul.f32 %v6034_v57, %v6030_v48  ;;  %5432 = vmatprep.subr.mxu1 %v6168_v13  ;;  %v653_v2 = vpop.permute.xlu1 %652  ;;  %v5117_v57 = vld [vmem:[#allocation2 + $0x103] ss:$0 sm:$0xff] }
 0x4ad   :  { %5425 = vmatmul.mubr.msk.f32.vlgmr.msra.gmra.mrb[2].mxu1 %vm177_vm2, %v428_v58  ;;  %v429_v59 = vadd.f32 %v428_v58, %v262_v55 }
 0x4ae   :  { %5434 = vmatprep.mubr.msk.f32.mxu1 %vm6167_vm1, %v6168_v13  ;;  %5433 = vmatpush3.msra.mxu1 %v52_v60 }
 0x4af   :  { %5442 = vmatprep.subr.mxu1 %v6168_v13 }
 0x57c   :  { %v336_v61 = vpop.f32.mrb[0].mxu1 }
 0x57d   :  { %v5416_v62 = vpop.f32.mrb[1].mxu1  ;;  %5435 = vmatmul.mubr.msk.f32.vlgmr.msra.gmra.mrb[4].mxu1 %vm177_vm2, %v336_v61 }
 0x57e   :  { %5444 = vmatprep.mubr.msk.f32.mxu1 %vm6167_vm1, %v6168_v13 }
 0x580   :  { %v502_v0 = vpop.f32.mrb[2].mxu1 }
 0x581   :  { %v5426_v1 = vpop.f32.mrb[3].mxu1  ;;  %5430 = vmatmul.mubr.msk.f32.vlgmr.msra.gmra.mrb[6].mxu0 %vm177_vm2, %v502_v0 }
 0x582   :  { %5438 = vmatpush3.xpose.msk.msra.mxu0 %vm177_vm2, %v655_v63  ;;  %5439 = vmatprep.mubr.msk.f32.mxu0 %vm6167_vm1, %v6168_v13 }
 0x583   :  { %5447 = vmatprep.subr.mxu0 %v6168_v13 }
 0x585   :  { %5440 = vmatmul.mubr.msk.f32.vlgmr.msra.gmra.mrb[8].mxu0 %vm177_vm2, %v653_v2 }
 0x586   :  { %5449 = vmatprep.mubr.msk.f32.mxu0 %vm6167_vm1, %v6168_v13  ;;  %5448 = vmatpush3.msra.mxu0 %v6338_v34 }
 0x587   :  { %5457 = vmatprep.subr.mxu0 %v6168_v13 }
 0x650   :  { %v648_v3 = vpop.f32.mrb[4].mxu1 }
 0x651   :  { %v5436_v4 = vpop.f32.mrb[5].mxu1 }
 0x652   :  { %v36_v4 = vld [vmem:[#allocation2 + $0x20] sm:$0xff] }
 0x654   :  { %v575_v5 = vpop.f32.mrb[6].mxu0 }
 0x655   :  { %v649_v6 = vadd.f32 %v648_v3, %v575_v5  ;;  %v5431_v7 = vpop.f32.mrb[7].mxu0  ;;  %v37_v5 = vld [vmem:[#allocation2 + $0x28] sm:$0xff] }
 0x656   :  { %v38_v7 = vld [vmem:[#allocation2 + $0x30] sm:$0xff] }
 0x658   :  { %v726_v8 = vpop.f32.mrb[8].mxu0 }
 0x659   :  { %v727_v9 = vadd.f32 %v726_v8, %v6280_v31  ;;  %v5441_v12 = vpop.f32.mrb[9].mxu0 }
 0x65a   :  { %v66_v12 = vld [vmem:[%s6927_s1 + $0x8] sm:$0xf] }
 0x65b   :  { %v730_v15 = vsel %vm177_vm2, %v727_v9, -inf }
 0x65c   :  { %731 = vmax.xlane.f32.xlu1 %v730_v15  ;;  %v56_v15 = vld [vmem:[#allocation2 + $0xc0] sm:$0xff] }
 0x66d   :  { %742 = vrot.lane.b32.xlu1 %v6258_v26, %s6176_s13 }
 0x671   :  { %892 = vrot.lane.b32.xlu1 %v6258_v26, %s6177_s14 }
 0x6e9   :  { %v732_v16 = vpop.xlane.xlu1 %731 }
 0x6ea   :  { %v733_v17 = vsub.f32 %v727_v9, %v732_v16  ;;  %v65_v9 = vld [vmem:[%s6927_s1] sm:$0xff]  ;;  %v57_v16 = vld [vmem:[#allocation2 + $0xc8] sm:$0xff] }
 0x6ec   :  { %v734_v18 = vmul.f32 1.442695, %v733_v17  ;;  %v6382_v17 = vpack.c.bf16 %v57_v16, %v56_v15 }
 0x6ed   :  { %v743_v20 = vpop.permute.xlu1 %742 }
 0x6ee   :  { %6035 = vpow2.f32 %v734_v18  ;;  %5443 = vmatpush3.msra.mxu1 %v743_v20  ;;  %v58_v18 = vld [vmem:[#allocation2 + $0xd0] sm:$0xff]  ;;  %v59_v20 = vld [vmem:[#allocation2 + $0xd8] sm:$0xff] }
 0x6ef   :  { %5452 = vmatprep.subr.mxu1 %v6168_v13 }
 0x6f1   :  { %v893_v33 = vpop.permute.xlu1 %892 }
 0x6f8   :  { %v6036_v22 = vpop.eup %6035 }
 0x6f9   :  { %v736_v25 = vsel %vm177_vm2, %v6036_v22, 0.0 }
 0x6fa   :  { %737 = vadd.xlane.f32.xlu0 %v736_v25 }
 0x710   :  { %894 = vrot.lane.b32.xlu0 %v6258_v26, %s6178_s15 }
 0x787   :  { %v738_v27 = vpop.xlane.xlu0 %737 }
 0x788   :  { %6037 = vrcp.f32 %v738_v27 }
 0x78b   :  { %v895_v30 = vpop.permute.xlu0 %894 }
 0x792   :  { %v6038_v28 = vpop.eup %6037 }
 0x793   :  { %v740_v29 = vmul.f32 %v6038_v28, %v6036_v22  ;;  %v6386_v22 = vpack.c.bf16 %v59_v20, %v58_v18 }
 0x795   :  { %5445 = vmatmul.mubr.msk.f32.vlgmr.msra.gmra.mrb[6].mxu1 %vm177_vm2, %v740_v29  ;;  %v741_v32 = vadd.f32 %v740_v29, %v429_v59 }
 0x796   :  { %5453 = vmatpush3.xpose.msk.msra.mxu1 %vm177_vm2, %v895_v30  ;;  %5454 = vmatprep.mubr.msk.f32.mxu1 %vm6167_vm1, %v6168_v13  ;;  %v6390_v30 = vld [vmem:[#allocation2 + $0x104] ss:$0 sm:$0xff] }
 0x797   :  { %5462 = vmatprep.subr.mxu1 %v6168_v13 }
 0x799   :  { %5455 = vmatmul.mubr.msk.f32.vlgmr.msra.gmra.mrb[8].mxu1 %vm177_vm2, %v893_v33  ;;  %v6392_v33 = vld [vmem:[#allocation2 + $0x105] ss:$0 sm:$0xff] }
 0x79a   :  { %5464 = vmatprep.mubr.msk.f32.mxu1 %vm6167_vm1, %v6168_v13  ;;  %5463 = vmatpush3.msra.mxu1 %v6350_v46 }
 0x868   :  { %v814_v35 = vpop.f32.mrb[6].mxu1 }
 0x869   :  { %v5446_v36 = vpop.f32.mrb[7].mxu1  ;;  %5450 = vmatmul.mubr.msk.f32.vlgmr.msra.gmra.mrb[10].mxu0 %vm177_vm2, %v814_v35 }
 0x86a   :  { %5459 = vmatprep.mubr.msk.f32.mxu0 %vm6167_vm1, %v6168_v13 }
 0x86c   :  { %v966_v37 = vpop.f32.mrb[8].mxu1 }
 0x86d   :  { %v967_v38 = vadd.f32 %v966_v37, %v6280_v31  ;;  %v5456_v39 = vpop.f32.mrb[9].mxu1  ;;  %v6402_v37 = vld [vmem:[#allocation2 + $0x107] ss:$0 sm:$0xff] }
 0x86f   :  { %v970_v40 = vsel %vm177_vm2, %v967_v38, -inf }
 0x870   :  { %971 = vmax.xlane.f32.xlu1 %v970_v40 }
 0x8fd   :  { %v972_v41 = vpop.xlane.xlu1 %971 }
 0x8fe   :  { %v973_v42 = vsub.f32 %v967_v38, %v972_v41 }
 0x900   :  { %v974_v43 = vmul.f32 1.442695, %v973_v42 }
 0x902   :  { %6039 = vpow2.f32 %v974_v43 }
 0x90c   :  { %v6040_v44 = vpop.eup %6039 }
 0x90d   :  { %v976_v45 = vsel %vm177_vm2, %v6040_v44, 0.0 }
 0x90e   :  { %977 = vadd.xlane.f32.xlu0 %v976_v45  ;;  %v6419_v45 = vld [vmem:[#allocation2 + $0x106] ss:$0 sm:$0xff] }
 0x924   :  { %982 = vrot.lane.b32.xlu0 %v6258_v26, %s6179_s16 }
 0x93c   :  { %v887_v31 = vpop.f32.mrb[10].mxu0 }
 0x93d   :  { %v891_v47 = vadd.f32 %v887_v31, %v649_v6  ;;  %v5451_v48 = vpop.f32.mrb[11].mxu0  ;;  %v6363_v6 = vpack.c.bf16 %v37_v5, %v36_v4 }
 0x93f   :  { %5807 = vmatprep.subr.bf16.mxu1 %v6363_v6 }
 0x99b   :  { %v978_v49 = vpop.xlane.xlu0 %977 }
 0x99c   :  { %6041 = vrcp.f32 %v978_v49  ;;  %v6433_v49 = vld [vmem:[%s6928_s2 + $0x8] sm:$0xff] }
 0x99f   :  { %v983_v51 = vpop.permute.xlu0 %982 }
 0x9a0   :  { %5458 = vmatpush3.msra.mxu0 %v983_v51 }
 0x9a1   :  { %5800 = vmatprep.subr.bf16.mxu0 %v6166_v10 }
 0x9a6   :  { %v6042_v52 = vpop.eup %6041 }
 0x9a7   :  { %v980_v53 = vmul.f32 %v6042_v52, %v6040_v44 }
 0x9a9   :  { %5460 = vmatmul.mubr.msk.f32.vlgmr.msra.gmra.mrb[12].mxu0 %vm177_vm2, %v980_v53  ;;  %v6355_v54 = vadd.f32 %v980_v53, %v741_v32 }
 0x9aa   :  { %5475 = vmatprep.mubr.msk.f32.mxu0 %vm6167_vm1, %v6168_v13  ;;  %5802 = vmatpush3.bf16.msra.mxu0 %v6382_v17 }
 0x9ab   :  { %5803 = vmatprep.subr.bf16.mxu0 %v6166_v10 }
 0x9ae   :  { %5805 = vmatpush3.bf16.msra.mxu0 %v6386_v22 }
 0x9af   :  { %5814 = vmatprep.subr.bf16.mxu0 %v6166_v10 }
 0xa7c   :  { %v1054_v26 = vpop.f32.mrb[12].mxu0 }
 0xa7d   :  { %v5461_v55 = vpop.f32.mrb[13].mxu0  ;;  %5465 = vmatmul.mubr.msk.f32.vlgmr.msra.gmra.mrb[10].mxu1 %vm177_vm2, %v1054_v26 }
 0xa7e   :  { %5809 = vmatpush3.bf16.msra.mxu1 %v6363_v6  ;;  %5486 = vmatprep.mubr.msk.f32.mxu1 %vm71_vm0, %v65_v9 }
 0xb50   :  { %v1127_v56 = vpop.f32.mrb[10].mxu1 }
 0xb51   :  { %v1131_v58 = vadd.f32 %v1127_v56, %v891_v47  ;;  %v5466_v59 = vpop.f32.mrb[11].mxu1 }
 0xb53   :  { %v1138_v60 = vadd.f32 %v5117_v57, %v1131_v58 }
 0xb55   :  { %v1139_v61 = vadd.f32 %v1138_v60, %v6249_v23  ;;  %v39_v23 = vld [vmem:[#allocation2 + $0x38] sm:$0xff] }
 0xb56   :  { %v6367_v8 = vpack.c.bf16 %v39_v23, %v38_v7 }
 0xb57   :  { %v1142_v62 = vsel %vm71_vm0, %v1139_v61, 0.0 }
 0xb58   :  { %1143 = vadd.xlane.f32.xlu1 %v1142_v62  ;;  %5811 = vmatprep.subr.bf16.mxu1 %v6367_v8 }
 0xb59   :  { %5813 = vmatpush3.bf16.msra.mxu1 %v6367_v8 }
 0xb5a   :  { %5818 = vmatprep.subr.bf16.mxu1 %v6166_v10 }
 0xb5c   :  { %5487 = vmatmul.mubr.msk.f32.vlgmr.msra.gmra.mrb[12].mxu1 %vm71_vm0, %v66_v12  ;;  %v6459_v12 = vld [vmem:[#allocation2 + $0xe0] sm:$0xff] }
 0xb5d   :  { %5500 = vmatprep.mubr.msk.f32.mxu1 %vm6167_vm1, %v6168_v13 }
 0xbe5   :  { %v1144_v63 = vpop.xlane.xlu1 %1143 }
 0xbe6   :  { %v1145_v0 = vmul.f32 0.03125, %v1144_v63 }
 0xbe8   :  { %v1146_v1 = vsub.f32 %v1139_v61, %v1145_v0 }
 0xbea   :  { %v1147_v2 = vmul.f32 %v1146_v1, %v1146_v1 }
 0xbec   :  { %v1148_v3 = vsel %vm71_vm0, %v1147_v2, 0.0 }
 0xbed   :  { %1149 = vadd.xlane.f32.xlu1 %v1148_v3 }
 0xc2f   :  { %v5488_v38 = vpop.f32.mrb[12].mxu1 }
 0xc30   :  { %v1326_v39 = vadd.f32 %v5488_v38, %v6402_v37  ;;  %v1320_v40 = vpop.f32.mrb[13].mxu1 }
 0xc31   :  { %v1321_v41 = vadd.f32 %v6402_v37, %v1320_v40 }
 0xc33   :  { %v6412_v43 = vpack.i.bf16 %v1326_v39, %v1321_v41  ;;  %v5815_v44 = vpack.c.bf16 %v1326_v39, %v1321_v41 }
 0xc35   :  { %5961 = vrot.lane.b32.xlu0 %v6412_v43, %s6169_s3 }
 0xc7a   :  { %v1150_v25 = vpop.xlane.xlu1 %1149 }
 0xc7b   :  { %v1151_v27 = vmul.f32 0.03125, %v1150_v25 }
 0xc7d   :  { %v1152_v28 = vadd.f32 1e-05, %v1151_v27 }
 0xc7f   :  { %6043 = vrsqrt.f32 %v1152_v28 }
 0xc89   :  { %v6044_v29 = vpop.eup %6043 }
 0xc8a   :  { %v1154_v32 = vmul.f32 %v6044_v29, %v1146_v1 }
 0xc8c   :  { %v1159_v35 = vmul.f32 %v6390_v30, %v1154_v32 }
 0xc8e   :  { %v6396_v36 = vadd.f32 %v6392_v33, %v1159_v35 }
 0xc90   :  { %5476 = vmatmul.mubr.msk.f32.vlgmr.msra.gmra.mrb[14].mxu0 %vm71_vm0, %v6396_v36 }
 0xc91   :  { %5493 = vmatprep.mubr.msk.f32.mxu0 %vm6167_vm1, %v6168_v13  ;;  %5817 = vmatpush3.bf16.xpose.msk.msra.mxu0 %vm6408_vm3, %v5815_v44 }
 0xc92   :  { %5826 = vmatprep.subr.bf16.mxu0 %v6166_v10 }
 0xca7   :  { %v5962_v2 = vpop.permute.xlu0 %5961 }
 0xca8   :  { %v5964_v4 = vunpack.i.h.bf16 %v5962_v2  ;;  %v5963_v5 = vunpack.i.l.bf16 %v5962_v2 }
 0xcaa   :  { %v5823_v23 = vpack.c.bf16 %v5964_v4, %v5963_v5 }
 0xd63   :  { %v1239_v31 = vpop.f32.mrb[14].mxu0 }
 0xd64   :  { %v6422_v47 = vadd.f32 %v6419_v45, %v1239_v31  ;;  %v5477_v48 = vpop.f32.mrb[15].mxu0 }
 0xd66   :  { %1502 = vrot.lane.b32.xlu0 %v6422_v47, %s6169_s3  ;;  %5494 = vmatmul.mubr.msk.f32.vlgmr.msra.gmra.mrb[16].mxu0 %vm177_vm2, %v6422_v47 }
 0xd67   :  { %5514 = vmatprep.mubr.msk.f32.mxu0 %vm6167_vm1, %v6168_v13 }
 0xdd8   :  { %v1503_v9 = vpop.permute.xlu0 %1502 }
 0xe39   :  { %v1404_v51 = vpop.f32.mrb[16].mxu0 }
 0xe3a   :  { %v1405_v52 = vadd.f32 %v1404_v51, %v6433_v49  ;;  %v5495_v53 = vpop.f32.mrb[17].mxu0 }
 0xe3c   :  { %v1409_v26 = vsel %vm1408_vm4, %v1405_v52, -inf }
 0xe3d   :  { %1410 = vmax.xlane.f32.xlu1 %v1409_v26  ;;  %v6484_v26 = vld [vmem:[#allocation2 + $0xe8] sm:$0xff] }
 0xeca   :  { %v1411_v55 = vpop.xlane.xlu1 %1410 }
 0xecb   :  { %v1412_v56 = vsub.f32 %v1405_v52, %v1411_v55 }
 0xecd   :  { %v1413_v57 = vmul.f32 1.442695, %v1412_v56 }
 0xecf   :  { %6045 = vpow2.f32 %v1413_v57 }
 0xed9   :  { %v6046_v58 = vpop.eup %6045 }
 0xeda   :  { %v1415_v59 = vsel %vm1408_vm4, %v6046_v58, 0.0 }
 0xedb   :  { %1416 = vadd.xlane.f32.xlu1 %v1415_v59 }
 0xeec   :  { %5956 = vrot.lane.b32.xlu1 %v6412_v43, %s6170_s5 }
 0xf68   :  { %v1417_v60 = vpop.xlane.xlu1 %1416 }
 0xf69   :  { %6047 = vrcp.f32 %v1417_v60 }
 0xf6c   :  { %v5957_v61 = vpop.permute.xlu1 %5956 }
 0xf6d   :  { %v5959_v62 = vunpack.i.h.bf16 %v5957_v61  ;;  %v5958_v63 = vunpack.i.l.bf16 %v5957_v61 }
 0xf6f   :  { %v5819_v1 = vpack.c.bf16 %v5959_v62, %v5958_v63 }
 0xf71   :  { %5821 = vmatpush3.bf16.msk.msra.mxu1 %vm6440_vm7, %v5819_v1 }
 0xf72   :  { %5822 = vmatprep.subr.bf16.mxu1 %v6166_v10 }
 0xf73   :  { %v6048_v3 = vpop.eup %6047 }
 0xf74   :  { %v6447_v7 = vmul.f32 %v6048_v3, %v6046_v58 }
 0xf76   :  { %5501 = vmatmul.mubr.msk.f32.vlgmr.msra.gmra.mrb[14].mxu1 %vm1408_vm4, %v6447_v7 }
 0xf77   :  { %5507 = vmatprep.mubr.msk.f32.mxu1 %vm6167_vm1, %v6168_v13 }
 0xf7a   :  { %5825 = vmatpush3.bf16.xpose.msk.msra.mxu1 %vm6408_vm3, %v5823_v23 }
 0xf7b   :  { %5522 = vmatprep.subr.mxu1 %v6168_v13 }
 0xf81   :  { %5508 = vmatmul.mubr.msk.f32.vlgmr.msra.gmra.mrb[16].mxu1 %vm177_vm2, %v1503_v9 }
 0xf82   :  { %5524 = vmatprep.mubr.msk.f32.mxu1 %vm6167_vm1, %v6168_v13  ;;  %5523 = vmatpush3.msra.mxu1 %v6459_v12 }
 0xf83   :  { %5834 = vmatprep.subr.bf16.mxu1 %v6166_v10 }
0x1049   :  { %v1498_v15 = vpop.f32.mrb[14].mxu1 }
0x104a   :  { %v5502_v16 = vpop.f32.mrb[15].mxu1  ;;  %5525 = vmatmul.mubr.msk.f32.vlgmr.msra.gmra.mrb[18].mxu1 %vm177_vm2, %v1498_v15 }
0x104b   :  { %5538 = vmatprep.mubr.msk.f32.mxu1 %vm6167_vm1, %v6168_v13 }
0x1054   :  { %v1580_v18 = vpop.f32.mrb[16].mxu1 }
0x1055   :  { %v1581_v20 = vadd.f32 %v1580_v18, %v6433_v49  ;;  %v5509_v25 = vpop.f32.mrb[17].mxu1 }
0x1057   :  { %v1584_v27 = vsel %vm1408_vm4, %v1581_v20, -inf }
0x1058   :  { %1585 = vmax.xlane.f32.xlu0 %v1584_v27 }
0x106e   :  { %5966 = vrot.lane.b32.xlu0 %v6412_v43, %s6171_s6 }
0x1072   :  { %1822 = vrot.lane.b32.xlu0 %v6422_v47, %s6175_s12 }
0x1076   :  { %5976 = vrot.lane.b32.xlu0 %v6412_v43, %s6177_s14 }
0x10e5   :  { %v1586_v28 = vpop.xlane.xlu0 %1585 }
0x10e6   :  { %v1587_v29 = vsub.f32 %v1581_v20, %v1586_v28 }
0x10e8   :  { %v1588_v32 = vmul.f32 1.442695, %v1587_v29 }
0x10e9   :  { %v5967_v35 = vpop.permute.xlu0 %5966 }
0x10ea   :  { %6049 = vpow2.f32 %v1588_v32  ;;  %v5969_v38 = vunpack.i.h.bf16 %v5967_v35  ;;  %v5968_v39 = vunpack.i.l.bf16 %v5967_v35 }
0x10ec   :  { %v5827_v40 = vpack.c.bf16 %v5969_v38, %v5968_v39 }
0x10ed   :  { %v1823_v55 = vpop.permute.xlu0 %1822 }
0x10ee   :  { %5829 = vmatpush3.bf16.msk.msra.mxu0 %vm6440_vm7, %v5827_v40 }
0x10ef   :  { %5517 = vmatprep.subr.mxu0 %v6168_v13 }
0x10f1   :  { %v5977_v60 = vpop.permute.xlu0 %5976 }
0x10f2   :  { %v5979_v62 = vunpack.i.h.bf16 %v5977_v60  ;;  %v5978_v63 = vunpack.i.l.bf16 %v5977_v60 }
0x10f4   :  { %v6050_v41 = vpop.eup %6049  ;;  %v5839_v1 = vpack.c.bf16 %v5979_v62, %v5978_v63 }
0x10f5   :  { %v1590_v44 = vsel %vm1408_vm4, %v6050_v41, 0.0 }
0x10f6   :  { %1591 = vadd.xlane.f32.xlu1 %v1590_v44 }
0x1107   :  { %5971 = vrot.lane.b32.xlu1 %v6412_v43, %s6175_s12 }
0x110b   :  { %2070 = vrot.lane.b32.xlu1 %v6422_v47, %s6177_s14 }
0x111d   :  { %v1818_v31 = vpop.f32.mrb[18].mxu1 }
0x111e   :  { %v5526_v48 = vpop.f32.mrb[19].mxu1 }
0x1183   :  { %v1592_v51 = vpop.xlane.xlu1 %1591 }
0x1184   :  { %6051 = vrcp.f32 %v1592_v51 }
0x1187   :  { %v5972_v47 = vpop.permute.xlu1 %5971 }
0x1188   :  { %v5974_v56 = vunpack.i.h.bf16 %v5972_v47  ;;  %v5973_v57 = vunpack.i.l.bf16 %v5972_v47 }
0x118a   :  { %v5831_v58 = vpack.c.bf16 %v5974_v56, %v5973_v57 }
0x118b   :  { %v2071_v2 = vpop.permute.xlu1 %2070 }
0x118e   :  { %v6052_v52 = vpop.eup %6051 }
0x118f   :  { %v6482_v53 = vmul.f32 %v6052_v52, %v6050_v41 }
0x1191   :  { %5515 = vmatmul.mubr.msk.f32.vlgmr.msra.gmra.mrb[18].mxu0 %vm1408_vm4, %v6482_v53  ;;  %v1595_v56 = vadd.f32 %v6482_v53, %v6447_v7 }
0x1192   :  { %5518 = vmatpush3.msra.mxu0 %v6484_v26  ;;  %5519 = vmatprep.mubr.msk.f32.mxu0 %vm6167_vm1, %v6168_v13 }
0x1193   :  { %5830 = vmatprep.subr.bf16.mxu0 %v6166_v10 }
0x1264   :  { %v1672_v59 = vpop.f32.mrb[18].mxu0 }
0x1265   :  { %v5516_v61 = vpop.f32.mrb[19].mxu0  ;;  %5520 = vmatmul.mubr.msk.f32.vlgmr.msra.gmra.mrb[20].mxu0 %vm177_vm2, %v1672_v59  ;;  %v6527_v59 = vld [vmem:[#allocation2 + $0xf0] sm:$0xff] }
0x1266   :  { %5833 = vmatpush3.bf16.xpose.msk.msra.mxu0 %vm6408_vm3, %v5831_v58  ;;  %5531 = vmatprep.mubr.msk.f32.mxu0 %vm6167_vm1, %v6168_v13 }
0x1267   :  { %5838 = vmatprep.subr.bf16.mxu0 %v6166_v10 }
0x126d   :  { %5532 = vmatmul.mubr.msk.f32.vlgmr.msra.gmra.mrb[22].mxu0 %vm177_vm2, %v1823_v55 }
0x126e   :  { %5841 = vmatpush3.bf16.xpose.msk.msra.mxu0 %vm6408_vm3, %v5839_v1  ;;  %5550 = vmatprep.mubr.msk.f32.mxu0 %vm6167_vm1, %v6168_v13 }
0x126f   :  { %5846 = vmatprep.subr.bf16.mxu0 %v6166_v10 }
0x1275   :  { %5551 = vmatmul.mubr.msk.f32.vlgmr.msra.gmra.mrb[24].mxu0 %vm177_vm2, %v2071_v2 }
0x1276   :  { %5573 = vmatprep.mubr.msk.f32.mxu0 %vm6167_vm1, %v6168_v13 }
0x1338   :  { %v1745_v3 = vpop.f32.mrb[20].mxu0 }
0x1339   :  { %v6507_v4 = vadd.f32 %v1818_v31, %v1745_v3  ;;  %v5521_v5 = vpop.f32.mrb[21].mxu0 }
0x1340   :  { %v1900_v23 = vpop.f32.mrb[22].mxu0 }
0x1341   :  { %v1901_v9 = vadd.f32 %v1900_v23, %v6433_v49  ;;  %v5533_v15 = vpop.f32.mrb[23].mxu0 }
0x1343   :  { %v1904_v16 = vsel %vm1408_vm4, %v1901_v9, -inf }
0x1344   :  { %1905 = vmax.xlane.f32.xlu0 %v1904_v16 }
0x1348   :  { %v2148_v18 = vpop.f32.mrb[24].mxu0 }
0x1349   :  { %v5552_v20 = vpop.f32.mrb[25].mxu0  ;;  %v2149_v40 = vadd.f32 %v2148_v18, %v6433_v49 }
0x134a   :  { %v5158_v20 = vld [vmem:[%s6926_s0 + $0x8] sm:$0xff] }
0x134b   :  { %v2152_v44 = vsel %vm1408_vm4, %v2149_v40, -inf }
0x135a   :  { %5981 = vrot.lane.b32.xlu0 %v6412_v43, %s6174_s11 }
0x13d1   :  { %v1906_v25 = vpop.xlane.xlu0 %1905 }
0x13d2   :  { %v1907_v27 = vsub.f32 %v1901_v9, %v1906_v25  ;;  %v2584_v25 = vsel %vm71_vm0, %v5158_v20, 0.0 }
0x13d4   :  { %v1908_v28 = vmul.f32 1.442695, %v1907_v27 }
0x13d5   :  { %v5982_v29 = vpop.permute.xlu0 %5981 }
0x13d6   :  { %6053 = vpow2.f32 %v1908_v28  ;;  %v5984_v32 = vunpack.i.h.bf16 %v5982_v29  ;;  %v5983_v35 = vunpack.i.l.bf16 %v5982_v29  ;;  %v6554_v28 = vld [vmem:[#allocation2 + $0x108] ss:$0 sm:$0xff] }
0x13d8   :  { %v5835_v38 = vpack.c.bf16 %v5984_v32, %v5983_v35 }
0x13da   :  { %5837 = vmatpush3.bf16.msk.msra.mxu1 %vm6440_vm7, %v5835_v38 }
0x13db   :  { %5541 = vmatprep.subr.mxu1 %v6168_v13 }
0x13e0   :  { %v6054_v39 = vpop.eup %6053 }
0x13e1   :  { %v1910_v41 = vsel %vm1408_vm4, %v6054_v39, 0.0 }
0x13e2   :  { %1911 = vadd.xlane.f32.xlu1 %v1910_v41 }
0x13e6   :  { %2153 = vmax.xlane.f32.xlu1 %v2152_v44 }
0x146f   :  { %v1912_v31 = vpop.xlane.xlu1 %1911 }
0x1470   :  { %6055 = vrcp.f32 %v1912_v31 }
0x1473   :  { %v2154_v48 = vpop.xlane.xlu1 %2153 }
0x1474   :  { %v2155_v51 = vsub.f32 %v2149_v40, %v2154_v48 }
0x1476   :  { %v2156_v52 = vmul.f32 1.442695, %v2155_v51 }
0x1478   :  { %6057 = vpow2.f32 %v2156_v52 }
0x147a   :  { %v6056_v47 = vpop.eup %6055 }
0x147b   :  { %v1914_v55 = vmul.f32 %v6056_v47, %v6054_v39 }
0x147d   :  { %5539 = vmatmul.mubr.msk.f32.vlgmr.msra.gmra.mrb[20].mxu1 %vm1408_vm4, %v1914_v55  ;;  %v1915_v49 = vadd.f32 %v1914_v55, %v1595_v56  ;;  %v40_v56 = vld [vmem:[#allocation2 + $0x40] sm:$0xff] }
0x147e   :  { %5543 = vmatprep.mubr.msk.f32.mxu1 %vm6167_vm1, %v6168_v13  ;;  %5542 = vmatpush3.msra.mxu1 %v6527_v59 }
0x147f   :  { %5842 = vmatprep.subr.bf16.mxu1 %v6166_v10 }
0x1482   :  { %v6058_v57 = vpop.eup %6057 }
0x1483   :  { %v2158_v58 = vsel %vm1408_vm4, %v6058_v57, 0.0 }
0x1484   :  { %2159 = vadd.xlane.f32.xlu1 %v2158_v58  ;;  %v43_v58 = vld [vmem:[#allocation2 + $0x58] sm:$0xff] }
0x1495   :  { %5986 = vrot.lane.b32.xlu1 %v6412_v43, %s6178_s15  ;;  %v6542_v43 = vld [vmem:[#allocation2 + $0xf8] sm:$0xff] }
0x14b9   :  { %2585 = vadd.xlane.f32.xlu1 %v2584_v25 }
0x1511   :  { %v2160_v7 = vpop.xlane.xlu1 %2159 }
0x1512   :  { %6059 = vrcp.f32 %v2160_v7 }
0x1515   :  { %v5987_v62 = vpop.permute.xlu1 %5986 }
0x1516   :  { %v5989_v63 = vunpack.i.h.bf16 %v5987_v62  ;;  %v5988_v1 = vunpack.i.l.bf16 %v5987_v62 }
0x1518   :  { %v5843_v2 = vpack.c.bf16 %v5989_v63, %v5988_v1 }
0x151c   :  { %v6060_v53 = vpop.eup %6059 }
0x151d   :  { %v2162_v60 = vmul.f32 %v6060_v53, %v6058_v57  ;;  %v42_v57 = vld [vmem:[#allocation2 + $0x50] sm:$0xff] }
0x151e   :  { %v6565_v7 = vpack.c.bf16 %v43_v58, %v42_v57 }
0x151f   :  { %v6531_v61 = vadd.f32 %v2162_v60, %v1915_v49  ;;  %v41_v49 = vld [vmem:[#allocation2 + $0x48] sm:$0xff] }
0x1546   :  { %v2586_v39 = vpop.xlane.xlu1 %2585 }
0x1547   :  { %v2587_v40 = vmul.f32 0.03125, %v2586_v39  ;;  %v50_v39 = vld [vmem:[#allocation2 + $0x90] sm:$0xff] }
0x1549   :  { %v2588_v31 = vsub.f32 %v5158_v20, %v2587_v40  ;;  %v51_v40 = vld [vmem:[#allocation2 + $0x98] sm:$0xff] }
0x154b   :  { %v2589_v52 = vmul.f32 %v2588_v31, %v2588_v31 }
0x154d   :  { %v2590_v55 = vsel %vm71_vm0, %v2589_v52, 0.0 }
0x1550   :  { %v1992_v3 = vpop.f32.mrb[20].mxu1 }
0x1551   :  { %v5540_v5 = vpop.f32.mrb[21].mxu1  ;;  %5544 = vmatmul.mubr.msk.f32.vlgmr.msra.gmra.mrb[22].mxu1 %vm177_vm2, %v1992_v3 }
0x1552   :  { %5845 = vmatpush3.bf16.msk.msra.mxu1 %vm6440_vm7, %v5843_v2  ;;  %5557 = vmatprep.mubr.msk.f32.mxu1 %vm6167_vm1, %v6168_v13  ;;  %v6569_v5 = vld [vmem:[#allocation2 + $0x109] ss:$0 sm:$0xff] }
0x1553   :  { %5560 = vmatprep.subr.mxu1 %v6168_v13 }
0x1555   :  { %5558 = vmatmul.mubr.msk.f32.vlgmr.msra.gmra.mrb[24].mxu1 %vm1408_vm4, %v2162_v60 }
0x1556   :  { %5562 = vmatprep.mubr.msk.f32.mxu1 %vm6167_vm1, %v6168_v13  ;;  %5561 = vmatpush3.msra.mxu1 %v6542_v43 }
0x1557   :  { %5852 = vmatprep.subr.bf16.mxu1 %v6166_v10 }
0x1624   :  { %v2065_v23 = vpop.f32.mrb[22].mxu1 }
0x1625   :  { %v2069_v9 = vadd.f32 %v2065_v23, %v6507_v4  ;;  %v5545_v15 = vpop.f32.mrb[23].mxu1 }
0x1628   :  { %v2240_v16 = vpop.f32.mrb[24].mxu1 }
0x1629   :  { %v5559_v18 = vpop.f32.mrb[25].mxu1  ;;  %5563 = vmatmul.mubr.msk.f32.vlgmr.msra.gmra.mrb[26].mxu1 %vm177_vm2, %v2240_v16 }
0x162a   :  { %5592 = vmatprep.mubr.msk.f32.mxu1 %vm6167_vm1, %v6168_v13 }
0x16fc   :  { %v2313_v27 = vpop.f32.mrb[26].mxu1 }
0x16fd   :  { %v2317_v29 = vadd.f32 %v2313_v27, %v2069_v9  ;;  %v5564_v4 = vpop.f32.mrb[27].mxu1  ;;  %v6571_v9 = vld [vmem:[#allocation2 + $0x10a] ss:$0 sm:$0xff] }
0x16ff   :  { %v2324_v32 = vadd.f32 %v6554_v28, %v2317_v29  ;;  %v45_v29 = vld [vmem:[#allocation2 + $0x68] sm:$0xff] }
0x1701   :  { %v2325_v35 = vadd.f32 %v2324_v32, %v6396_v36  ;;  %v6561_v36 = vpack.c.bf16 %v41_v49, %v40_v56  ;;  %v48_v32 = vld [vmem:[#allocation2 + $0x80] sm:$0xff] }
0x1703   :  { %v2328_v38 = vsel %vm71_vm0, %v2325_v35, 0.0  ;;  %5848 = vmatpush3.bf16.msra.mxu0 %v6561_v36 }
0x1704   :  { %2329 = vadd.xlane.f32.xlu0 %v2328_v38  ;;  %5849 = vmatprep.subr.bf16.mxu0 %v6166_v10 }
0x1707   :  { %5851 = vmatpush3.bf16.msra.mxu0 %v6565_v7 }
0x1708   :  { %5864 = vmatprep.subr.bf16.mxu0 %v6166_v10 }
0x1791   :  { %v2330_v41 = vpop.xlane.xlu0 %2329 }
0x1792   :  { %v2331_v44 = vmul.f32 0.03125, %v2330_v41  ;;  %v6605_v41 = vpack.c.bf16 %v51_v40, %v50_v39 }
0x1794   :  { %v2332_v48 = vsub.f32 %v2325_v35, %v2331_v44  ;;  %v49_v35 = vld [vmem:[#allocation2 + $0x88] sm:$0xff] }
0x1795   :  { %v6601_v38 = vpack.c.bf16 %v49_v35, %v48_v32  ;;  %v6609_v44 = vld [vmem:[#allocation2 + $0x10b] ss:$0 sm:$0xff] }
0x1796   :  { %v2333_v51 = vmul.f32 %v2332_v48, %v2332_v48 }
0x1798   :  { %v2334_v47 = vsel %vm71_vm0, %v2333_v51, 0.0 }
0x1799   :  { %2335 = vadd.xlane.f32.xlu0 %v2334_v47 }
0x179d   :  { %2591 = vadd.xlane.f32.xlu0 %v2590_v55 }
0x1826   :  { %v2336_v53 = vpop.xlane.xlu0 %2335 }
0x1827   :  { %v2337_v60 = vmul.f32 0.03125, %v2336_v53 }
0x1829   :  { %v2338_v62 = vadd.f32 1e-05, %v2337_v60 }
0x182a   :  { %v2592_v63 = vpop.xlane.xlu0 %2591 }
0x182b   :  { %6061 = vrsqrt.f32 %v2338_v62  ;;  %v2593_v1 = vmul.f32 0.03125, %v2592_v63 }
0x182d   :  { %v2594_v2 = vadd.f32 1e-05, %v2593_v1 }
0x182f   :  { %6063 = vrsqrt.f32 %v2594_v2 }
0x1835   :  { %v6062_v3 = vpop.eup %6061 }
0x1836   :  { %v2340_v23 = vmul.f32 %v6062_v3, %v2332_v48 }
0x1838   :  { %v2345_v15 = vmul.f32 %v6569_v5, %v2340_v23 }
0x1839   :  { %v6064_v16 = vpop.eup %6063 }
0x183a   :  { %v2596_v18 = vmul.f32 %v6064_v16, %v2588_v31  ;;  %v6575_v20 = vadd.f32 %v6571_v9, %v2345_v15 }
0x183c   :  { %5574 = vmatmul.mubr.msk.f32.vlgmr.msra.gmra.mrb[26].mxu0 %vm71_vm0, %v6575_v20  ;;  %v2601_v25 = vmul.f32 %v6243_v19, %v2596_v18  ;;  %v47_v19 = vld [vmem:[#allocation2 + $0x78] sm:$0xff] }
0x183d   :  { %5866 = vmatpush3.bf16.msra.mxu0 %v6230_v11  ;;  %5603 = vmatprep.mubr.msk.f32.mxu0 %vm6167_vm1, %v6168_v13  ;;  %v44_v11 = vld [vmem:[#allocation2 + $0x60] sm:$0xff] }
0x183e   :  { %5867 = vmatprep.subr.bf16.mxu0 %v6166_v10  ;;  %v6586_v27 = vadd.f32 %v6245_v21, %v2601_v25  ;;  %v6593_v4 = vpack.c.bf16 %v45_v29, %v44_v11 }
0x1840   :  { %5854 = vmatpush3.bf16.msra.mxu1 %v6593_v4 }
0x1841   :  { %5869 = vmatpush3.bf16.msra.mxu0 %v6238_v14  ;;  %5855 = vmatprep.subr.bf16.mxu1 %v6166_v10  ;;  %v46_v14 = vld [vmem:[#allocation2 + $0x70] sm:$0xff] }
0x1842   :  { %5606 = vmatprep.subr.mxu0 %v6168_v13  ;;  %v6597_v21 = vpack.c.bf16 %v47_v19, %v46_v14  ;;  %v6181_v19 = vmov -1.0  }
0x1844   :  { %5604 = vmatmul.mubr.msk.f32.vlgmr.msra.gmra.mrb[28].mxu0 %vm71_vm0, %v6586_v27  ;;  %5857 = vmatpush3.bf16.msra.mxu1 %v6597_v21 }
0x1845   :  { %5608 = vmatprep.mubr.msk.f32.mxu0 %vm6167_vm1, %v6168_v13  ;;  %5858 = vmatprep.subr.bf16.mxu1 %v6166_v10 }
0x1848   :  { %5860 = vmatpush3.bf16.msra.mxu1 %v6601_v38 }
0x1849   :  { %5861 = vmatprep.subr.bf16.mxu1 %v6166_v10 }
0x184c   :  { %5863 = vmatpush3.bf16.msra.mxu1 %v6605_v41 }
0x184d   :  { %5611 = vmatprep.subr.mxu1 %v6168_v13 }
0x190f   :  { %v2425_v31 = vpop.f32.mrb[26].mxu0 }
0x1910   :  { %v2426_v48 = vadd.f32 %v6609_v44, %v2425_v31  ;;  %v5575_v51 = vpop.f32.mrb[27].mxu0 }
0x1912   :  { %v2430_v52 = vmul.f32 0.70710677, %v2426_v48  ;;  %v2429_v39 = vmul.f32 0.5, %v2426_v48 }
0x1914   :  { %v2433_v47 = vand.u32 2147483647, %v2430_v52  ;;  %vm2431_vm8 = vcmp.ge.f32.partialorder %v2430_v52, 0.0 }
0x1915   :  { %v2432_v32 = vsel %vm2431_vm8, 1.0, %v6181_v19 }
0x1916   :  { %v2434_v55 = vmul.f32 0.3275911, %v2433_v47  ;;  %v2446_v53 = vsub.f32 0.0, %v2433_v47 }
0x1917   :  { %v2681_v56 = vpop.f32.mrb[28].mxu0 }
0x1918   :  { %v2435_v49 = vadd.f32 1.0, %v2434_v55  ;;  %v6613_v57 = vadd.f32 %v6255_v24, %v2681_v56  ;;  %v5605_v58 = vpop.f32.mrb[29].mxu0  ;;  %v2447_v62 = vmul.f32 %v2446_v53, %v2433_v47  ;;  %v6643_v56 = vld [vmem:[%s6928_s2 + $0x10] sm:$0xff] }
0x191a   :  { %6065 = vrcp.f32 %v2435_v49  ;;  %2852 = vrot.lane.b32.xlu1 %v6613_v57, %s6171_s6  ;;  %2686 = vrot.lane.b32.xlu0 %v6613_v57, %s6170_s5  ;;  %v2448_v2 = vmul.f32 1.442695, %v2447_v62 }
0x191c   :  { %6067 = vpow2.f32 %v2448_v2 }
0x191e   :  { %2850 = vrot.lane.b32.xlu0 %v6613_v57, %s6169_s3 }
0x1924   :  { %v6066_v60 = vpop.eup %6065 }
0x1925   :  { %v2437_v63 = vmul.f32 1.0614054, %v6066_v60 }
0x1926   :  { %v6068_v11 = vpop.eup %6067 }
0x1927   :  { %v2438_v1 = vadd.f32 -1.4531521, %v2437_v63 }
0x1929   :  { %v2439_v3 = vmul.f32 %v6066_v60, %v2438_v1 }
0x192b   :  { %v2440_v24 = vadd.f32 1.4214138, %v2439_v3 }
0x192d   :  { %v2441_v23 = vmul.f32 %v6066_v60, %v2440_v24 }
0x192f   :  { %v2442_v15 = vadd.f32 -0.28449672, %v2441_v23 }
0x1931   :  { %v2443_v16 = vmul.f32 %v6066_v60, %v2442_v15 }
0x1933   :  { %v2444_v18 = vadd.f32 0.2548296, %v2443_v16 }
0x1935   :  { %v2445_v25 = vmul.f32 %v6066_v60, %v2444_v18 }
0x1937   :  { %v2450_v29 = vmul.f32 %v6068_v11, %v2445_v25 }
0x1939   :  { %v2451_v14 = vsub.f32 1.0, %v2450_v29 }
0x193b   :  { %v2452_v35 = vmul.f32 %v2451_v14, %v2432_v32 }
0x193d   :  { %v2453_v40 = vadd.f32 1.0, %v2452_v35 }
0x193f   :  { %v2454_v31 = vmul.f32 %v2453_v40, %v2429_v39 }
0x1941   :  { %5593 = vmatmul.mubr.msk.f32.vlgmr.msra.gmra.mrb[28].mxu1 %vm2460_vm9, %v2454_v31 }
0x1942   :  { %5613 = vmatprep.mubr.msk.f32.mxu1 %vm6167_vm1, %v6168_v13 }
0x198c   :  { %v2687_v51 = vpop.permute.xlu0 %2686  ;;  %v2853_v52 = vpop.permute.xlu1 %2852 }
0x198d   :  { %5607 = vmatpush3.xpose.msk.msra.mxu0 %vm177_vm2, %v2687_v51 }
0x198e   :  { %5616 = vmatprep.subr.mxu0 %v6168_v13 }
0x1990   :  { %5609 = vmatmul.mubr.msk.f32.vlgmr.msra.gmra.mrb[30].mxu0 %vm177_vm2, %v6613_v57  ;;  %v2851_v48 = vpop.permute.xlu0 %2850 }
0x1991   :  { %5617 = vmatpush3.xpose.msk.msra.mxu0 %vm177_vm2, %v2853_v52  ;;  %5618 = vmatprep.mubr.msk.f32.mxu0 %vm6167_vm1, %v6168_v13 }
0x1992   :  { %5626 = vmatprep.subr.mxu0 %v6168_v13 }
0x1994   :  { %5619 = vmatmul.mubr.msk.f32.vlgmr.msra.gmra.mrb[32].mxu0 %vm177_vm2, %v2851_v48 }
0x1995   :  { %5627 = vmatpush3.msra.mxu0 %v6296_v50  ;;  %5628 = vmatprep.mubr.msk.f32.mxu0 %vm6167_vm1, %v6168_v13 }
0x1996   :  { %5636 = vmatprep.subr.mxu0 %v6168_v13 }
0x1a14   :  { %v6638_v47 = vpop.f32.mrb[28].mxu1 }
0x1a15   :  { %v5594_v55 = vpop.f32.mrb[29].mxu1 }
0x1a16   :  { %v6113_v55 = vld [vmem:[#allocation2 + $0xa0] sm:$0xff] }
0x1a63   :  { %v2758_v49 = vpop.f32.mrb[30].mxu0 }
0x1a64   :  { %v2759_v58 = vadd.f32 %v6643_v56, %v2758_v49  ;;  %v5610_v53 = vpop.f32.mrb[31].mxu0 }
0x1a66   :  { %v2762_v60 = vsel %vm177_vm2, %v2759_v58, -inf }
0x1a67   :  { %2763 = vmax.xlane.f32.xlu1 %v2762_v60  ;;  %v2924_v50 = vpop.f32.mrb[32].mxu0 }
0x1a68   :  { %v2925_v62 = vadd.f32 %v6643_v56, %v2924_v50  ;;  %v5620_v63 = vpop.f32.mrb[33].mxu0 }
0x1a6a   :  { %v2928_v1 = vsel %vm177_vm2, %v2925_v62, -inf }
0x1a6b   :  { %2929 = vmax.xlane.f32.xlu0 %v2928_v1 }
0x1af4   :  { %v2764_v2 = vpop.xlane.xlu1 %2763 }
0x1af5   :  { %v2765_v3 = vsub.f32 %v2759_v58, %v2764_v2 }
0x1af7   :  { %v2766_v24 = vmul.f32 1.442695, %v2765_v3 }
0x1af8   :  { %v2930_v23 = vpop.xlane.xlu0 %2929 }
0x1af9   :  { %6069 = vpow2.f32 %v2766_v24  ;;  %v2931_v15 = vsub.f32 %v2925_v62, %v2930_v23 }
0x1afb   :  { %v2932_v16 = vmul.f32 1.442695, %v2931_v15 }
0x1afd   :  { %6071 = vpow2.f32 %v2932_v16 }
0x1b03   :  { %v6070_v18 = vpop.eup %6069 }
0x1b04   :  { %v2768_v25 = vsel %vm177_vm2, %v6070_v18, 0.0 }
0x1b05   :  { %2769 = vadd.xlane.f32.xlu0 %v2768_v25 }
0x1b07   :  { %v6072_v11 = vpop.eup %6071 }
0x1b08   :  { %v2934_v29 = vsel %vm177_vm2, %v6072_v11, 0.0 }
0x1b09   :  { %2935 = vadd.xlane.f32.xlu1 %v2934_v29 }
0x1b1a   :  { %2940 = vrot.lane.b32.xlu1 %v6613_v57, %s6172_s9 }
0x1b1b   :  { %2774 = vrot.lane.b32.xlu0 %v6613_v57, %s6173_s10 }
0x1b1e   :  { %3164 = vrot.lane.b32.xlu1 %v6613_v57, %s6174_s11 }
0x1b1f   :  { %3162 = vrot.lane.b32.xlu0 %v6613_v57, %s6175_s12 }
0x1b92   :  { %v2770_v14 = vpop.xlane.xlu0 %2769 }
0x1b93   :  { %6073 = vrcp.f32 %v2770_v14 }
0x1b96   :  { %v2936_v32 = vpop.xlane.xlu1 %2935  ;;  %v2775_v35 = vpop.permute.xlu0 %2774 }
0x1b97   :  { %6075 = vrcp.f32 %v2936_v32  ;;  %5612 = vmatpush3.msra.mxu1 %v2775_v35 }
0x1b98   :  { %5621 = vmatprep.subr.mxu1 %v6168_v13 }
0x1b9a   :  { %v2941_v31 = vpop.permute.xlu1 %2940  ;;  %v3163_v62 = vpop.permute.xlu0 %3162 }
0x1b9d   :  { %v6074_v39 = vpop.eup %6073 }
0x1b9e   :  { %v2772_v40 = vmul.f32 %v6074_v39, %v6070_v18  ;;  %v3165_v60 = vpop.permute.xlu1 %3164 }
0x1ba0   :  { %5614 = vmatmul.mubr.msk.f32.vlgmr.msra.gmra.mrb[30].mxu1 %vm177_vm2, %v2772_v40 }
0x1ba1   :  { %v6076_v51 = vpop.eup %6075  ;;  %5622 = vmatpush3.msra.mxu1 %v2941_v31  ;;  %5623 = vmatprep.mubr.msk.f32.mxu1 %vm6167_vm1, %v6168_v13 }
0x1ba2   :  { %v2938_v52 = vmul.f32 %v6076_v51, %v6072_v11  ;;  %5631 = vmatprep.subr.mxu1 %v6168_v13 }
0x1ba4   :  { %5624 = vmatmul.mubr.msk.f32.vlgmr.msra.gmra.mrb[32].mxu1 %vm177_vm2, %v2938_v52  ;;  %v2939_v48 = vadd.f32 %v2938_v52, %v2772_v40 }
0x1ba5   :  { %5632 = vmatpush3.msra.mxu1 %v6113_v55  ;;  %5633 = vmatprep.mubr.msk.f32.mxu1 %vm6167_vm1, %v6168_v13 }
0x1ba6   :  { %5641 = vmatprep.subr.mxu1 %v6168_v13 }
0x1c73   :  { %v2846_v49 = vpop.f32.mrb[30].mxu1 }
0x1c74   :  { %v5615_v58 = vpop.f32.mrb[31].mxu1  ;;  %5634 = vmatmul.mubr.msk.f32.vlgmr.msra.gmra.mrb[34].mxu1 %vm177_vm2, %v2846_v49 }
0x1c75   :  { %5643 = vmatprep.mubr.msk.f32.mxu1 %vm6167_vm1, %v6168_v13 }
0x1c77   :  { %v3012_v53 = vpop.f32.mrb[32].mxu1 }
0x1c78   :  { %v5625_v50 = vpop.f32.mrb[33].mxu1  ;;  %5629 = vmatmul.mubr.msk.f32.vlgmr.msra.gmra.mrb[34].mxu0 %vm177_vm2, %v3012_v53 }
0x1c79   :  { %5637 = vmatpush3.xpose.msk.msra.mxu0 %vm177_vm2, %v3165_v60  ;;  %5638 = vmatprep.mubr.msk.f32.mxu0 %vm6167_vm1, %v6168_v13 }
0x1c7a   :  { %5646 = vmatprep.subr.mxu0 %v6168_v13 }
0x1c7c   :  { %5639 = vmatmul.mubr.msk.f32.vlgmr.msra.gmra.mrb[36].mxu0 %vm177_vm2, %v3163_v62 }
0x1c7d   :  { %5647 = vmatpush3.msra.mxu0 %v6338_v34  ;;  %5648 = vmatprep.mubr.msk.f32.mxu0 %vm6167_vm1, %v6168_v13 }
0x1c7e   :  { %5656 = vmatprep.subr.mxu0 %v6168_v13 }
0x1d47   :  { %v3158_v63 = vpop.f32.mrb[34].mxu1 }
0x1d48   :  { %v5635_v1 = vpop.f32.mrb[35].mxu1 }
0x1d4b   :  { %v3085_v2 = vpop.f32.mrb[34].mxu0 }
0x1d4c   :  { %v3159_v3 = vadd.f32 %v3158_v63, %v3085_v2  ;;  %v5630_v24 = vpop.f32.mrb[35].mxu0 }
0x1d4f   :  { %v3236_v23 = vpop.f32.mrb[36].mxu0 }
0x1d50   :  { %v3237_v15 = vadd.f32 %v6643_v56, %v3236_v23  ;;  %v5640_v16 = vpop.f32.mrb[37].mxu0 }
0x1d52   :  { %v3240_v18 = vsel %vm177_vm2, %v3237_v15, -inf }
0x1d53   :  { %3241 = vmax.xlane.f32.xlu1 %v3240_v18 }
0x1d64   :  { %3404 = vrot.lane.b32.xlu1 %v6613_v57, %s6178_s15 }
0x1d68   :  { %3402 = vrot.lane.b32.xlu1 %v6613_v57, %s6177_s14 }
0x1de0   :  { %v3242_v34 = vpop.xlane.xlu1 %3241 }
0x1de1   :  { %v3243_v25 = vsub.f32 %v3237_v15, %v3242_v34 }
0x1de3   :  { %v3244_v11 = vmul.f32 1.442695, %v3243_v25 }
0x1de4   :  { %v3405_v40 = vpop.permute.xlu1 %3404 }
0x1de5   :  { %6077 = vpow2.f32 %v3244_v11 }
0x1de8   :  { %v3403_v52 = vpop.permute.xlu1 %3402 }
0x1def   :  { %v6078_v29 = vpop.eup %6077 }
0x1df0   :  { %v3246_v14 = vsel %vm177_vm2, %v6078_v29, 0.0 }
0x1df1   :  { %3247 = vadd.xlane.f32.xlu0 %v3246_v14 }
0x1e07   :  { %3252 = vrot.lane.b32.xlu0 %v6613_v57, %s6176_s13 }
0x1e7e   :  { %v3248_v32 = vpop.xlane.xlu0 %3247 }
0x1e7f   :  { %6079 = vrcp.f32 %v3248_v32 }
0x1e82   :  { %v3253_v35 = vpop.permute.xlu0 %3252 }
0x1e83   :  { %5642 = vmatpush3.msra.mxu1 %v3253_v35 }
0x1e84   :  { %5651 = vmatprep.subr.mxu1 %v6168_v13 }
0x1e89   :  { %v6080_v39 = vpop.eup %6079 }
0x1e8a   :  { %v3250_v31 = vmul.f32 %v6080_v39, %v6078_v29  ;;  %v6114_v29 = vld [vmem:[#allocation2 + $0x103] ss:$0 sm:$0xff] }
0x1e8c   :  { %5644 = vmatmul.mubr.msk.f32.vlgmr.msra.gmra.mrb[36].mxu1 %vm177_vm2, %v3250_v31  ;;  %v3251_v51 = vadd.f32 %v3250_v31, %v2939_v48 }
0x1e8d   :  { %5652 = vmatpush3.xpose.msk.msra.mxu1 %vm177_vm2, %v3405_v40  ;;  %5653 = vmatprep.mubr.msk.f32.mxu1 %vm6167_vm1, %v6168_v13 }
0x1e8e   :  { %5661 = vmatprep.subr.mxu1 %v6168_v13 }
0x1e90   :  { %5654 = vmatmul.mubr.msk.f32.vlgmr.msra.gmra.mrb[38].mxu1 %vm177_vm2, %v3403_v52 }
0x1e91   :  { %5662 = vmatpush3.msra.mxu1 %v6350_v46  ;;  %5663 = vmatprep.mubr.msk.f32.mxu1 %vm6167_vm1, %v6168_v13 }
0x1e92   :  { %5877 = vmatprep.subr.bf16.mxu1 %v6363_v6 }
0x1f5f   :  { %v3324_v55 = vpop.f32.mrb[36].mxu1 }
0x1f60   :  { %v5645_v49 = vpop.f32.mrb[37].mxu1  ;;  %5649 = vmatmul.mubr.msk.f32.vlgmr.msra.gmra.mrb[38].mxu0 %vm177_vm2, %v3324_v55 }
0x1f61   :  { %5658 = vmatprep.mubr.msk.f32.mxu0 %vm6167_vm1, %v6168_v13 }
0x1f63   :  { %v3476_v48 = vpop.f32.mrb[38].mxu1 }
0x1f64   :  { %v3477_v58 = vadd.f32 %v6643_v56, %v3476_v48  ;;  %v5655_v53 = vpop.f32.mrb[39].mxu1 }
0x1f66   :  { %v3480_v60 = vsel %vm177_vm2, %v3477_v58, -inf }
0x1f67   :  { %3481 = vmax.xlane.f32.xlu0 %v3480_v60 }
0x1f7d   :  { %3492 = vrot.lane.b32.xlu0 %v6613_v57, %s6179_s16 }
0x1ff4   :  { %v3482_v46 = vpop.xlane.xlu0 %3481 }
0x1ff5   :  { %v3483_v50 = vsub.f32 %v3477_v58, %v3482_v46 }
0x1ff7   :  { %v3484_v62 = vmul.f32 1.442695, %v3483_v50 }
0x1ff8   :  { %v3493_v63 = vpop.permute.xlu0 %3492 }
0x1ff9   :  { %6081 = vpow2.f32 %v3484_v62  ;;  %5657 = vmatpush3.msra.mxu0 %v3493_v63 }
0x1ffa   :  { %5870 = vmatprep.subr.bf16.mxu0 %v6166_v10 }
0x2003   :  { %v6082_v1 = vpop.eup %6081 }
0x2004   :  { %v3486_v2 = vsel %vm177_vm2, %v6082_v1, 0.0 }
0x2005   :  { %3487 = vadd.xlane.f32.xlu1 %v3486_v2 }
0x2033   :  { %v3397_v56 = vpop.f32.mrb[38].mxu0 }
0x2034   :  { %v3401_v24 = vadd.f32 %v3397_v56, %v3159_v3  ;;  %v5650_v23 = vpop.f32.mrb[39].mxu0 }
0x2092   :  { %v3488_v15 = vpop.xlane.xlu1 %3487 }
0x2093   :  { %6083 = vrcp.f32 %v3488_v15  ;;  %v6765_v15 = vld [vmem:[%s6928_s2 + $0x18] sm:$0xff]  ;;  %s6182_s2 = smov 32  }
0x209d   :  { %v6084_v16 = vpop.eup %6083 }
0x209e   :  { %v3490_v18 = vmul.f32 %v6084_v16, %v6082_v1 }
0x20a0   :  { %5659 = vmatmul.mubr.msk.f32.vlgmr.msra.gmra.mrb[40].mxu0 %vm177_vm2, %v3490_v18  ;;  %v6711_v57 = vadd.f32 %v3490_v18, %v3251_v51 }
0x20a1   :  { %5872 = vmatpush3.bf16.msra.mxu0 %v6382_v17  ;;  %5674 = vmatprep.mubr.msk.f32.mxu0 %vm6167_vm1, %v6168_v13 }
0x20a2   :  { %5873 = vmatprep.subr.bf16.mxu0 %v6166_v10 }
0x20a5   :  { %5875 = vmatpush3.bf16.msra.mxu0 %v6386_v22 }
0x20a6   :  { %5884 = vmatprep.subr.bf16.mxu0 %v6166_v10 }
0x2173   :  { %v3564_v3 = vpop.f32.mrb[40].mxu0 }
0x2174   :  { %v5660_v34 = vpop.f32.mrb[41].mxu0  ;;  %5664 = vmatmul.mubr.msk.f32.vlgmr.msra.gmra.mrb[40].mxu1 %vm177_vm2, %v3564_v3 }
0x2175   :  { %5879 = vmatpush3.bf16.msra.mxu1 %v6363_v6 }
0x2176   :  { %5881 = vmatprep.subr.bf16.mxu1 %v6367_v8 }
0x2179   :  { %5883 = vmatpush3.bf16.msra.mxu1 %v6367_v8  ;;  %v5159_v8 = vld [vmem:[%s6927_s1 + $0x10] sm:$0xff] }
0x217a   :  { %5888 = vmatprep.subr.bf16.mxu1 %v6166_v10  ;;  %5685 = vmatprep.mubr.msk.f32.mxu1 %vm71_vm0, %v5159_v8 }
0x2247   :  { %v3637_v17 = vpop.f32.mrb[40].mxu1 }
0x2248   :  { %v3641_v25 = vadd.f32 %v3637_v17, %v3401_v24  ;;  %v5665_v11 = vpop.f32.mrb[41].mxu1 }
0x224a   :  { %v3648_v14 = vadd.f32 %v6114_v29, %v3641_v25 }
0x224c   :  { %v3649_v22 = vadd.f32 %v3648_v14, %v6586_v27  ;;  %v5160_v27 = vld [vmem:[%s6927_s1 + $0x18] sm:$0xf] }
0x224d   :  { %5686 = vmatmul.mubr.msk.f32.vlgmr.msra.gmra.mrb[42].mxu1 %vm71_vm0, %v5160_v27 }
0x224e   :  { %v3652_v32 = vsel %vm71_vm0, %v3649_v22, 0.0  ;;  %5699 = vmatprep.mubr.msk.f32.mxu1 %vm6167_vm1, %v6168_v13 }
0x224f   :  { %3653 = vadd.xlane.f32.xlu1 %v3652_v32 }
0x22dc   :  { %v3654_v35 = vpop.xlane.xlu1 %3653 }
0x22dd   :  { %v3655_v39 = vmul.f32 0.03125, %v3654_v35 }
0x22df   :  { %v3656_v40 = vsub.f32 %v3649_v22, %v3655_v39 }
0x22e1   :  { %v3657_v6 = vmul.f32 %v3656_v40, %v3656_v40 }
0x22e3   :  { %v3658_v31 = vsel %vm71_vm0, %v3657_v6, 0.0 }
0x22e4   :  { %3659 = vadd.xlane.f32.xlu1 %v3658_v31 }
0x2320   :  { %v5687_v60 = vpop.f32.mrb[42].mxu1 }
0x2321   :  { %v3836_v46 = vadd.f32 %v5687_v60, %v6402_v37  ;;  %v3830_v50 = vpop.f32.mrb[43].mxu1 }
0x2322   :  { %v3831_v62 = vadd.f32 %v6402_v37, %v3830_v50 }
0x2324   :  { %v6747_v63 = vpack.i.bf16 %v3836_v46, %v3831_v62  ;;  %v5885_v1 = vpack.c.bf16 %v3836_v46, %v3831_v62 }
0x2326   :  { %5991 = vrot.lane.b32.xlu0 %v6747_v63, %s6170_s5 }
0x2371   :  { %v3660_v51 = vpop.xlane.xlu1 %3659 }
0x2372   :  { %v3661_v52 = vmul.f32 0.03125, %v3660_v51 }
0x2374   :  { %v3662_v55 = vadd.f32 1e-05, %v3661_v52 }
0x2376   :  { %6085 = vrsqrt.f32 %v3662_v55 }
0x2380   :  { %v6086_v49 = vpop.eup %6085 }
0x2381   :  { %v3664_v48 = vmul.f32 %v6086_v49, %v3656_v40 }
0x2383   :  { %v3669_v58 = vmul.f32 %v6390_v30, %v3664_v48 }
0x2385   :  { %v6739_v53 = vadd.f32 %v6392_v33, %v3669_v58 }
0x2387   :  { %5675 = vmatmul.mubr.msk.f32.vlgmr.msra.gmra.mrb[42].mxu0 %vm71_vm0, %v6739_v53 }
0x2388   :  { %5692 = vmatprep.mubr.msk.f32.mxu0 %vm6167_vm1, %v6168_v13  ;;  %5887 = vmatpush3.bf16.xpose.msk.msra.mxu0 %vm6408_vm3, %v5885_v1 }
0x2389   :  { %5896 = vmatprep.subr.bf16.mxu0 %v6166_v10 }
0x2398   :  { %v5992_v30 = vpop.permute.xlu0 %5991 }
0x2399   :  { %v5994_v33 = vunpack.i.h.bf16 %v5992_v30  ;;  %v5993_v2 = vunpack.i.l.bf16 %v5992_v30 }
0x239b   :  { %v5889_v56 = vpack.c.bf16 %v5994_v33, %v5993_v2 }
0x239d   :  { %5891 = vmatpush3.bf16.msk.msra.mxu1 %vm6440_vm7, %v5889_v56 }
0x239e   :  { %5892 = vmatprep.subr.bf16.mxu1 %v6166_v10 }
0x245a   :  { %v3749_v37 = vpop.f32.mrb[42].mxu0 }
0x245b   :  { %v3750_v24 = vadd.f32 %v6419_v45, %v3749_v37  ;;  %v5676_v23 = vpop.f32.mrb[43].mxu0 }
0x245d   :  { %4010 = vrot.lane.b32.xlu0 %v3750_v24, %s6169_s3  ;;  %5693 = vmatmul.mubr.msk.f32.vlgmr.msra.gmra.mrb[44].mxu0 %vm177_vm2, %v3750_v24 }
0x245e   :  { %5713 = vmatprep.mubr.msk.f32.mxu0 %vm6167_vm1, %v6168_v13 }
0x24cf   :  { %v4011_v31 = vpop.permute.xlu0 %4010 }
0x2530   :  { %v3914_v16 = vpop.f32.mrb[44].mxu0 }
0x2531   :  { %v3915_v18 = vadd.f32 %v6765_v15, %v3914_v16  ;;  %v5694_v3 = vpop.f32.mrb[45].mxu0 }
0x2533   :  { %v3918_v34 = vsel %vm1408_vm4, %v3915_v18, -inf }
0x2534   :  { %3919 = vmax.xlane.f32.xlu1 %v3918_v34 }
0x25c1   :  { %v3920_v45 = vpop.xlane.xlu1 %3919 }
0x25c2   :  { %v3921_v17 = vsub.f32 %v3915_v18, %v3920_v45 }
0x25c4   :  { %v3922_v25 = vmul.f32 1.442695, %v3921_v17 }
0x25c6   :  { %6087 = vpow2.f32 %v3922_v25 }
0x25d0   :  { %v6088_v11 = vpop.eup %6087 }
0x25d1   :  { %v3924_v29 = vsel %vm1408_vm4, %v6088_v11, 0.0 }
0x25d2   :  { %3925 = vadd.xlane.f32.xlu1 %v3924_v29 }
0x25e3   :  { %5996 = vrot.lane.b32.xlu1 %v6747_v63, %s6169_s3  ;;  %s6183_s3 = smov [#allocation5]  }
0x265f   :  { %v3926_v14 = vpop.xlane.xlu1 %3925 }
0x2660   :  { %6089 = vrcp.f32 %v3926_v14 }
0x2663   :  { %v5997_v22 = vpop.permute.xlu1 %5996 }
0x2664   :  { %v5999_v32 = vunpack.i.h.bf16 %v5997_v22  ;;  %v5998_v35 = vunpack.i.l.bf16 %v5997_v22 }
0x2666   :  { %v5893_v6 = vpack.c.bf16 %v5999_v32, %v5998_v35 }
0x266a   :  { %v6090_v39 = vpop.eup %6089 }
0x266b   :  { %v6772_v40 = vmul.f32 %v6090_v39, %v6088_v11 }
0x266d   :  { %5700 = vmatmul.mubr.msk.f32.vlgmr.msra.gmra.mrb[44].mxu1 %vm1408_vm4, %v6772_v40 }
0x266e   :  { %5895 = vmatpush3.bf16.xpose.msk.msra.mxu1 %vm6408_vm3, %v5893_v6  ;;  %5706 = vmatprep.mubr.msk.f32.mxu1 %vm6167_vm1, %v6168_v13 }
0x266f   :  { %5721 = vmatprep.subr.mxu1 %v6168_v13 }
0x2675   :  { %5707 = vmatmul.mubr.msk.f32.vlgmr.msra.gmra.mrb[46].mxu1 %vm177_vm2, %v4011_v31 }
0x2676   :  { %5722 = vmatpush3.msra.mxu1 %v6459_v12  ;;  %5723 = vmatprep.mubr.msk.f32.mxu1 %vm6167_vm1, %v6168_v13 }
0x2677   :  { %5904 = vmatprep.subr.bf16.mxu1 %v6166_v10 }
0x2740   :  { %v4006_v8 = vpop.f32.mrb[44].mxu1 }
0x2741   :  { %v5701_v27 = vpop.f32.mrb[45].mxu1  ;;  %5724 = vmatmul.mubr.msk.f32.vlgmr.msra.gmra.mrb[48].mxu1 %vm177_vm2, %v4006_v8 }
0x2742   :  { %5737 = vmatprep.mubr.msk.f32.mxu1 %vm6167_vm1, %v6168_v13 }
0x2748   :  { %v4088_v51 = vpop.f32.mrb[46].mxu1 }
0x2749   :  { %v4089_v52 = vadd.f32 %v6765_v15, %v4088_v51  ;;  %v5708_v55 = vpop.f32.mrb[47].mxu1 }
0x274b   :  { %v4092_v49 = vsel %vm1408_vm4, %v4089_v52, -inf }
0x274c   :  { %4093 = vmax.xlane.f32.xlu0 %v4092_v49 }
0x2762   :  { %6001 = vrot.lane.b32.xlu0 %v6747_v63, %s6171_s6  ;;  %s5085_s6 = sshll.u32 %s6183_s3, 4  ;;  %s5086_s6 = int_to_ptr.vmem [resolvable:$true] %s5085_s6 }
0x2763   :  { %s6137_s8 = scalar_lea.vmem %s5086_s6, 256  ;;  %p6142_p9 = scmp.lt.s32.totalorder %s5086_s6, %s5086_s6 }
0x2764   :  { %p6138_p8 = scmp.ne.s32.totalorder %s5086_s6, %s6137_s8  ;;  %p6143_p10 = scmp.lt.s32.totalorder %s6137_s8, %s6137_s8 }
0x2766   :  { %4330 = vrot.lane.b32.xlu0 %v3750_v24, %s6175_s12  ;;  %p6144_p11 = por %p6143_p10, %p6142_p9 }
0x2768   :  { %p6145_p12 = pnand %p6144_p11, %p6138_p8 }
0x276a   :  { %6011 = vrot.lane.b32.xlu0 %v6747_v63, %s6177_s14 }
0x276e   :  { %4578 = vrot.lane.b32.xlu0 %v3750_v24, %s6177_s14 }
0x27d9   :  { %v4094_v12 = vpop.xlane.xlu0 %4093 }
0x27da   :  { %v4095_v48 = vsub.f32 %v4089_v52, %v4094_v12 }
0x27dc   :  { %v4096_v58 = vmul.f32 1.442695, %v4095_v48 }
0x27dd   :  { %v6002_v60 = vpop.permute.xlu0 %6001 }
0x27de   :  { %6091 = vpow2.f32 %v4096_v58  ;;  %v6004_v46 = vunpack.i.h.bf16 %v6002_v60  ;;  %v6003_v50 = vunpack.i.l.bf16 %v6002_v60 }
0x27e0   :  { %v5897_v62 = vpack.c.bf16 %v6004_v46, %v6003_v50 }
0x27e1   :  { %v4331_v16 = vpop.permute.xlu0 %4330 }
0x27e2   :  { %5899 = vmatpush3.bf16.msk.msra.mxu0 %vm6440_vm7, %v5897_v62 }
0x27e3   :  { %5716 = vmatprep.subr.mxu0 %v6168_v13 }
0x27e5   :  { %v6012_v17 = vpop.permute.xlu0 %6011 }
0x27e6   :  { %v6013_v11 = vunpack.i.l.bf16 %v6012_v17 }
0x27e8   :  { %v6092_v1 = vpop.eup %6091 }
0x27e9   :  { %v4098_v30 = vsel %vm1408_vm4, %v6092_v1, 0.0  ;;  %v4579_v14 = vpop.permute.xlu0 %4578 }
0x27ea   :  { %4099 = vadd.xlane.f32.xlu1 %v4098_v30 }
0x27fb   :  { %6006 = vrot.lane.b32.xlu1 %v6747_v63, %s6175_s12 }
0x2814   :  { %v4326_v33 = vpop.f32.mrb[48].mxu1 }
0x2815   :  { %v5725_v2 = vpop.f32.mrb[49].mxu1 }
0x2877   :  { %v4100_v56 = vpop.xlane.xlu1 %4099 }
0x2878   :  { %6093 = vrcp.f32 %v4100_v56 }
0x287b   :  { %v6007_v23 = vpop.permute.xlu1 %6006 }
0x287c   :  { %v6009_v18 = vunpack.i.h.bf16 %v6007_v23  ;;  %v6008_v3 = vunpack.i.l.bf16 %v6007_v23 }
0x287e   :  { %v5901_v34 = vpack.c.bf16 %v6009_v18, %v6008_v3 }
0x2882   :  { %v6094_v37 = vpop.eup %6093 }
0x2883   :  { %v6803_v24 = vmul.f32 %v6094_v37, %v6092_v1 }
0x2885   :  { %5714 = vmatmul.mubr.msk.f32.vlgmr.msra.gmra.mrb[46].mxu0 %vm1408_vm4, %v6803_v24  ;;  %v4103_v37 = vadd.f32 %v6803_v24, %v6772_v40 }
0x2886   :  { %5717 = vmatpush3.msra.mxu0 %v6484_v26  ;;  %5718 = vmatprep.mubr.msk.f32.mxu0 %vm6167_vm1, %v6168_v13  ;;  %v6014_v26 = vunpack.i.h.bf16 %v6012_v17 }
0x2887   :  { %5900 = vmatprep.subr.bf16.mxu0 %v6166_v10 }
0x2888   :  { %v5909_v29 = vpack.c.bf16 %v6014_v26, %v6013_v11 }
0x2958   :  { %v4180_v45 = vpop.f32.mrb[46].mxu0 }
0x2959   :  { %v5715_v25 = vpop.f32.mrb[47].mxu0  ;;  %5719 = vmatmul.mubr.msk.f32.vlgmr.msra.gmra.mrb[48].mxu0 %vm177_vm2, %v4180_v45 }
0x295a   :  { %5903 = vmatpush3.bf16.xpose.msk.msra.mxu0 %vm6408_vm3, %v5901_v34  ;;  %5730 = vmatprep.mubr.msk.f32.mxu0 %vm6167_vm1, %v6168_v13 }
0x295b   :  { %5908 = vmatprep.subr.bf16.mxu0 %v6166_v10 }
0x2961   :  { %5731 = vmatmul.mubr.msk.f32.vlgmr.msra.gmra.mrb[50].mxu0 %vm177_vm2, %v4331_v16 }
0x2962   :  { %5911 = vmatpush3.bf16.xpose.msk.msra.mxu0 %vm6408_vm3, %v5909_v29  ;;  %5749 = vmatprep.mubr.msk.f32.mxu0 %vm6167_vm1, %v6168_v13 }
0x2963   :  { %5916 = vmatprep.subr.bf16.mxu0 %v6166_v10 }
0x2969   :  { %5750 = vmatmul.mubr.msk.f32.vlgmr.msra.gmra.mrb[52].mxu0 %vm177_vm2, %v4579_v14 }
0x296a   :  { %5918 = vmatpush3.bf16.msra.mxu0 %v6561_v36  ;;  %5772 = vmatprep.mubr.msk.f32.mxu0 %vm6167_vm1, %v6168_v13 }
0x296b   :  { %5919 = vmatprep.subr.bf16.mxu0 %v6166_v10 }
0x296e   :  { %5921 = vmatpush3.bf16.msra.mxu0 %v6565_v7 }
0x2a2c   :  { %v4253_v22 = vpop.f32.mrb[48].mxu0 }
0x2a2d   :  { %v6829_v42 = vadd.f32 %v4326_v33, %v4253_v22  ;;  %v5720_v32 = vpop.f32.mrb[49].mxu0 }
0x2a34   :  { %v4408_v35 = vpop.f32.mrb[50].mxu0 }
0x2a35   :  { %v4409_v39 = vadd.f32 %v6765_v15, %v4408_v35  ;;  %v5732_v6 = vpop.f32.mrb[51].mxu0 }
0x2a37   :  { %v4412_v31 = vsel %vm1408_vm4, %v4409_v39, -inf }
0x2a38   :  { %4413 = vmax.xlane.f32.xlu1 %v4412_v31 }
0x2a3c   :  { %v4656_v8 = vpop.f32.mrb[52].mxu0 }
0x2a3d   :  { %v4657_v36 = vadd.f32 %v6765_v15, %v4656_v8  ;;  %v5751_v27 = vpop.f32.mrb[53].mxu0 }
0x2a3f   :  { %v4660_v51 = vsel %vm1408_vm4, %v4657_v36, -inf }
0x2a40   :  { %4661 = vmax.xlane.f32.xlu1 %v4660_v51 }
0x2ac5   :  { %v4414_v52 = vpop.xlane.xlu1 %4413 }
0x2ac6   :  { %v4415_v7 = vsub.f32 %v4409_v39, %v4414_v52 }
0x2ac8   :  { %v4416_v55 = vmul.f32 1.442695, %v4415_v7 }
0x2aca   :  { %6095 = vpow2.f32 %v4416_v55 }
0x2acd   :  { %v4662_v49 = vpop.xlane.xlu1 %4661 }
0x2ace   :  { %v4663_v12 = vsub.f32 %v4657_v36, %v4662_v49 }
0x2ad0   :  { %v4664_v48 = vmul.f32 1.442695, %v4663_v12 }
0x2ad2   :  { %6097 = vpow2.f32 %v4664_v48 }
0x2ad4   :  { %v6096_v58 = vpop.eup %6095 }
0x2ad5   :  { %v4418_v60 = vsel %vm1408_vm4, %v6096_v58, 0.0 }
0x2ad6   :  { %4419 = vadd.xlane.f32.xlu0 %v4418_v60 }
0x2adc   :  { %v6098_v46 = vpop.eup %6097 }
0x2add   :  { %v4666_v50 = vsel %vm1408_vm4, %v6098_v46, 0.0 }
0x2ade   :  { %4667 = vadd.xlane.f32.xlu1 %v4666_v50 }
0x2aec   :  { %6016 = vrot.lane.b32.xlu0 %v6747_v63, %s6174_s11 }
0x2aef   :  { %6021 = vrot.lane.b32.xlu1 %v6747_v63, %s6178_s15 }
0x2b63   :  { %v4420_v15 = vpop.xlane.xlu0 %4419 }
0x2b64   :  { %6099 = vrcp.f32 %v4420_v15 }
0x2b67   :  { %v6017_v62 = vpop.permute.xlu0 %6016 }
0x2b68   :  { %v6019_v1 = vunpack.i.h.bf16 %v6017_v62  ;;  %v6018_v30 = vunpack.i.l.bf16 %v6017_v62 }
0x2b6a   :  { %v5905_v33 = vpack.c.bf16 %v6019_v1, %v6018_v30 }
0x2b6b   :  { %v4668_v63 = vpop.xlane.xlu1 %4667 }
0x2b6c   :  { %5907 = vmatpush3.bf16.msk.msra.mxu1 %vm6440_vm7, %v5905_v33  ;;  %6101 = vrcp.f32 %v4668_v63 }
0x2b6d   :  { %5740 = vmatprep.subr.mxu1 %v6168_v13 }
0x2b6e   :  { %v6100_v2 = vpop.eup %6099 }
0x2b6f   :  { %v4422_v56 = vmul.f32 %v6100_v2, %v6096_v58  ;;  %v6022_v16 = vpop.permute.xlu1 %6021 }
0x2b70   :  { %v6024_v18 = vunpack.i.h.bf16 %v6022_v16  ;;  %v6023_v3 = vunpack.i.l.bf16 %v6022_v16 }
0x2b71   :  { %5738 = vmatmul.mubr.msk.f32.vlgmr.msra.gmra.mrb[50].mxu1 %vm1408_vm4, %v4422_v56  ;;  %v6847_v23 = vadd.f32 %v4422_v56, %v4103_v37 }
0x2b72   :  { %5741 = vmatpush3.msra.mxu1 %v6527_v59  ;;  %5742 = vmatprep.mubr.msk.f32.mxu1 %vm6167_vm1, %v6168_v13  ;;  %v5913_v45 = vpack.c.bf16 %v6024_v18, %v6023_v3 }
0x2b73   :  { %5912 = vmatprep.subr.bf16.mxu1 %v6166_v10 }
0x2b76   :  { %v6102_v34 = vpop.eup %6101 }
0x2b77   :  { %v6858_v59 = vmul.f32 %v6102_v34, %v6098_v46 }
0x2c44   :  { %v4500_v17 = vpop.f32.mrb[50].mxu1 }
0x2c45   :  { %v5739_v40 = vpop.f32.mrb[51].mxu1  ;;  %5743 = vmatmul.mubr.msk.f32.vlgmr.msra.gmra.mrb[52].mxu1 %vm177_vm2, %v4500_v17 }
0x2c46   :  { %5915 = vmatpush3.bf16.msk.msra.mxu1 %vm6440_vm7, %v5913_v45  ;;  %5756 = vmatprep.mubr.msk.f32.mxu1 %vm6167_vm1, %v6168_v13 }
0x2c47   :  { %5759 = vmatprep.subr.mxu1 %v6168_v13 }
0x2c49   :  { %5757 = vmatmul.mubr.msk.f32.vlgmr.msra.gmra.mrb[54].mxu1 %vm1408_vm4, %v6858_v59 }
0x2c4a   :  { %5760 = vmatpush3.msra.mxu1 %v6542_v43  ;;  %5761 = vmatprep.mubr.msk.f32.mxu1 %vm6167_vm1, %v6168_v13  ;;  %v6878_v43 = vld [vmem:[#allocation2 + $0x10c] ss:$0 sm:$0xff] }
0x2c4b   :  { %5922 = vmatprep.subr.bf16.mxu1 %v6166_v10 }
0x2d18   :  { %v4573_v24 = vpop.f32.mrb[52].mxu1 }
0x2d19   :  { %v4577_v0 = vadd.f32 %v4573_v24, %v6829_v42  ;;  %v5744_v25 = vpop.f32.mrb[53].mxu1 }
0x2d1c   :  { %v4748_v26 = vpop.f32.mrb[54].mxu1 }
0x2d1d   :  { %v5758_v11 = vpop.f32.mrb[55].mxu1  ;;  %5762 = vmatmul.mubr.msk.f32.vlgmr.msra.gmra.mrb[56].mxu1 %vm177_vm2, %v4748_v26 }
0x2d1e   :  { %5924 = vmatpush3.bf16.msra.mxu1 %v6593_v4  ;;  %5791 = vmatprep.mubr.msk.f32.mxu1 %vm6167_vm1, %v6168_v13  ;;  %v2531_v13 = vadd.f32 %v6878_v43, %v6638_v47  ;;  %v2318_v47 = vmul.f32 0.25, %v6531_v61 }
0x2d1f   :  { %5925 = vmatprep.subr.bf16.mxu1 %v6166_v10 }
0x2d22   :  { %5927 = vmatpush3.bf16.msra.mxu1 %v6597_v21 }
0x2d23   :  { %5928 = vmatprep.subr.bf16.mxu1 %v6166_v10 }
0x2d26   :  { %5930 = vmatpush3.bf16.msra.mxu1 %v6601_v38  ;;  %v2534_v38 = vadd.f32 %v2531_v13, %v6575_v20 }
0x2d27   :  { %5931 = vmatprep.subr.bf16.mxu1 %v6166_v10 }
0x2d28   :  { %v2537_v10 = vsel %vm71_vm0, %v2534_v38, 0.0 }
0x2d2a   :  { %5933 = vmatpush3.bf16.msra.mxu1 %v6605_v41 }
0x2df0   :  { %v4821_v29 = vpop.f32.mrb[56].mxu1 }
0x2df1   :  { %v4825_v14 = vadd.f32 %v4821_v29, %v4577_v0  ;;  %v5763_v4 = vpop.f32.mrb[57].mxu1 }
0x2df2   :  { %v4671_v4 = vadd.f32 %v6858_v59, %v6847_v23  ;;  %v5157_v23 = vld [vmem:[#allocation2 + $0x10e] ss:$0 sm:$0xff] }
0x2df3   :  { %v4832_v22 = vadd.f32 %v6554_v28, %v4825_v14  ;;  %v1132_v14 = vmul.f32 0.25, %v6355_v54 }
0x2df4   :  { %v4826_v13 = vmul.f32 0.25, %v4671_v4 }
0x2df5   :  { %v4833_v21 = vadd.f32 %v4832_v22, %v6739_v53 }
0x2df7   :  { %v4836_v42 = vsel %vm71_vm0, %v4833_v21, 0.0 }
0x2df8   :  { %4837 = vadd.xlane.f32.xlu0 %v4836_v42 }
0x2dfc   :  { %2538 = vadd.xlane.f32.xlu0 %v2537_v10 }
0x2e85   :  { %v4838_v41 = vpop.xlane.xlu0 %4837 }
0x2e86   :  { %v4839_v32 = vmul.f32 0.03125, %v4838_v41 }
0x2e88   :  { %v4840_v35 = vsub.f32 %v4833_v21, %v4839_v32 }
0x2e89   :  { %v2539_v45 = vpop.xlane.xlu0 %2538 }
0x2e8a   :  { %v4841_v39 = vmul.f32 %v4840_v35, %v4840_v35  ;;  %v2540_v17 = vmul.f32 0.03125, %v2539_v45 }
0x2e8c   :  { %v4842_v6 = vsel %vm71_vm0, %v4841_v39, 0.0  ;;  %v2541_v24 = vsub.f32 %v2534_v38, %v2540_v17 }
0x2e8d   :  { %4843 = vadd.xlane.f32.xlu1 %v4842_v6  ;;  %v3642_v6 = vmul.f32 0.25, %v6711_v57 }
0x2e8e   :  { %v2542_v29 = vmul.f32 %v2541_v24, %v2541_v24 }
0x2e9e   :  { %2565 = vrot.lane.b32.xlu1 %v2318_v47, %s6179_s16 }
0x2f1a   :  { %v4844_v28 = vpop.xlane.xlu1 %4843 }
0x2f1b   :  { %v4845_v53 = vmul.f32 0.03125, %v4844_v28 }
0x2f1d   :  { %v4846_v31 = vadd.f32 1e-05, %v4845_v53 }
0x2f1e   :  { %v2566_v53 = vpop.permute.xlu1 %2565 }
0x2f1f   :  { %6103 = vrsqrt.f32 %v4846_v31 }
0x2f29   :  { %v6104_v20 = vpop.eup %6103 }
0x2f2a   :  { %v4848_v8 = vmul.f32 %v6104_v20, %v4840_v35  ;;  %v5156_v35 = vld [vmem:[#allocation2 + $0x10d] ss:$0 sm:$0xff] }
0x2f2c   :  { %v4853_v36 = vmul.f32 %v6569_v5, %v4848_v8 }
0x2f2e   :  { %v4858_v27 = vadd.f32 %v6571_v9, %v4853_v36 }
0x2f30   :  { %5773 = vmatmul.mubr.msk.f32.vlgmr.msra.gmra.mrb[54].mxu0 %vm71_vm0, %v4858_v27 }
0x3003   :  { %v4933_v51 = vpop.f32.mrb[54].mxu0 }
0x3004   :  { %v4934_v52 = vadd.f32 %v6609_v44, %v4933_v51  ;;  %v5774_v7 = vpop.f32.mrb[55].mxu0 }
0x3006   :  { %v4938_v55 = vmul.f32 0.70710677, %v4934_v52  ;;  %v4937_v18 = vmul.f32 0.5, %v4934_v52 }
0x3008   :  { %v4941_v61 = vand.u32 2147483647, %v4938_v55  ;;  %vm4939_vm10 = vcmp.ge.f32.partialorder %v4938_v55, 0.0 }
0x3009   :  { %v4940_v63 = vsel %vm4939_vm10, 1.0, %v6181_v19  ;;  %v2543_v19 = vsel %vm71_vm0, %v2542_v29, 0.0 }
0x300a   :  { %v4942_v49 = vmul.f32 0.3275911, %v4941_v61  ;;  %v4954_v48 = vsub.f32 0.0, %v4941_v61 }
0x300c   :  { %v4943_v12 = vadd.f32 1.0, %v4942_v49  ;;  %v4955_v60 = vmul.f32 %v4954_v48, %v4941_v61 }
0x300e   :  { %6105 = vrcp.f32 %v4943_v12  ;;  %v4956_v15 = vmul.f32 1.442695, %v4955_v60 }
0x3010   :  { %6107 = vpow2.f32 %v4956_v15 }
0x3018   :  { %v6106_v58 = vpop.eup %6105 }
0x3019   :  { %v4945_v46 = vmul.f32 1.0614054, %v6106_v58 }
0x301a   :  { %v6108_v2 = vpop.eup %6107 }
0x301b   :  { %v4946_v50 = vadd.f32 -1.4531521, %v4945_v46 }
0x301d   :  { %v4947_v5 = vmul.f32 %v6106_v58, %v4946_v50 }
0x301f   :  { %v4948_v62 = vadd.f32 1.4214138, %v4947_v5 }
0x3021   :  { %v4949_v9 = vmul.f32 %v6106_v58, %v4948_v62 }
0x3023   :  { %v4950_v1 = vadd.f32 -0.28449672, %v4949_v9 }
0x3025   :  { %v4951_v30 = vmul.f32 %v6106_v58, %v4950_v1 }
0x3027   :  { %v4952_v33 = vadd.f32 0.2548296, %v4951_v30 }
0x3029   :  { %v4953_v44 = vmul.f32 %v6106_v58, %v4952_v33 }
0x302b   :  { %v4958_v56 = vmul.f32 %v6108_v2, %v4953_v44 }
0x302d   :  { %v4959_v37 = vsub.f32 1.0, %v4958_v56 }
0x302f   :  { %v4960_v16 = vmul.f32 %v4959_v37, %v4940_v63 }
0x3031   :  { %v4961_v3 = vadd.f32 1.0, %v4960_v16 }
0x3033   :  { %v4962_v34 = vmul.f32 %v4961_v3, %v4937_v18 }
0x3035   :  { %5792 = vmatmul.mubr.msk.f32.vlgmr.msra.gmra.mrb[58].mxu1 %vm2460_vm9, %v4962_v34 }
0x3108   :  { %v5037_v40 = vpop.f32.mrb[58].mxu1 }
0x3109   :  { %v5038_v0 = vadd.f32 %v6878_v43, %v5037_v40  ;;  %v5793_v25 = vpop.f32.mrb[59].mxu1 }
0x310b   :  { %v5041_v26 = vadd.f32 %v5038_v0, %v4858_v27 }
0x310d   :  { %v5044_v11 = vsel %vm71_vm0, %v5041_v26, 0.0 }
0x310e   :  { %5045 = vadd.xlane.f32.xlu0 %v5044_v11 }
0x3112   :  { %2544 = vadd.xlane.f32.xlu0 %v2543_v19 }
0x3128   :  { %2561 = vrot.lane.b32.xlu0 %v1132_v14, %s6182_s2 }
0x312c   :  { %5072 = vrot.lane.b32.xlu0 %v4826_v13, %s6179_s16 }
0x319b   :  { %v5046_v43 = vpop.xlane.xlu0 %5045 }
0x319c   :  { %v5047_v22 = vmul.f32 0.03125, %v5046_v43 }
0x319e   :  { %v5048_v21 = vsub.f32 %v5041_v26, %v5047_v22 }
0x319f   :  { %v2545_v42 = vpop.xlane.xlu0 %2544 }
0x31a0   :  { %v2546_v38 = vmul.f32 0.03125, %v2545_v42  ;;  %v5049_v10 = vmul.f32 %v5048_v21, %v5048_v21 }
0x31a2   :  { %v2547_v41 = vadd.f32 1e-05, %v2546_v38  ;;  %v5050_v32 = vsel %vm71_vm0, %v5049_v10, 0.0 }
0x31a3   :  { %5051 = vadd.xlane.f32.xlu1 %v5050_v32  ;;  %v2562_v28 = vpop.permute.xlu0 %2561 }
0x31a4   :  { %6109 = vrsqrt.f32 %v2547_v41 }
0x31a7   :  { %v5073_v49 = vpop.permute.xlu0 %5072 }
0x31ae   :  { %v6110_v54 = vpop.eup %6109 }
0x31af   :  { %v2549_v39 = vmul.f32 %v6110_v54, %v2541_v24 }
0x31b1   :  { %v2554_v59 = vmul.f32 %v5156_v35, %v2549_v39 }
0x31b3   :  { %v2559_v47 = vadd.f32 %v5157_v23, %v2554_v59 }
0x31b4   :  { %5068 = vrot.lane.b32.xlu1 %v3642_v6, %s6182_s2 }
0x31b5   :  { %v2568_v31 = vsel %vm71_vm0, %v2559_v47, %v2562_v28 }
0x31b6   :  { %v2570_v20 = vsel %vm2569_vm11, %v2568_v31, %v2566_v53 }
0x31b7   :  { %v2572_v8 = vsel %vm2571_vm12, %v2570_v20, 0.0 }
0x31b8   :  { %2573 = vst [vmem:[#allocation5] sm:$0xff] %v2572_v8 }
0x3230   :  { %v5052_v36 = vpop.xlane.xlu1 %5051 }
0x3231   :  { %v5053_v27 = vmul.f32 0.03125, %v5052_v36 }
0x3233   :  { %v5054_v51 = vadd.f32 1e-05, %v5053_v27 }
0x3234   :  { %v5069_v61 = vpop.permute.xlu1 %5068 }
0x3235   :  { %6111 = vrsqrt.f32 %v5054_v51 }
0x323f   :  { %v6112_v52 = vpop.eup %6111 }
0x3240   :  { %v5056_v7 = vmul.f32 %v6112_v52, %v5048_v21 }
0x3242   :  { %v5061_v57 = vmul.f32 %v5156_v35, %v5056_v7 }
0x3244   :  { %v5066_v55 = vadd.f32 %v5157_v23, %v5061_v57 }
0x3246   :  { %v5075_v12 = vsel %vm71_vm0, %v5066_v55, %v5069_v61 }
0x3247   :  { %v5076_v48 = vsel %vm2569_vm11, %v5075_v12, %v5073_v49 }
0x3248   :  { %v5077_v58 = vsel %vm2571_vm12, %v5076_v48, 0.0 }
0x3249   :  { %5079 = vst [vmem:[#allocation5 + $0x8] sm:$0xff] %v5077_v58 }
0x324a   :  { %6148 = shalt.err (!%p6145_p12)
}
0x324b   :  { %s6149_s11 = scalar_lea.hbm %s6930_s4, 256 }
0x324c   :  { %p6150_p13 = scmp.ne.s32.totalorder %s6930_s4, %s6149_s11  ;;  %p6153_p0 = scmp.lt.u32.totalorder %s6149_s11, %s6930_s4 }
0x324e   :  { %p6155_p1 = pnand %p6153_p0, %p6150_p13 }
0x3250   :  { %6158 = shalt.err (!%p6155_p1)
}
0x3251   :  { %5091 = dma.vmem_to_hbm [thread:$0]  %s5086_s6, 256, %s6930_s4, [#allocation4], %s6164_s25, %s6164_s25, %s6165_s26  }
0x3252   :  { %6161 = dma.done.wait [#allocation4], 256  }
0x3253   :  { %6162 = vsyncadd [#allocation4], 4294967040 }
0x3254   :  { %5095 = vsyncpa [#allocation3], 1 }
0x3255   :  { %5096 = vsyncpa [#allocation4], 1 }

</bundles_post_ra>
